<compile_context>
chip_gen: v5e
topology: v5e:2x2
jax: 0.10.0
libtpu: 0.0.40
codegen_flags: <defaults>
</compile_context>

<pallas_src>
import functools

import jax
import jax.numpy as jnp
from jax.experimental import pallas as pl
from jax.experimental.pallas import tpu as pltpu

_LN_EPS = 1e-5


def _patch_expand_kernel(x_ref, w0_ref, w1_ref, m_ref, mt_ref, g_ref, b_ref,
                         o_ref, *, tile_rows, width, cdim, compute_dtype):
    # x_ref:   (1, tile_rows*width, dim)      activations for one row-tile
    # w0/w1:   (dim, dim)                     pre-transposed expand weight halves
    # m_ref:   (dim, 2)  f32 0/1              channel -> group membership
    # mt_ref:  (2, dim)  f32 0/1              group   -> channel broadcast
    # g/b_ref: (1, dim)  f32                  LayerNorm affine, tiled x2 over p2
    # o_ref:   (1, tile_rows, 2, width, dim)  (h, p1, w, (p2, c)) output layout
    dim = 2 * cdim
    x = x_ref[0].astype(compute_dtype)        # (tpt, dim); cast in VMEM, not HBM
    m = m_ref[...]                            # (dim, 2) f32
    mt = mt_ref[...]                          # (2, dim) f32
    gamma = g_ref[...]                        # (1, dim) f32
    beta = b_ref[...]
    inv_c = jnp.float32(1.0 / cdim)           # keep 1/c in f32 (exact-ish for c=96,...)

    # 2-iteration static loop over the p1 halves; each half is stored before
    # the next one is computed, so live ranges stay bounded in practice.
    for p1, w_ref in enumerate((w0_ref, w1_ref)):
        # Linear expand for this p1 half (MXU, f32 accumulate).
        y = jnp.dot(x, w_ref[...], preferred_element_type=jnp.float32)   # (tpt, dim)

        # Factored grouped-LayerNorm stats: skinny membership matmuls give the
        # per-group sum / sum-of-squares (2 lanes), stats math in f32, then a
        # skinny broadcast matmul puts them back per channel. Everything stays
        # 2-D and lane-dense; FLOPs are ~dim/4 less than a dense (dim,dim) avg.
        g_sum = jnp.dot(y, m, preferred_element_type=jnp.float32)        # (tpt, 2)
        g_sq = jnp.dot(y * y, m, preferred_element_type=jnp.float32)     # (tpt, 2)
        mu_g = g_sum * inv_c
        var_g = jnp.maximum(g_sq * inv_c - mu_g * mu_g, 0.0)
        rstd_g = jax.lax.rsqrt(var_g + _LN_EPS)
        mu = jnp.dot(mu_g, mt, preferred_element_type=jnp.float32)       # (tpt, dim)
        rstd = jnp.dot(rstd_g, mt, preferred_element_type=jnp.float32)   # (tpt, dim)

        yn = (y - mu) * rstd * gamma + beta
        # (tpt, dim) -> (tile_rows, W, dim): pure leading-dim split (free); the
        # store target is the contiguous p1 slice of the (h, p1, w, (p2,c)) output.
        o_ref[0, :, p1, :, :] = yn.reshape(tile_rows, width, dim).astype(o_ref.dtype)


def _round_up(n, m):
    return ((n + m - 1) // m) * m


def _pick_tile_rows(H, W, dim, in_bytes, B, target_block_bytes=2 << 20):
    """Row-tile sized by bytes (~2 MiB x-block), divides H, keeps tile_rows*W a
    multiple of 8 when the token axis is tiled, and guarantees >= 2 total grid
    steps when B == 1 so both v7x TensorCores can be fed."""
    tgt_tokens = max(W, target_block_bytes // max(1, dim * in_bytes))
    cands = [d for d in range(1, H + 1)
             if H % d == 0 and ((d * W) % 8 == 0 or d == H)]
    fitting = [d for d in cands if d * W <= tgt_tokens]
    tile = max(fitting) if fitting else min(cands)
    if B * (H // tile) < 2:                      # keep v7x's 2nd TC busy
        halves = [d for d in cands if H // d >= 2]
        if halves:
            tile = max(halves)
    return tile


def _derived_vmem_limit(tpt, tile_rows, W, dim, in_bytes, out_bytes, cw_bytes):
    """vmem_limit_bytes derived from the real block footprint (double-buffered
    inputs/outputs + resident constants + slack), generation-safe caps."""
    lane = 128
    x_blk = tpt * _round_up(dim, lane) * in_bytes
    o_blk = tile_rows * 2 * _round_up(W, 8) * _round_up(dim, lane) * out_bytes
    w_blk = 2 * _round_up(dim, 8) * _round_up(dim, lane) * cw_bytes          # w0 + w1
    stats = (_round_up(dim, 8) * 128                                         # M (dim,2)
             + 8 * _round_up(dim, lane)                                      # M^T (2,dim)
             + 2 * 8 * _round_up(dim, lane)) * 4                             # gamma, beta
    needed = 2 * (x_blk + o_blk + w_blk + stats) + (4 << 20)
    # >= default scoped VMEM everywhere, <= 56 MiB so v7x (64 MiB/TC) is safe.
    return int(min(max(32 << 20, int(needed * 1.5)), 56 << 20))


def patch_expand(x, w, gamma, beta, input_resolution, *,
                 tile_rows=None, compute_dtype=None, out_dtype=None):
    """PatchExpand.forward (dim_scale=2).

    x: (B, H*W, dim); w: (2*dim, dim) [nn.Linear(dim, 2*dim, bias=False)];
    gamma/beta: (dim//2,) [nn.LayerNorm(dim//2)].
    Returns (B, 4*H*W, dim//2) in x.dtype (or `out_dtype`).
    """
    H, W = input_resolution
    B, L, dim = x.shape
    assert L == H * W, "input feature has wrong size"
    assert dim % 2 == 0, "dim must be even"
    c = dim // 2
    compute_dtype = jnp.bfloat16 if compute_dtype is None else compute_dtype
    out_dtype = x.dtype if out_dtype is None else out_dtype

    in_bytes = jnp.dtype(x.dtype).itemsize
    out_bytes = jnp.dtype(out_dtype).itemsize
    cw_bytes = jnp.dtype(compute_dtype).itemsize

    if tile_rows is None:
        tile_rows = _pick_tile_rows(H, W, dim, in_bytes, B)
    assert H % tile_rows == 0, "tile_rows must divide H"
    assert tile_rows == H or (tile_rows * W) % 8 == 0, \
        "tokens per tile must be a multiple of 8 when the token axis is tiled"
    n_tiles = H // tile_rows
    tpt = tile_rows * W                     # tokens per grid step

    # Pre-transpose the expand weight to (dim, 2*dim) (canonical K-major MXU
    # RHS) and pre-split into the p1 = 0 / 1 output-channel halves (bf16 by
    # default: MXU-native, half the resident VMEM).
    w_t = jnp.asarray(w).T
    w0 = w_t[:, :dim].astype(compute_dtype)     # channels [0, dim)      -> p1 = 0
    w1 = w_t[:, dim:].astype(compute_dtype)     # channels [dim, 2*dim)  -> p1 = 1

    # 0/1 group-membership matrix (dim, 2) and its transpose: channel j belongs
    # to group j // c. Kept f32/0-1 so LN stats are exact; 1/c applied in-kernel.
    grp = jnp.arange(dim) // c
    m2 = (grp[:, None] == jnp.arange(2)[None, :]).astype(jnp.float32)   # (dim, 2)
    m2t = m2.T                                                          # (2, dim)

    # LayerNorm affine, tiled over the two p2 groups of each half.
    gamma2 = jnp.tile(gamma.astype(jnp.float32).reshape(-1), 2).reshape(1, dim)
    beta2 = jnp.tile(beta.astype(jnp.float32).reshape(-1), 2).reshape(1, dim)

    kernel = functools.partial(_patch_expand_kernel, tile_rows=tile_rows,
                               width=W, cdim=c, compute_dtype=compute_dtype)

    vmem_limit = _derived_vmem_limit(tpt, tile_rows, W, dim,
                                     in_bytes, out_bytes, cw_bytes)

    # Output is laid out as (B, H, p1, W, (p2, c)); flattening it below to
    # (B, 4*H*W, c) is a contiguous reshape -> exactly the
    # 'b h w (p1 p2 c) -> b (h p1) (w p2) c' token order, no extra HBM pass.
    y = pl.pallas_call(
        kernel,
        out_shape=jax.ShapeDtypeStruct((B, H, 2, W, dim), out_dtype),
        grid=(B, n_tiles),
        in_specs=[
            pl.BlockSpec((1, tpt, dim), lambda b, t: (b, t, 0)),
            pl.BlockSpec((dim, dim), lambda b, t: (0, 0)),   # weights stay resident
            pl.BlockSpec((dim, dim), lambda b, t: (0, 0)),
            pl.BlockSpec((dim, 2), lambda b, t: (0, 0)),
            pl.BlockSpec((2, dim), lambda b, t: (0, 0)),
            pl.BlockSpec((1, dim), lambda b, t: (0, 0)),
            pl.BlockSpec((1, dim), lambda b, t: (0, 0)),
        ],
        out_specs=pl.BlockSpec((1, tile_rows, 2, W, dim),
                               lambda b, t: (b, t, 0, 0, 0)),
        compiler_params=pltpu.CompilerParams(
            dimension_semantics=("parallel", "parallel"),
            vmem_limit_bytes=vmem_limit,
        ),
    )(x, w0, w1, m2, m2t, gamma2, beta2)

    return y.reshape(B, 4 * H * W, c)


def _reference(x, w, gamma, beta, input_resolution):
    """Pure-JAX reference mirroring the PyTorch forward."""
    H, W = input_resolution
    B, L, dim = x.shape
    y = x @ w.T                                     # (B, L, 2*dim)
    C = 2 * dim
    y = y.reshape(B, H, W, 2, 2, C // 4)
    y = jnp.transpose(y, (0, 1, 3, 2, 4, 5)).reshape(B, 4 * H * W, C // 4)
    mean = y.mean(-1, keepdims=True)
    var = ((y - mean) ** 2).mean(-1, keepdims=True)
    return (y - mean) / jnp.sqrt(var + _LN_EPS) * gamma + beta


if __name__ == "__main__":
    key = jax.random.PRNGKey(0)
    B, H, W, dim = 2, 16, 16, 64
    kx, kw, kg, kb = jax.random.split(key, 4)

    x = jax.random.normal(kx, (B, H * W, dim), dtype=jnp.float32)
    # nn.Linear(dim, 2*dim, bias=False): weight shape (2*dim, dim)
    w = (jax.random.normal(kw, (2 * dim, dim), dtype=jnp.float32)
         * (1.0 / jnp.sqrt(dim)))
    # Non-trivial LayerNorm affine to exercise gamma/beta.
    gamma = 1.0 + 0.1 * jax.random.normal(kg, (dim // 2,), dtype=jnp.float32)
    beta = 0.05 * jax.random.normal(kb, (dim // 2,), dtype=jnp.float32)

    ref = _reference(x, w, gamma, beta, (H, W))

    # Default path: bf16 MXU compute, f32 LN stats, auto byte-sized tiles,
    # output in the input dtype (f32).
    run = jax.jit(lambda a, ww, g, bb: patch_expand(a, ww, g, bb, (H, W)))
    out = jax.block_until_ready(run(x, w, gamma, beta))
    assert out.shape == (B, 4 * H * W, dim // 2), out.shape
    assert out.dtype == x.dtype, out.dtype
    assert jnp.allclose(out, ref, atol=8e-2, rtol=8e-2), (
        "default (bf16 compute) mismatch, max abs err = %e"
        % float(jnp.max(jnp.abs(out - ref))))

    # Exact f32 path with the token axis explicitly tiled (grid = (2, 4)).
    run_f32 = jax.jit(lambda a, ww, g, bb: patch_expand(
        a, ww, g, bb, (H, W), tile_rows=4, compute_dtype=jnp.float32))
    out_f32 = jax.block_until_ready(run_f32(x, w, gamma, beta))
    assert out_f32.shape == (B, 4 * H * W, dim // 2), out_f32.shape
    assert jnp.allclose(out_f32, ref, atol=1e-3, rtol=1e-3), (
        "f32 mismatch, max abs err = %e"
        % float(jnp.max(jnp.abs(out_f32 - ref))))

    # Bandwidth-lean path: bf16 activations in, bf16 out (halves both HBM
    # streams); LayerNorm math stays in f32.
    x_bf16 = x.astype(jnp.bfloat16)
    run_bf16 = jax.jit(lambda a, ww, g, bb: patch_expand(
        a, ww, g, bb, (H, W), out_dtype=jnp.bfloat16))
    out_bf16 = jax.block_until_ready(run_bf16(x_bf16, w, gamma, beta))
    assert out_bf16.shape == (B, 4 * H * W, dim // 2), out_bf16.shape
    assert out_bf16.dtype == jnp.bfloat16, out_bf16.dtype
    assert jnp.allclose(out_bf16.astype(jnp.float32), ref, atol=1.5e-1, rtol=1.5e-1), (
        "bf16 in/out mismatch, max abs err = %e"
        % float(jnp.max(jnp.abs(out_bf16.astype(jnp.float32) - ref))))

    print("KERNEL_OK")
</pallas_src>

<mosaic_0001>
module attributes {stable_mosaic.version = 11 : i64} {
  func.func @_patch_expand_kernel(%arg0: i32, %arg1: i32, %arg2: memref<1x256x64xf32, #tpu.memory_space<vmem>>, %arg3: memref<64x64xbf16, #tpu.memory_space<vmem>>, %arg4: memref<64x64xbf16, #tpu.memory_space<vmem>>, %arg5: memref<64x2xf32, #tpu.memory_space<vmem>>, %arg6: memref<2x64xf32, #tpu.memory_space<vmem>>, %arg7: memref<1x64xf32, #tpu.memory_space<vmem>>, %arg8: memref<1x64xf32, #tpu.memory_space<vmem>>, %arg9: memref<1x16x2x16x64xf32, #tpu.memory_space<vmem>>) attributes {dimension_semantics = [#tpu.dimension_semantics<parallel>, #tpu.dimension_semantics<parallel>], iteration_bounds = array<i64: 2, 1>, scalar_prefetch = 0 : i64, scratch_operands = 0 : i64, tpu.core_type = #tpu.core_type<tc>, window_params = [{transform_indices = @transform_0, window_bounds = array<i64: 1, 256, 64>}, {pipeline_mode = #tpu.pipeline_mode<synchronous>, transform_indices = @transform_1, window_bounds = array<i64: 64, 64>}, {pipeline_mode = #tpu.pipeline_mode<synchronous>, transform_indices = @transform_2, window_bounds = array<i64: 64, 64>}, {pipeline_mode = #tpu.pipeline_mode<synchronous>, transform_indices = @transform_3, window_bounds = array<i64: 64, 2>}, {pipeline_mode = #tpu.pipeline_mode<synchronous>, transform_indices = @transform_4, window_bounds = array<i64: 2, 64>}, {pipeline_mode = #tpu.pipeline_mode<synchronous>, transform_indices = @transform_5, window_bounds = array<i64: 1, 64>}, {pipeline_mode = #tpu.pipeline_mode<synchronous>, transform_indices = @transform_6, window_bounds = array<i64: 1, 64>}, {transform_indices = @transform_7, window_bounds = array<i64: 1, 16, 2, 16, 64>}]} {
    %c0 = arith.constant 0 : index
    %c0_0 = arith.constant 0 : index
    %c0_1 = arith.constant 0 : index
    %0 = vector.load %arg2[%c0, %c0_0, %c0_1] : memref<1x256x64xf32, #tpu.memory_space<vmem>>, vector<1x256x64xf32>
    %1 = vector.shape_cast %0 : vector<1x256x64xf32> to vector<256x64xf32>
    %2 = arith.truncf %1 : vector<256x64xf32> to vector<256x64xbf16>
    %c0_2 = arith.constant 0 : index
    %c0_3 = arith.constant 0 : index
    %3 = vector.load %arg5[%c0_2, %c0_3] : memref<64x2xf32, #tpu.memory_space<vmem>>, vector<64x2xf32>
    %c0_4 = arith.constant 0 : index
    %c0_5 = arith.constant 0 : index
    %4 = vector.load %arg6[%c0_4, %c0_5] : memref<2x64xf32, #tpu.memory_space<vmem>>, vector<2x64xf32>
    %c0_6 = arith.constant 0 : index
    %c0_7 = arith.constant 0 : index
    %5 = vector.load %arg7[%c0_6, %c0_7] : memref<1x64xf32, #tpu.memory_space<vmem>>, vector<1x64xf32>
    %c0_8 = arith.constant 0 : index
    %c0_9 = arith.constant 0 : index
    %6 = vector.load %arg8[%c0_8, %c0_9] : memref<1x64xf32, #tpu.memory_space<vmem>>, vector<1x64xf32>
    %c0_10 = arith.constant 0 : index
    %c0_11 = arith.constant 0 : index
    %7 = vector.load %arg3[%c0_10, %c0_11] : memref<64x64xbf16, #tpu.memory_space<vmem>>, vector<64x64xbf16>
    %cst = arith.constant dense<0.000000e+00> : vector<256x64xf32>
    %8 = tpu.matmul %2, %7, %cst {dimension_numbers = #tpu.dot_dimension_numbers<[1], [0], [0], [1], [0, 0, 1, 1], [], []>} : vector<256x64xbf16>, vector<64x64xbf16>, vector<256x64xf32> -> vector<256x64xf32>
    %cst_12 = arith.constant dense<0.000000e+00> : vector<256x2xf32>
    %9 = tpu.matmul %8, %3, %cst_12 {dimension_numbers = #tpu.dot_dimension_numbers<[1], [0], [0], [1], [0, 0, 1, 1], [], []>} : vector<256x64xf32>, vector<64x2xf32>, vector<256x2xf32> -> vector<256x2xf32>
    %10 = arith.mulf %8, %8 : vector<256x64xf32>
    %cst_13 = arith.constant dense<0.000000e+00> : vector<256x2xf32>
    %11 = tpu.matmul %10, %3, %cst_13 {dimension_numbers = #tpu.dot_dimension_numbers<[1], [0], [0], [1], [0, 0, 1, 1], [], []>} : vector<256x64xf32>, vector<64x2xf32>, vector<256x2xf32> -> vector<256x2xf32>
    %cst_14 = arith.constant 3.125000e-02 : f32
    %12 = vector.broadcast %cst_14 : f32 to vector<256x2xf32>
    %13 = arith.mulf %9, %12 : vector<256x2xf32>
    %cst_15 = arith.constant 3.125000e-02 : f32
    %14 = vector.broadcast %cst_15 : f32 to vector<256x2xf32>
    %15 = arith.mulf %11, %14 : vector<256x2xf32>
    %16 = arith.mulf %13, %13 : vector<256x2xf32>
    %17 = arith.subf %15, %16 : vector<256x2xf32>
    %cst_16 = arith.constant 0.000000e+00 : f32
    %18 = vector.broadcast %cst_16 : f32 to vector<256x2xf32>
    %19 = arith.maximumf %17, %18 : vector<256x2xf32>
    %cst_17 = arith.constant 9.99999974E-6 : f32
    %20 = vector.broadcast %cst_17 : f32 to vector<256x2xf32>
    %21 = arith.addf %19, %20 : vector<256x2xf32>
    %22 = math.rsqrt %21 : vector<256x2xf32>
    %cst_18 = arith.constant dense<0.000000e+00> : vector<256x64xf32>
    %23 = tpu.matmul %13, %4, %cst_18 {dimension_numbers = #tpu.dot_dimension_numbers<[1], [0], [0], [1], [0, 0, 1, 1], [], []>} : vector<256x2xf32>, vector<2x64xf32>, vector<256x64xf32> -> vector<256x64xf32>
    %cst_19 = arith.constant dense<0.000000e+00> : vector<256x64xf32>
    %24 = tpu.matmul %22, %4, %cst_19 {dimension_numbers = #tpu.dot_dimension_numbers<[1], [0], [0], [1], [0, 0, 1, 1], [], []>} : vector<256x2xf32>, vector<2x64xf32>, vector<256x64xf32> -> vector<256x64xf32>
    %25 = arith.subf %8, %23 : vector<256x64xf32>
    %26 = arith.mulf %25, %24 : vector<256x64xf32>
    %27 = vector.broadcast %5 : vector<1x64xf32> to vector<256x64xf32>
    %28 = arith.mulf %26, %27 : vector<256x64xf32>
    %29 = vector.broadcast %6 : vector<1x64xf32> to vector<256x64xf32>
    %30 = arith.addf %28, %29 : vector<256x64xf32>
    %31 = vector.shape_cast %30 : vector<256x64xf32> to vector<16x16x64xf32>
    %c0_20 = arith.constant 0 : index
    %c0_21 = arith.constant 0 : index
    %c0_22 = arith.constant 0 : index
    %c0_23 = arith.constant 0 : index
    %c0_24 = arith.constant 0 : index
    %32 = vector.load %arg9[%c0_20, %c0_21, %c0_22, %c0_23, %c0_24] : memref<1x16x2x16x64xf32, #tpu.memory_space<vmem>>, vector<1x16x1x16x64xf32>
    %33 = vector.shape_cast %32 : vector<1x16x1x16x64xf32> to vector<16x16x64xf32>
    %34 = vector.shape_cast %31 : vector<16x16x64xf32> to vector<1x16x1x16x64xf32>
    tpu.vector_store %arg9[%c0_20, %c0_21, %c0_22, %c0_23, %c0_24], %34 {strides = array<i32>} : memref<1x16x2x16x64xf32, #tpu.memory_space<vmem>>, vector<1x16x1x16x64xf32>,
    %c0_25 = arith.constant 0 : index
    %c0_26 = arith.constant 0 : index
    %35 = vector.load %arg4[%c0_25, %c0_26] : memref<64x64xbf16, #tpu.memory_space<vmem>>, vector<64x64xbf16>
    %cst_27 = arith.constant dense<0.000000e+00> : vector<256x64xf32>
    %36 = tpu.matmul %2, %35, %cst_27 {dimension_numbers = #tpu.dot_dimension_numbers<[1], [0], [0], [1], [0, 0, 1, 1], [], []>} : vector<256x64xbf16>, vector<64x64xbf16>, vector<256x64xf32> -> vector<256x64xf32>
    %cst_28 = arith.constant dense<0.000000e+00> : vector<256x2xf32>
    %37 = tpu.matmul %36, %3, %cst_28 {dimension_numbers = #tpu.dot_dimension_numbers<[1], [0], [0], [1], [0, 0, 1, 1], [], []>} : vector<256x64xf32>, vector<64x2xf32>, vector<256x2xf32> -> vector<256x2xf32>
    %38 = arith.mulf %36, %36 : vector<256x64xf32>
    %cst_29 = arith.constant dense<0.000000e+00> : vector<256x2xf32>
    %39 = tpu.matmul %38, %3, %cst_29 {dimension_numbers = #tpu.dot_dimension_numbers<[1], [0], [0], [1], [0, 0, 1, 1], [], []>} : vector<256x64xf32>, vector<64x2xf32>, vector<256x2xf32> -> vector<256x2xf32>
    %cst_30 = arith.constant 3.125000e-02 : f32
    %40 = vector.broadcast %cst_30 : f32 to vector<256x2xf32>
    %41 = arith.mulf %37, %40 : vector<256x2xf32>
    %cst_31 = arith.constant 3.125000e-02 : f32
    %42 = vector.broadcast %cst_31 : f32 to vector<256x2xf32>
    %43 = arith.mulf %39, %42 : vector<256x2xf32>
    %44 = arith.mulf %41, %41 : vector<256x2xf32>
    %45 = arith.subf %43, %44 : vector<256x2xf32>
    %cst_32 = arith.constant 0.000000e+00 : f32
    %46 = vector.broadcast %cst_32 : f32 to vector<256x2xf32>
    %47 = arith.maximumf %45, %46 : vector<256x2xf32>
    %cst_33 = arith.constant 9.99999974E-6 : f32
    %48 = vector.broadcast %cst_33 : f32 to vector<256x2xf32>
    %49 = arith.addf %47, %48 : vector<256x2xf32>
    %50 = math.rsqrt %49 : vector<256x2xf32>
    %cst_34 = arith.constant dense<0.000000e+00> : vector<256x64xf32>
    %51 = tpu.matmul %41, %4, %cst_34 {dimension_numbers = #tpu.dot_dimension_numbers<[1], [0], [0], [1], [0, 0, 1, 1], [], []>} : vector<256x2xf32>, vector<2x64xf32>, vector<256x64xf32> -> vector<256x64xf32>
    %cst_35 = arith.constant dense<0.000000e+00> : vector<256x64xf32>
    %52 = tpu.matmul %50, %4, %cst_35 {dimension_numbers = #tpu.dot_dimension_numbers<[1], [0], [0], [1], [0, 0, 1, 1], [], []>} : vector<256x2xf32>, vector<2x64xf32>, vector<256x64xf32> -> vector<256x64xf32>
    %53 = arith.subf %36, %51 : vector<256x64xf32>
    %54 = arith.mulf %53, %52 : vector<256x64xf32>
    %55 = vector.broadcast %5 : vector<1x64xf32> to vector<256x64xf32>
    %56 = arith.mulf %54, %55 : vector<256x64xf32>
    %57 = vector.broadcast %6 : vector<1x64xf32> to vector<256x64xf32>
    %58 = arith.addf %56, %57 : vector<256x64xf32>
    %59 = vector.shape_cast %58 : vector<256x64xf32> to vector<16x16x64xf32>
    %c0_36 = arith.constant 0 : index
    %c0_37 = arith.constant 0 : index
    %c1 = arith.constant 1 : index
    %c0_38 = arith.constant 0 : index
    %c0_39 = arith.constant 0 : index
    %60 = vector.load %arg9[%c0_36, %c0_37, %c1, %c0_38, %c0_39] : memref<1x16x2x16x64xf32, #tpu.memory_space<vmem>>, vector<1x16x1x16x64xf32>
    %61 = vector.shape_cast %60 : vector<1x16x1x16x64xf32> to vector<16x16x64xf32>
    %62 = vector.shape_cast %59 : vector<16x16x64xf32> to vector<1x16x1x16x64xf32>
    tpu.vector_store %arg9[%c0_36, %c0_37, %c1, %c0_38, %c0_39], %62 {strides = array<i32>} : memref<1x16x2x16x64xf32, #tpu.memory_space<vmem>>, vector<1x16x1x16x64xf32>,
    return
  }
  func.func @transform_0(%arg0: i32, %arg1: i32) -> (i32, i32, i32) {
    %c0_i32 = arith.constant 0 : i32
    %c0_i32_0 = arith.constant 0 : i32
    return %arg0, %arg1, %c0_i32 : i32, i32, i32
  }
  func.func @transform_1(%arg0: i32, %arg1: i32) -> (i32, i32) {
    %c0_i32 = arith.constant 0 : i32
    %c0_i32_0 = arith.constant 0 : i32
    %c0_i32_1 = arith.constant 0 : i32
    return %c0_i32, %c0_i32_0 : i32, i32
  }
  func.func @transform_2(%arg0: i32, %arg1: i32) -> (i32, i32) {
    %c0_i32 = arith.constant 0 : i32
    %c0_i32_0 = arith.constant 0 : i32
    %c0_i32_1 = arith.constant 0 : i32
    return %c0_i32, %c0_i32_0 : i32, i32
  }
  func.func @transform_3(%arg0: i32, %arg1: i32) -> (i32, i32) {
    %c0_i32 = arith.constant 0 : i32
    %c0_i32_0 = arith.constant 0 : i32
    %c0_i32_1 = arith.constant 0 : i32
    return %c0_i32, %c0_i32_0 : i32, i32
  }
  func.func @transform_4(%arg0: i32, %arg1: i32) -> (i32, i32) {
    %c0_i32 = arith.constant 0 : i32
    %c0_i32_0 = arith.constant 0 : i32
    %c0_i32_1 = arith.constant 0 : i32
    return %c0_i32, %c0_i32_0 : i32, i32
  }
  func.func @transform_5(%arg0: i32, %arg1: i32) -> (i32, i32) {
    %c0_i32 = arith.constant 0 : i32
    %c0_i32_0 = arith.constant 0 : i32
    %c0_i32_1 = arith.constant 0 : i32
    return %c0_i32, %c0_i32_0 : i32, i32
  }
  func.func @transform_6(%arg0: i32, %arg1: i32) -> (i32, i32) {
    %c0_i32 = arith.constant 0 : i32
    %c0_i32_0 = arith.constant 0 : i32
    %c0_i32_1 = arith.constant 0 : i32
    return %c0_i32, %c0_i32_0 : i32, i32
  }
  func.func @transform_7(%arg0: i32, %arg1: i32) -> (i32, i32, i32, i32, i32) {
    %c0_i32 = arith.constant 0 : i32
    %c0_i32_0 = arith.constant 0 : i32
    %c0_i32_1 = arith.constant 0 : i32
    %c0_i32_2 = arith.constant 0 : i32
    return %arg0, %arg1, %c0_i32, %c0_i32_0, %c0_i32_1 : i32, i32, i32, i32, i32
  }
}

</mosaic_0001>

<bundles_post_ra>
// kernel: tile.13
= control target key start
LH: loop header
LB: loop body
LE: loop exit
PB: predicated region body
PF: predicated region fallthrough
CT: control target
= control target key end

     0   :  { %s22_s0 = inlined_call_operand.vmem [shape: f32[32], index: 0, kind: input, shape index: {}]   ;;  %s23_s1 = inlined_call_operand.vmem [shape: f32[2,32], index: 1, kind: output, shape index: {}]  }
   0x1   :  { %v4_v0 = vld [vmem:[%s22_s0] ss:$0 sm:$0xff] }
   0x2   :  { %5 = vst [vmem:[%s23_s1] sm:$0x3] %v4_v0 }

// kernel: tile.14
= control target key start
LH: loop header
LB: loop body
LE: loop exit
PB: predicated region body
PF: predicated region fallthrough
CT: control target
= control target key end

     0   :  { %vm7_vm0 = vcmask 261120   ;;  %vm13_vm1 = vcmask 523520   ;;  %s39_s0 = inlined_call_operand.vmem [shape: f32[2,32], index: 0, kind: input, shape index: {}]   ;;  %s40_s1 = inlined_call_operand.vmem [shape: f32[1,64], index: 1, kind: output, shape index: {}]  }
   0x1   :  { %v4_v0 = vld [vmem:[%s39_s0] sm:$0x3]  ;;  %s22_s0 = smov 32  }
   0x2   :  { %5 = vst [vmem:[#allocation1] sm:$0x3] %v4_v0 }
   0x9   :  { %v10_v1 = vld [vmem:[#allocation1 + $0x1] sm:$0x1]   ;;  %v6_v2 = vld [vmem:[#allocation1] sm:$0x1]  }
   0xa   :  { %11 = vrot.lane.b32.xlu0 %v10_v1, %s22_s0  ;;  %8 = vst.msk [vmem:[#allocation0] sm:$0x1] %vm7_vm0, %v6_v2  }
  0x7c   :  { %v12_v3 = vpop.permute.xlu0 %11  }
  0x7d   :  { %14 = vst.msk [vmem:[#allocation0] sm:$0x1] %vm13_vm1, %v12_v3  }
  0x84   :  { %v17_v4 = vld [vmem:[#allocation0] sm:$0x1] }
  0x85   :  { %20 = vst [vmem:[%s40_s1] sm:$0x1] %v17_v4 }

// kernel: _lambda_.1
= control target key start
LH: loop header
LB: loop body
LE: loop exit
PB: predicated region body
PF: predicated region fallthrough
CT: control target
= control target key end

     0   :  { %s4460_s24 = smov 0   ;;  %s4462_s25 = smov 0   ;;  %s6850_s0 = inlined_call_operand.vmem [shape: f32[2,256,64], index: 0, kind: input, shape index: {}]   ;;  %s6851_s1 = inlined_call_operand.vmem [shape: bf16[64,64], index: 1, kind: input, shape index: {}]   ;;  %s6852_s2 = inlined_call_operand.vmem [shape: bf16[64,64], index: 2, kind: input, shape index: {}]   ;;  %s6853_s3 = inlined_call_operand.vmem [shape: f32[64,2], index: 3, kind: input, shape index: {}]   ;;  %s6854_s4 = inlined_call_operand.vmem [shape: f32[2,64], index: 4, kind: input, shape index: {}]   ;;  %s6855_s5 = inlined_call_operand.vmem [shape: f32[1,64], index: 5, kind: input, shape index: {}]   ;;  %s6856_s6 = inlined_call_operand.vmem [shape: f32[1,64], index: 6, kind: input, shape index: {}]   ;;  %s6857_s7 = inlined_call_operand.vmem [shape: f32[2,16,2,16,64], index: 7, kind: output, shape index: {}]  }
   0x1   :  { %s4464_s26 = smov 0  }
   0x2 LB: > { %s29_s27 = sadd.s32 1, %s4414_s25  ;;  %p3860_p0 = scmp.ge.s32.totalorder %s4418_s26, 1  ;;  %s4418_s26 = sphi %s4464_s26, %s17_s26   ;;  %s4414_s25 = sphi %s4462_s25, %s7072_s25   ;;  %s4410_s24 = sphi %s4460_s24, %s7071_s24  }
   0x3   : > { %p31_p1 = scmp.ge.s32.totalorder %s29_s27, 2  ;;  %p258_p2 = scmp.lt.s32.totalorder %s4418_s26, 3 }
   0x5   : > { %s7074_s27 = smov (%p31_p1, %s29_s27), 0  ;;  %p259_p3 = pnand %p3860_p0, %p258_p2 }
   0x7   : > { %262 = sbr.rel (%p259_p3) target bundleno = 1186 (0x4a2), region = 48 }
   0xc   : > { %v4228_v0 = vld [vmem:[%s6851_s1 + $0x18] sm:$0xff]  ;;  %p300_p4 = scmp.lt.s32.totalorder %s4410_s24, 1  ;;  %v4227_v1 = vld [vmem:[%s6851_s1 + $0x10] sm:$0xff]  ;;  %v4226_v4 = vld [vmem:[%s6851_s1 + $0x8] sm:$0xff]  ;;  %vm412_vm0 = vcmask 523264   ;;  %vm1609_vm1 = vcmask 1041408  }
   0xd   : > { %v4487_v2 = vld [vmem:[%s6853_s3 + $0x38] sm:$0xff]  ;;  %465 = vmatpush.bf16.msra.mxu0 %v4228_v0  ;;  %4233 = vmatpush.bf16.msra.mxu1 %v4228_v0  ;;  %v4494_v3 = vld [vmem:[%s6853_s3 + $0x30] sm:$0xff]  ;;  %v4225_v5 = vld [vmem:[%s6851_s1] sm:$0xff]  ;;  %vm1512_vm2 = vcmask 15360  }
   0xe   : > { %s7076_s24 = smov (!%p300_p4, %s4410_s24), 1  ;;  %895 = vmatpush.msra.mxu2 %v4487_v2  ;;  %v4526_v12 = vld [vmem:[%s6853_s3 + $0x28] sm:$0xff]  ;;  %v4546_v19 = vld [vmem:[%s6853_s3 + $0x20] sm:$0xff]  ;;  %v4565_v26 = vld [vmem:[%s6853_s3 + $0x18] sm:$0xff] }
   0xf   : > { %s4223_s13 = sshll.u32 %s7076_s24, 8  ;;  %v4584_v33 = vld [vmem:[%s6853_s3 + $0x10] sm:$0xff]  ;;  %v4603_v40 = vld [vmem:[%s6853_s3 + $0x8] sm:$0xff]  ;;  %v4622_v47 = vld [vmem:[%s6853_s3] sm:$0xff]  ;;  %s4224_s30 = sshll.u32 %s7076_s24, 9 }
  0x10   : > { %896 = vmatpush.msra.mxu2 %v4494_v3  ;;  %s4505_s18 = scalar_lea.vmem %s6850_s0, %s4223_s13  ;;  %s5613_s11 = scalar_lea.vmem %s6857_s7, %s4224_s30 }
  0x11   : > { %466 = vmatpush.bf16.msra.mxu0 %v4227_v1  ;;  %4234 = vmatpush.bf16.msra.mxu1 %v4227_v1  ;;  %v321_v6 = vld [vmem:[%s4505_s18] sm:$0xff]  ;;  %v322_v7 = vld [vmem:[%s4505_s18 + $0x8] sm:$0xff]  ;;  %v323_v13 = vld [vmem:[%s4505_s18 + $0x10] sm:$0xff] }
  0x12   : > { %v337_v8 = vld [vmem:[%s4505_s18 + $0x80] sm:$0xff]  ;;  %v338_v9 = vld [vmem:[%s4505_s18 + $0x88] sm:$0xff]  ;;  %v4514_v10 = vpack.c.bf16 %v322_v7, %v321_v6  ;;  %897 = vmatpush.msra.mxu2 %v4526_v12  ;;  %v324_v14 = vld [vmem:[%s4505_s18 + $0x18] sm:$0xff] }
  0x13   : > { %v4516_v11 = vpack.c.bf16 %v338_v9, %v337_v8  ;;  %v339_v15 = vld [vmem:[%s4505_s18 + $0x90] sm:$0xff]  ;;  %v340_v16 = vld [vmem:[%s4505_s18 + $0x98] sm:$0xff]  ;;  %v4535_v17 = vpack.c.bf16 %v324_v14, %v323_v13  ;;  %v325_v20 = vld [vmem:[%s4505_s18 + $0x20] sm:$0xff] }
  0x14   : > { %v4537_v18 = vpack.c.bf16 %v340_v16, %v339_v15  ;;  %898 = vmatpush.msra.mxu2 %v4546_v19  ;;  %v326_v21 = vld [vmem:[%s4505_s18 + $0x28] sm:$0xff]  ;;  %v341_v22 = vld [vmem:[%s4505_s18 + $0xa0] sm:$0xff]  ;;  %v327_v27 = vld [vmem:[%s4505_s18 + $0x30] sm:$0xff] }
  0x15   : > { %467 = vmatpush.bf16.msra.mxu0 %v4226_v4  ;;  %4235 = vmatpush.bf16.msra.mxu1 %v4226_v4  ;;  %v342_v23 = vld [vmem:[%s4505_s18 + $0xa8] sm:$0xff]  ;;  %v4554_v24 = vpack.c.bf16 %v326_v21, %v325_v20  ;;  %v328_v28 = vld [vmem:[%s4505_s18 + $0x38] sm:$0xff]  ;;  %v343_v29 = vld [vmem:[%s4505_s18 + $0xb0] sm:$0xff] }
  0x16   : > { %v4556_v25 = vpack.c.bf16 %v342_v23, %v341_v22  ;;  %899 = vmatpush.msra.mxu2 %v4565_v26  ;;  %v344_v30 = vld [vmem:[%s4505_s18 + $0xb8] sm:$0xff]  ;;  %v4573_v31 = vpack.c.bf16 %v328_v28, %v327_v27  ;;  %v329_v34 = vld [vmem:[%s4505_s18 + $0x40] sm:$0xff]  ;;  %v330_v35 = vld [vmem:[%s4505_s18 + $0x48] sm:$0xff] }
  0x17   : > { %v4575_v32 = vpack.c.bf16 %v344_v30, %v343_v29  ;;  %v345_v36 = vld [vmem:[%s4505_s18 + $0xc0] sm:$0xff]  ;;  %v346_v37 = vld [vmem:[%s4505_s18 + $0xc8] sm:$0xff]  ;;  %v4592_v38 = vpack.c.bf16 %v330_v35, %v329_v34  ;;  %v331_v41 = vld [vmem:[%s4505_s18 + $0x50] sm:$0xff] }
  0x18   : > { %900 = vmatpush.msra.mxu2 %v4584_v33  ;;  %v4594_v39 = vpack.c.bf16 %v346_v37, %v345_v36  ;;  %v332_v42 = vld [vmem:[%s4505_s18 + $0x58] sm:$0xff]  ;;  %v347_v43 = vld [vmem:[%s4505_s18 + $0xd0] sm:$0xff]  ;;  %v333_v48 = vld [vmem:[%s4505_s18 + $0x60] sm:$0xff] }
  0x19   : > { %468 = vmatpush.bf16.msra.mxu0 %v4225_v5  ;;  %4236 = vmatpush.bf16.msra.mxu1 %v4225_v5  ;;  %v348_v44 = vld [vmem:[%s4505_s18 + $0xd8] sm:$0xff]  ;;  %v4611_v45 = vpack.c.bf16 %v332_v42, %v331_v41  ;;  %v334_v49 = vld [vmem:[%s4505_s18 + $0x68] sm:$0xff]  ;;  %v349_v50 = vld [vmem:[%s4505_s18 + $0xe0] sm:$0xff] }
  0x1a   : > { %901 = vmatpush.msra.mxu2 %v4603_v40  ;;  %v4613_v46 = vpack.c.bf16 %v348_v44, %v347_v43  ;;  %v350_v51 = vld [vmem:[%s4505_s18 + $0xe8] sm:$0xff]  ;;  %v4635_v52 = vpack.c.bf16 %v334_v49, %v333_v48  ;;  %v335_v54 = vld [vmem:[%s4505_s18 + $0x70] sm:$0xff]  ;;  %v336_v55 = vld [vmem:[%s4505_s18 + $0x78] sm:$0xff] }
  0x1b   : > { %v4637_v53 = vpack.c.bf16 %v350_v51, %v349_v50  ;;  %v351_v56 = vld [vmem:[%s4505_s18 + $0xf0] sm:$0xff]  ;;  %v352_v57 = vld [vmem:[%s4505_s18 + $0xf8] sm:$0xff]  ;;  %v4650_v58 = vpack.c.bf16 %v336_v55, %v335_v54  ;;  %v4769_v54 = vld [vmem:[%s6854_s4] sm:$0x3] }
  0x1c   : > { %3881 = vmatmul.msk.bf16.vlgmr.msra.gmra.mxu0 %vm412_vm0, %v4514_v10  ;;  %3889 = vmatmul.msk.bf16.vlgmr.msra.gmra.mxu1 %vm412_vm0, %v4516_v11  ;;  %6919 = vst [vmem:[#allocation2_spill] sm:$0xff] %v4613_v46  ;;  %v4652_v59 = vpack.c.bf16 %v352_v57, %v351_v56 }
  0x1d   : > { %654 = vmatpush.msrb.mxu1 %v4487_v2  ;;  %902 = vmatpush.msra.mxu2 %v4622_v47  ;;  %6920 = vst [vmem:[#allocation3_spill] sm:$0xff] %v4637_v53 }
  0x1e   : > { %6921 = vst [vmem:[#allocation4_spill] sm:$0xff] %v4652_v59  ;;  %4237 = vmatpush.msk.msra.mxu3 %vm1609_vm1, %v4769_v54 }
  0x1f   : > { %655 = vmatpush.msrb.mxu1 %v4494_v3  ;;  %3961 = vmatpush.msk.msrb.mxu2 %vm1609_vm1, %v4769_v54 }
  0x20   : > { %3994 = vmatpush.msk.msrb.mxu3 %vm1609_vm1, %v4769_v54 }
  0x21   : > { %656 = vmatpush.msrb.mxu1 %v4526_v12 }
  0x23   : > { %657 = vmatpush.msrb.mxu1 %v4546_v19 }
  0x25   : > { %658 = vmatpush.msrb.mxu1 %v4565_v26 }
  0x27   : > { %659 = vmatpush.msrb.mxu1 %v4584_v33 }
  0x29   : > { %660 = vmatpush.msrb.mxu1 %v4603_v40 }
  0x2b   : > { %661 = vmatpush.msrb.mxu1 %v4622_v47 }
  0x2c   : > { %3882 = vmatmul.msk.bf16.gmra.mxu0 %vm412_vm0, %v4535_v17  ;;  %3890 = vmatmul.msk.bf16.gmra.mxu1 %vm412_vm0, %v4537_v18 }
  0x2d   : > { %2326 = vmatpush.msra.mxu1 %v4487_v2 }
  0x2f   : > { %2327 = vmatpush.msra.mxu1 %v4494_v3 }
  0x31   : > { %2328 = vmatpush.msra.mxu1 %v4526_v12 }
  0x33   : > { %2329 = vmatpush.msra.mxu1 %v4546_v19 }
  0x35   : > { %2330 = vmatpush.msra.mxu1 %v4565_v26 }
  0x37   : > { %2331 = vmatpush.msra.mxu1 %v4584_v33 }
  0x39   : > { %2332 = vmatpush.msra.mxu1 %v4603_v40 }
  0x3b   : > { %2333 = vmatpush.msra.mxu1 %v4622_v47 }
  0x3c   : > { %3883 = vmatmul.msk.bf16.gmra.mxu0 %vm412_vm0, %v4554_v24  ;;  %3891 = vmatmul.msk.bf16.gmra.mxu1 %vm412_vm0, %v4556_v25 }
  0x4c   : > { %3884 = vmatmul.msk.bf16.gmra.mxu0 %vm412_vm0, %v4573_v31  ;;  %3892 = vmatmul.msk.bf16.gmra.mxu1 %vm412_vm0, %v4575_v32 }
  0x5c   : > { %3885 = vmatmul.msk.bf16.gmra.mxu0 %vm412_vm0, %v4592_v38  ;;  %3893 = vmatmul.msk.bf16.gmra.mxu1 %vm412_vm0, %v4594_v39 }
  0x6c   : > { %3886 = vmatmul.msk.bf16.gmra.mxu0 %vm412_vm0, %v4611_v45  ;;  %3894 = vmatmul.msk.bf16.gmra.mxu1 %vm412_vm0, %v4613_v46 }
  0x7c   : > { %3887 = vmatmul.msk.bf16.gmra.mxu0 %vm412_vm0, %v4635_v52  ;;  %3895 = vmatmul.msk.bf16.gmra.mxu1 %vm412_vm0, %v4637_v53 }
  0x8c   : > { %3888 = vmatmul.msk.bf16.gmra.mxu0 %vm412_vm0, %v4650_v58  ;;  %3896 = vmatmul.msk.bf16.gmra.mxu1 %vm412_vm0, %v4652_v59 }
  0x99   : > { %v4658_v60 = vpop.f32.mrf.mxu0  ;;  %v4660_v61 = vpop.f32.mrf.mxu1 }
  0x9a   : > { %6922 = vst [vmem:[#allocation5_spill] sm:$0xff] %v4658_v60  ;;  %v759_v62 = vmul.f32 %v4658_v60, %v4658_v60 }
  0x9b   : > { %6923 = vst [vmem:[#allocation6_spill] sm:$0xff] %v4660_v61 }
  0x9c   : > { %3897 = vmatmul.msk.f32.vlgmr.msrb.gmra.mxu1 %vm412_vm0, %v4658_v60  ;;  %3929 = vmatmul.msk.f32.vlgmr.msra.gmra.mxu2 %vm412_vm0, %v759_v62 }
  0x9d   : > { %2567 = vmatpush.msra.mxu2 %v4487_v2 }
  0x9f   : > { %2568 = vmatpush.msra.mxu2 %v4494_v3 }
  0xa1   : > { %v4667_v63 = vpop.f32.mrf.mxu0  ;;  %v4669_v0 = vpop.f32.mrf.mxu1  ;;  %2569 = vmatpush.msra.mxu2 %v4526_v12 }
  0xa2   : > { %6924 = vst [vmem:[#allocation7_spill] sm:$0xff] %v4667_v63  ;;  %v760_v1 = vmul.f32 %v4667_v63, %v4667_v63 }
  0xa3   : > { %6925 = vst [vmem:[#allocation8_spill] sm:$0xff] %v4669_v0  ;;  %2570 = vmatpush.msra.mxu2 %v4546_v19 }
  0xa4   : > { %3898 = vmatmul.msk.f32.gmra.mxu1 %vm412_vm0, %v4667_v63  ;;  %3930 = vmatmul.msk.f32.gmra.mxu2 %vm412_vm0, %v760_v1 }
  0xa5   : > { %2571 = vmatpush.msra.mxu2 %v4565_v26 }
  0xa7   : > { %2572 = vmatpush.msra.mxu2 %v4584_v33 }
  0xa9   : > { %v4676_v4 = vpop.f32.mrf.mxu0  ;;  %v4678_v5 = vpop.f32.mrf.mxu1  ;;  %2573 = vmatpush.msra.mxu2 %v4603_v40 }
  0xaa   : > { %6926 = vst [vmem:[#allocation9_spill] sm:$0xff] %v4676_v4  ;;  %v761_v6 = vmul.f32 %v4676_v4, %v4676_v4 }
  0xab   : > { %6927 = vst [vmem:[#allocation10_spill] sm:$0xff] %v4678_v5  ;;  %2574 = vmatpush.msra.mxu2 %v4622_v47 }
  0xac   : > { %3899 = vmatmul.msk.f32.gmra.mxu1 %vm412_vm0, %v4676_v4  ;;  %3931 = vmatmul.msk.f32.gmra.mxu2 %vm412_vm0, %v761_v6  ;;  %v775_v6 = vmul.f32 %v4660_v61, %v4660_v61 }
  0xb1   : > { %v4685_v7 = vpop.f32.mrf.mxu0  ;;  %v4687_v8 = vpop.f32.mrf.mxu1 }
  0xb2   : > { %6928 = vst [vmem:[#allocation11_spill] sm:$0xff] %v4685_v7  ;;  %v762_v9 = vmul.f32 %v4685_v7, %v4685_v7 }
  0xb3   : > { %6929 = vst [vmem:[#allocation12_spill] sm:$0xff] %v4687_v8 }
  0xb4   : > { %3900 = vmatmul.msk.f32.gmra.mxu1 %vm412_vm0, %v4685_v7  ;;  %3932 = vmatmul.msk.f32.gmra.mxu2 %vm412_vm0, %v762_v9 }
  0xb9   : > { %v4694_v13 = vpop.f32.mrf.mxu0  ;;  %v4696_v14 = vpop.f32.mrf.mxu1 }
  0xba   : > { %6930 = vst [vmem:[#allocation13_spill] sm:$0xff] %v4694_v13  ;;  %v763_v15 = vmul.f32 %v4694_v13, %v4694_v13 }
  0xbb   : > { %6931 = vst [vmem:[#allocation14_spill] sm:$0xff] %v4696_v14 }
  0xbc   : > { %3901 = vmatmul.msk.f32.gmra.mxu1 %vm412_vm0, %v4694_v13  ;;  %3933 = vmatmul.msk.f32.gmra.mxu2 %vm412_vm0, %v763_v15 }
  0xc1   : > { %v4703_v16 = vpop.f32.mrf.mxu0  ;;  %v4705_v20 = vpop.f32.mrf.mxu1 }
  0xc2   : > { %6932 = vst [vmem:[#allocation15_spill] sm:$0xff] %v4703_v16  ;;  %v764_v21 = vmul.f32 %v4703_v16, %v4703_v16 }
  0xc3   : > { %6933 = vst [vmem:[#allocation16_spill] sm:$0xff] %v4705_v20 }
  0xc4   : > { %3902 = vmatmul.msk.f32.gmra.mxu1 %vm412_vm0, %v4703_v16  ;;  %3934 = vmatmul.msk.f32.gmra.mxu2 %vm412_vm0, %v764_v21  ;;  %v776_v21 = vmul.f32 %v4669_v0, %v4669_v0 }
  0xc9   : > { %v4712_v22 = vpop.f32.mrf.mxu0  ;;  %v4714_v23 = vpop.f32.mrf.mxu1 }
  0xca   : > { %6934 = vst [vmem:[#allocation17_spill] sm:$0xff] %v4712_v22  ;;  %v765_v27 = vmul.f32 %v4712_v22, %v4712_v22 }
  0xcb   : > { %6935 = vst [vmem:[#allocation18_spill] sm:$0xff] %v4714_v23 }
  0xcc   : > { %3903 = vmatmul.msk.f32.gmra.mxu1 %vm412_vm0, %v4712_v22  ;;  %3935 = vmatmul.msk.f32.gmra.mxu2 %vm412_vm0, %v765_v27 }
  0xd1   : > { %v4721_v28 = vpop.f32.mrf.mxu0  ;;  %v4723_v29 = vpop.f32.mrf.mxu1 }
  0xd2   : > { %6936 = vst [vmem:[#allocation19_spill] sm:$0xff] %v4721_v28  ;;  %v766_v30 = vmul.f32 %v4721_v28, %v4721_v28 }
  0xd3   : > { %6937 = vst [vmem:[#allocation20_spill] sm:$0xff] %v4723_v29 }
  0xd4   : > { %3904 = vmatmul.msk.f32.gmra.mxu1 %vm412_vm0, %v4721_v28  ;;  %3936 = vmatmul.msk.f32.gmra.mxu2 %vm412_vm0, %v766_v30 }
  0xd9   : > { %v4730_v34 = vpop.f32.mrf.mxu0  ;;  %v4732_v35 = vpop.f32.mrf.mxu1 }
  0xda   : > { %6938 = vst [vmem:[#allocation21_spill] sm:$0xff] %v4730_v34  ;;  %v767_v36 = vmul.f32 %v4730_v34, %v4730_v34 }
  0xdb   : > { %6939 = vst [vmem:[#allocation22_spill] sm:$0xff] %v4732_v35 }
  0xdc   : > { %3905 = vmatmul.msk.f32.gmra.mxu1 %vm412_vm0, %v4730_v34  ;;  %3937 = vmatmul.msk.f32.gmra.mxu2 %vm412_vm0, %v767_v36  ;;  %v777_v36 = vmul.f32 %v4678_v5, %v4678_v5 }
  0xe1   : > { %v4739_v37 = vpop.f32.mrf.mxu0  ;;  %v4741_v41 = vpop.f32.mrf.mxu1 }
  0xe2   : > { %6940 = vst [vmem:[#allocation23_spill] sm:$0xff] %v4739_v37  ;;  %v768_v42 = vmul.f32 %v4739_v37, %v4739_v37 }
  0xe3   : > { %6941 = vst [vmem:[#allocation24_spill] sm:$0xff] %v4741_v41 }
  0xe4   : > { %3906 = vmatmul.msk.f32.gmra.mxu1 %vm412_vm0, %v4739_v37  ;;  %3938 = vmatmul.msk.f32.gmra.mxu2 %vm412_vm0, %v768_v42 }
  0xe9   : > { %v4748_v43 = vpop.f32.mrf.mxu0  ;;  %v4750_v44 = vpop.f32.mrf.mxu1 }
  0xea   : > { %6942 = vst [vmem:[#allocation25_spill] sm:$0xff] %v4748_v43  ;;  %v769_v48 = vmul.f32 %v4748_v43, %v4748_v43 }
  0xeb   : > { %6943 = vst [vmem:[#allocation26_spill] sm:$0xff] %v4750_v44 }
  0xec   : > { %3907 = vmatmul.msk.f32.gmra.mxu1 %vm412_vm0, %v4748_v43  ;;  %3939 = vmatmul.msk.f32.gmra.mxu2 %vm412_vm0, %v769_v48 }
  0xf1   : > { %v4757_v49 = vpop.f32.mrf.mxu0  ;;  %v4759_v50 = vpop.f32.mrf.mxu1 }
  0xf2   : > { %6944 = vst [vmem:[#allocation27_spill] sm:$0xff] %v4757_v49  ;;  %v770_v51 = vmul.f32 %v4757_v49, %v4757_v49 }
  0xf3   : > { %6945 = vst [vmem:[#allocation28_spill] sm:$0xff] %v4759_v50 }
  0xf4   : > { %3908 = vmatmul.msk.f32.gmra.mxu1 %vm412_vm0, %v4757_v49  ;;  %3940 = vmatmul.msk.f32.gmra.mxu2 %vm412_vm0, %v770_v51  ;;  %v778_v51 = vmul.f32 %v4687_v8, %v4687_v8 }
  0xf9   : > { %v4779_v55 = vpop.f32.mrf.mxu0  ;;  %v4781_v56 = vpop.f32.mrf.mxu1 }
  0xfa   : > { %6946 = vst [vmem:[#allocation29_spill] sm:$0xff] %v4779_v55  ;;  %v771_v57 = vmul.f32 %v4779_v55, %v4779_v55 }
  0xfb   : > { %6947 = vst [vmem:[#allocation30_spill] sm:$0xff] %v4781_v56 }
  0xfc   : > { %3909 = vmatmul.msk.f32.gmra.mxu1 %vm412_vm0, %v4779_v55  ;;  %3941 = vmatmul.msk.f32.gmra.mxu2 %vm412_vm0, %v771_v57 }
 0x101   : > { %v4791_v2 = vpop.f32.mrf.mxu0  ;;  %v4793_v3 = vpop.f32.mrf.mxu1 }
 0x102   : > { %6948 = vst [vmem:[#allocation31_spill] sm:$0xff] %v4791_v2  ;;  %v772_v62 = vmul.f32 %v4791_v2, %v4791_v2 }
 0x103   : > { %6949 = vst [vmem:[#allocation32_spill] sm:$0xff] %v4793_v3 }
 0x104   : > { %3910 = vmatmul.msk.f32.gmra.mxu1 %vm412_vm0, %v4791_v2  ;;  %3942 = vmatmul.msk.f32.gmra.mxu2 %vm412_vm0, %v772_v62 }
 0x109   : > { %v4803_v12 = vpop.f32.mrf.mxu0  ;;  %v4805_v19 = vpop.f32.mrf.mxu1 }
 0x10a   : > { %6950 = vst [vmem:[#allocation33_spill] sm:$0xff] %v4803_v12  ;;  %v773_v26 = vmul.f32 %v4803_v12, %v4803_v12 }
 0x10b   : > { %6951 = vst [vmem:[#allocation34_spill] sm:$0xff] %v4805_v19 }
 0x10c   : > { %3911 = vmatmul.msk.f32.gmra.mxu1 %vm412_vm0, %v4803_v12  ;;  %3943 = vmatmul.msk.f32.gmra.mxu2 %vm412_vm0, %v773_v26  ;;  %v779_v26 = vmul.f32 %v4696_v14, %v4696_v14  ;;  %v787_v12 = vmul.f32 %v4781_v56, %v4781_v56 }
 0x111   : > { %v4812_v33 = vpop.f32.mrf.mxu0  ;;  %v4814_v40 = vpop.f32.mrf.mxu1 }
 0x112   : > { %6952 = vst [vmem:[#allocation35_spill] sm:$0xff] %v4812_v33  ;;  %v774_v1 = vmul.f32 %v4812_v33, %v4812_v33 }
 0x113   : > { %6953 = vst [vmem:[#allocation36_spill] sm:$0xff] %v4814_v40 }
 0x114   : > { %3912 = vmatmul.msk.f32.gmra.mxu1 %vm412_vm0, %v4812_v33  ;;  %3944 = vmatmul.msk.f32.gmra.mxu2 %vm412_vm0, %v774_v1 }
 0x119   : > { %v4821_v47 = vpop.f32.mrf.mxu1 }
 0x11a   : > { %v4978_v28 = vmul.f32 0.03125, %v4821_v47 }
 0x11c   : > { %3913 = vmatmul.msk.f32.gmra.mxu1 %vm412_vm0, %v4660_v61  ;;  %3945 = vmatmul.msk.f32.gmra.mxu2 %vm412_vm0, %v775_v6 }
 0x11f   : > { %v4828_v9 = vpop.f32.mrf.mxu2 }
 0x121   : > { %v4830_v15 = vpop.f32.mrf.mxu1 }
 0x122   : > { %v4990_v22 = vmul.f32 0.03125, %v4830_v15 }
 0x124   : > { %3914 = vmatmul.msk.f32.gmra.mxu1 %vm412_vm0, %v4669_v0  ;;  %3946 = vmatmul.msk.f32.gmra.mxu2 %vm412_vm0, %v776_v21  ;;  %v780_v21 = vmul.f32 %v4705_v20, %v4705_v20 }
 0x127   : > { %v4837_v27 = vpop.f32.mrf.mxu2 }
 0x129   : > { %v4839_v30 = vpop.f32.mrf.mxu1 }
 0x12a   : > { %v5002_v13 = vmul.f32 0.03125, %v4839_v30 }
 0x12c   : > { %3915 = vmatmul.msk.f32.gmra.mxu1 %vm412_vm0, %v4678_v5  ;;  %3947 = vmatmul.msk.f32.gmra.mxu2 %vm412_vm0, %v777_v36 }
 0x12f   : > { %v4846_v42 = vpop.f32.mrf.mxu2 }
 0x131   : > { %v4848_v48 = vpop.f32.mrf.mxu1 }
 0x132   : > { %v5017_v7 = vmul.f32 0.03125, %v4848_v48 }
 0x134   : > { %3916 = vmatmul.msk.f32.gmra.mxu1 %vm412_vm0, %v4687_v8  ;;  %3948 = vmatmul.msk.f32.gmra.mxu2 %vm412_vm0, %v778_v51 }
 0x137   : > { %v4855_v57 = vpop.f32.mrf.mxu2 }
 0x139   : > { %v4857_v62 = vpop.f32.mrf.mxu1 }
 0x13c   : > { %3917 = vmatmul.msk.f32.gmra.mxu1 %vm412_vm0, %v4696_v14  ;;  %3949 = vmatmul.msk.f32.gmra.mxu2 %vm412_vm0, %v779_v26  ;;  %v781_v14 = vmul.f32 %v4714_v23, %v4714_v23 }
 0x13f   : > { %v4864_v1 = vpop.f32.mrf.mxu2 }
 0x141   : > { %v4866_v6 = vpop.f32.mrf.mxu1 }
 0x142   : > { %v5041_v60 = vmul.f32 0.03125, %v4866_v6 }
 0x144   : > { %3918 = vmatmul.msk.f32.gmra.mxu1 %vm412_vm0, %v4705_v20  ;;  %3950 = vmatmul.msk.f32.gmra.mxu2 %vm412_vm0, %v780_v21  ;;  %v782_v20 = vmul.f32 %v4723_v29, %v4723_v29 }
 0x147   : > { %v4873_v36 = vpop.f32.mrf.mxu2 }
 0x149   : > { %v4875_v51 = vpop.f32.mrf.mxu1 }
 0x14c   : > { %3919 = vmatmul.msk.f32.gmra.mxu1 %vm412_vm0, %v4714_v23  ;;  %3951 = vmatmul.msk.f32.gmra.mxu2 %vm412_vm0, %v781_v14  ;;  %v783_v23 = vmul.f32 %v4732_v35, %v4732_v35 }
 0x14f   : > { %v4882_v26 = vpop.f32.mrf.mxu2 }
 0x151   : > { %v4884_v8 = vpop.f32.mrf.mxu1 }
 0x154   : > { %3920 = vmatmul.msk.f32.gmra.mxu1 %vm412_vm0, %v4723_v29  ;;  %3952 = vmatmul.msk.f32.gmra.mxu2 %vm412_vm0, %v782_v20  ;;  %v784_v29 = vmul.f32 %v4741_v41, %v4741_v41 }
 0x157   : > { %v4891_v21 = vpop.f32.mrf.mxu2 }
 0x159   : > { %v4893_v5 = vpop.f32.mrf.mxu1 }
 0x15c   : > { %3921 = vmatmul.msk.f32.gmra.mxu1 %vm412_vm0, %v4732_v35  ;;  %3953 = vmatmul.msk.f32.gmra.mxu2 %vm412_vm0, %v783_v23  ;;  %v785_v35 = vmul.f32 %v4750_v44, %v4750_v44 }
 0x15f   : > { %v4900_v14 = vpop.f32.mrf.mxu2 }
 0x161   : > { %v4902_v0 = vpop.f32.mrf.mxu1 }
 0x164   : > { %3922 = vmatmul.msk.f32.gmra.mxu1 %vm412_vm0, %v4741_v41  ;;  %3954 = vmatmul.msk.f32.gmra.mxu2 %vm412_vm0, %v784_v29  ;;  %v4232_v41 = vld [vmem:[%s6852_s2 + $0x18] sm:$0xff]  ;;  %v786_v29 = vmul.f32 %v4759_v50, %v4759_v50 }
 0x165   : > { %2137 = vmatpush.bf16.msrb.mxu0 %v4232_v41 }
 0x167   : > { %v4909_v20 = vpop.f32.mrf.mxu2 }
 0x169   : > { %v4911_v61 = vpop.f32.mrf.mxu1 }
 0x16c   : > { %3923 = vmatmul.msk.f32.gmra.mxu1 %vm412_vm0, %v4750_v44  ;;  %3955 = vmatmul.msk.f32.gmra.mxu2 %vm412_vm0, %v785_v35 }
 0x16f   : > { %v4918_v23 = vpop.f32.mrf.mxu2 }
 0x171   : > { %v4923_v33 = vpop.f32.mrf.mxu1 }
 0x174   : > { %3924 = vmatmul.msk.f32.gmra.mxu1 %vm412_vm0, %v4759_v50  ;;  %3956 = vmatmul.msk.f32.gmra.mxu2 %vm412_vm0, %v786_v29  ;;  %v788_v50 = vmul.f32 %v4793_v3, %v4793_v3 }
 0x177   : > { %v4930_v44 = vpop.f32.mrf.mxu2 }
 0x179   : > { %v4932_v35 = vpop.f32.mrf.mxu1 }
 0x17c   : > { %3925 = vmatmul.msk.f32.gmra.mxu1 %vm412_vm0, %v4781_v56  ;;  %3957 = vmatmul.msk.f32.gmra.mxu2 %vm412_vm0, %v787_v12  ;;  %v789_v56 = vmul.f32 %v4805_v19, %v4805_v19 }
 0x17f   : > { %v4939_v41 = vpop.f32.mrf.mxu2 }
 0x181   : > { %v4941_v2 = vpop.f32.mrf.mxu1 }
 0x184   : > { %3926 = vmatmul.msk.f32.gmra.mxu1 %vm412_vm0, %v4793_v3  ;;  %3958 = vmatmul.msk.f32.gmra.mxu2 %vm412_vm0, %v788_v50  ;;  %v4231_v50 = vld [vmem:[%s6852_s2 + $0x10] sm:$0xff] }
 0x185   : > { %2138 = vmatpush.bf16.msrb.mxu0 %v4231_v50 }
 0x187   : > { %v4948_v29 = vpop.f32.mrf.mxu2 }
 0x189   : > { %v705_v55 = vpop.f32.mrf.mxu1 }
 0x18a   : > { %v1014_v49 = vmul.f32 0.03125, %v705_v55 }
 0x18c   : > { %3927 = vmatmul.msk.f32.gmra.mxu1 %vm412_vm0, %v4805_v19  ;;  %3959 = vmatmul.msk.f32.gmra.mxu2 %vm412_vm0, %v789_v56  ;;  %v4961_v3 = vmul.f32 %v1014_v49, %v1014_v49  ;;  %v790_v19 = vmul.f32 %v4814_v40, %v4814_v40 }
 0x18d   : > { %3976 = vmatmul.msk.f32.vlgmr.msra.gmra.mxu3 %vm1512_vm2, %v1014_v49 }
 0x18e   : > { %4123 = vmatpush.msk.msra.mxu3 %vm1609_vm1, %v4769_v54 }
 0x18f   : > { %v946_v12 = vpop.f32.mrf.mxu2 }
 0x190   : > { %v4963_v43 = vmul.f32 0.03125, %v946_v12 }
 0x191   : > { %v708_v55 = vpop.f32.mrf.mxu1 }
 0x192   : > { %v1015_v37 = vmul.f32 0.03125, %v708_v55 }
 0x194   : > { %3928 = vmatmul.msk.f32.gmra.mxu1 %vm412_vm0, %v4814_v40  ;;  %3960 = vmatmul.msk.f32.gmra.mxu2 %vm412_vm0, %v790_v19  ;;  %v4973_v34 = vmul.f32 %v1015_v37, %v1015_v37 }
 0x195   : > { %3977 = vmatmul.msk.f32.gmra.mxu3 %vm1512_vm2, %v1015_v37 }
 0x197   : > { %v949_v49 = vpop.f32.mrf.mxu2 }
 0x198   : > { %v4975_v12 = vmul.f32 0.03125, %v949_v49 }
 0x199   : > { %v711_v50 = vpop.f32.mrf.mxu1 }
 0x19a   : > { %v1016_v55 = vmul.f32 0.03125, %v711_v50 }
 0x19c   : > { %3962 = vmatmul.msk.f32.vlgmr.msrb.gmra.mxu2 %vm1512_vm2, %v4978_v28  ;;  %v4985_v40 = vmul.f32 %v1016_v55, %v1016_v55 }
 0x19d   : > { %3978 = vmatmul.msk.f32.gmra.mxu3 %vm1512_vm2, %v1016_v55 }
 0x19f   : > { %v952_v19 = vpop.f32.mrf.mxu2 }
 0x1a0   : > { %v4987_v37 = vmul.f32 0.03125, %v952_v19 }
 0x1a1   : > { %v714_v49 = vpop.f32.mrf.mxu1 }
 0x1a2   : > { %v1017_v16 = vmul.f32 0.03125, %v714_v49 }
 0x1a4   : > { %3963 = vmatmul.msk.f32.gmra.mxu2 %vm1512_vm2, %v4990_v22  ;;  %v4997_v56 = vmul.f32 %v1017_v16, %v1017_v16 }
 0x1a5   : > { %3979 = vmatmul.msk.f32.gmra.mxu3 %vm1512_vm2, %v1017_v16  ;;  %v4230_v16 = vld [vmem:[%s6852_s2 + $0x8] sm:$0xff] }
 0x1a6   : > { %2139 = vmatpush.bf16.msrb.mxu0 %v4230_v16  ;;  %v5029_v16 = vmul.f32 0.03125, %v4857_v62 }
 0x1a7   : > { %v955_v50 = vpop.f32.mrf.mxu2 }
 0x1a8   : > { %v4999_v55 = vmul.f32 0.03125, %v955_v50 }
 0x1a9   : > { %v717_v19 = vpop.f32.mrf.mxu1 }
 0x1aa   : > { %v1018_v59 = vmul.f32 0.03125, %v717_v19 }
 0x1ac   : > { %3964 = vmatmul.msk.f32.gmra.mxu2 %vm1512_vm2, %v5002_v13  ;;  %v5012_v50 = vmul.f32 %v1018_v59, %v1018_v59 }
 0x1ad   : > { %3980 = vmatmul.msk.f32.gmra.mxu3 %vm1512_vm2, %v1018_v59 }
 0x1af   : > { %v958_v49 = vpop.f32.mrf.mxu2 }
 0x1b0   : > { %v5014_v47 = vmul.f32 0.03125, %v958_v49 }
 0x1b1   : > { %v720_v30 = vpop.f32.mrf.mxu1 }
 0x1b2   : > { %v1019_v15 = vmul.f32 0.03125, %v720_v30 }
 0x1b4   : > { %3965 = vmatmul.msk.f32.gmra.mxu2 %vm1512_vm2, %v5017_v7  ;;  %v5024_v53 = vmul.f32 %v1019_v15, %v1019_v15 }
 0x1b5   : > { %3981 = vmatmul.msk.f32.gmra.mxu3 %vm1512_vm2, %v1019_v15 }
 0x1b7   : > { %v961_v4 = vpop.f32.mrf.mxu2 }
 0x1b8   : > { %v5026_v59 = vmul.f32 0.03125, %v961_v4 }
 0x1b9   : > { %v723_v49 = vpop.f32.mrf.mxu1 }
 0x1ba   : > { %v1020_v63 = vmul.f32 0.03125, %v723_v49 }
 0x1bc   : > { %3966 = vmatmul.msk.f32.gmra.mxu2 %vm1512_vm2, %v5029_v16  ;;  %v5036_v19 = vmul.f32 %v1020_v63, %v1020_v63 }
 0x1bd   : > { %3982 = vmatmul.msk.f32.gmra.mxu3 %vm1512_vm2, %v1020_v63  ;;  %v4229_v63 = vld [vmem:[%s6852_s2] sm:$0xff] }
 0x1be   : > { %6954 = vst [vmem:[#allocation37_spill] sm:$0xff] %v5036_v19  ;;  %2140 = vmatpush.bf16.msrb.mxu0 %v4229_v63 }
 0x1bf   : > { %v964_v30 = vpop.f32.mrf.mxu2 }
 0x1c0   : > { %v5038_v15 = vmul.f32 0.03125, %v964_v30 }
 0x1c1   : > { %v726_v4 = vpop.f32.mrf.mxu1  ;;  %4043 = vmatmul.msk.bf16.vlgmr.msrb.gmra.mxu0 %vm412_vm0, %v4514_v10  ;;  %v5080_v10 = vmul.f32 0.03125, %v4893_v5 }
 0x1c2   : > { %v1021_v46 = vmul.f32 0.03125, %v726_v4  ;;  %4156 = vmatpush.msk.msra.mxu0 %vm1609_vm1, %v4769_v54  ;;  %v5058_v4 = vmul.f32 0.03125, %v4875_v51  ;;  %v5071_v54 = vmul.f32 0.03125, %v4884_v8 }
 0x1c4   : > { %3967 = vmatmul.msk.f32.gmra.mxu2 %vm1512_vm2, %v5041_v60  ;;  %v5051_v30 = vmul.f32 %v1021_v46, %v1021_v46 }
 0x1c5   : > { %3983 = vmatmul.msk.f32.gmra.mxu3 %vm1512_vm2, %v1021_v46 }
 0x1c7   : > { %v967_v49 = vpop.f32.mrf.mxu2 }
 0x1c8   : > { %v5053_v48 = vmul.f32 0.03125, %v967_v49 }
 0x1c9   : > { %v729_v6 = vpop.f32.mrf.mxu1 }
 0x1ca   : > { %v5062_v19 = vmul.f32 0.03125, %v729_v6 }
 0x1cc   : > { %6955 = vst [vmem:[#allocation38_spill] sm:$0xff] %v5062_v19  ;;  %3968 = vmatmul.msk.f32.gmra.mxu2 %vm1512_vm2, %v5058_v4 }
 0x1cd   : > { %3984 = vmatmul.msk.f32.gmra.mxu3 %vm1512_vm2, %v5062_v19 }
 0x1cf   : > { %v5090_v8 = vpop.f32.mrf.mxu2 }
 0x1d1   : > { %v732_v46 = vpop.f32.mrf.mxu1  ;;  %4044 = vmatmul.msk.bf16.gmra.mxu0 %vm412_vm0, %v4535_v17 }
 0x1d2   : > { %v5073_v51 = vmul.f32 0.03125, %v732_v46  ;;  %v5093_v46 = vmul.f32 0.03125, %v4902_v0  ;;  %v1032_v0 = vmul.f32 0.03125, %v4828_v9  ;;  %v1033_v9 = vmul.f32 0.03125, %v4837_v27 }
 0x1d3   : > { %v1034_v27 = vmul.f32 0.03125, %v4846_v42 }
 0x1d4   : > { %6956 = vst [vmem:[#allocation39_spill] sm:$0xff] %v5073_v51  ;;  %3969 = vmatmul.msk.f32.gmra.mxu2 %vm1512_vm2, %v5071_v54 }
 0x1d5   : > { %3985 = vmatmul.msk.f32.gmra.mxu3 %vm1512_vm2, %v5073_v51 }
 0x1d7   : > { %v5101_v17 = vpop.f32.mrf.mxu2 }
 0x1d8   : > { %6959 = vst [vmem:[#allocation42_spill] sm:$0xff] %v5101_v17 }
 0x1d9   : > { %v735_v63 = vpop.f32.mrf.mxu1 }
 0x1da   : > { %v5082_v49 = vmul.f32 0.03125, %v735_v63  ;;  %v5104_v63 = vmul.f32 0.03125, %v4911_v61  ;;  %v5118_v61 = vmul.f32 0.03125, %v4923_v33  ;;  %v5132_v33 = vmul.f32 0.03125, %v4932_v35 }
 0x1db   : > { %v1066_v35 = vmul.f32 %v5002_v13, %v5002_v13  ;;  %v1035_v13 = vmul.f32 0.03125, %v4855_v57 }
 0x1dc   : > { %6957 = vst [vmem:[#allocation40_spill] sm:$0xff] %v5082_v49  ;;  %3970 = vmatmul.msk.f32.gmra.mxu2 %vm1512_vm2, %v5080_v10 }
 0x1dd   : > { %3986 = vmatmul.msk.f32.gmra.mxu3 %vm1512_vm2, %v5082_v49 }
 0x1df   : > { %v5122_v17 = vpop.f32.mrf.mxu2 }
 0x1e0   : > { %6962 = vst [vmem:[#allocation45_spill] sm:$0xff] %v5122_v17 }
 0x1e1   : > { %v738_v6 = vpop.f32.mrf.mxu1  ;;  %4045 = vmatmul.msk.bf16.gmra.mxu0 %vm412_vm0, %v4554_v24 }
 0x1e2   : > { %v5095_v62 = vmul.f32 0.03125, %v738_v6  ;;  %v1064_v6 = vmul.f32 %v4978_v28, %v4978_v28  ;;  %v1065_v28 = vmul.f32 %v4990_v22, %v4990_v22 }
 0x1e4   : > { %6958 = vst [vmem:[#allocation41_spill] sm:$0xff] %v5095_v62  ;;  %3971 = vmatmul.msk.f32.gmra.mxu2 %vm1512_vm2, %v5093_v46  ;;  %v1096_v51 = vsub.f32 %v1032_v0, %v1064_v6  ;;  %v1097_v6 = vsub.f32 %v1033_v9, %v1065_v28  ;;  %v1098_v28 = vsub.f32 %v1034_v27, %v1066_v35 }
 0x1e5   : > { %3987 = vmatmul.msk.f32.gmra.mxu3 %vm1512_vm2, %v5095_v62 }
 0x1e6   : > { %v1128_v24 = vmax.f32 %v1096_v51, 0.0  ;;  %v1129_v22 = vmax.f32 %v1097_v6, 0.0  ;;  %v1130_v42 = vmax.f32 %v1098_v28, 0.0  ;;  %v1036_v28 = vmul.f32 0.03125, %v4864_v1 }
 0x1e7   : > { %v5140_v51 = vpop.f32.mrf.mxu2 }
 0x1e8   : > { %v1160_v0 = vadd.f32 1e-05, %v1128_v24  ;;  %6964 = vst [vmem:[#allocation47_spill] sm:$0xff] %v5140_v51  ;;  %v5152_v9 = vadd.f32 1e-05, %v1129_v22  ;;  %v1067_v22 = vmul.f32 %v5017_v7, %v5017_v7 }
 0x1e9   : > { %v741_v5 = vpop.f32.mrf.mxu1  ;;  %v5168_v35 = vadd.f32 1e-05, %v1130_v42 }
 0x1ea   : > { %v5106_v49 = vmul.f32 0.03125, %v741_v5  ;;  %4264 = vrsqrt.f32 %v1160_v0  ;;  %vm1198_vm4 = vweird.f32 %v1160_v0  ;;  %vm1208_vm7 = vweird.f32 %v5152_v9 }
 0x1eb   : > { %4266 = vrsqrt.f32 %v5152_v9  ;;  %vm1218_vm10 = vweird.f32 %v5168_v35 }
 0x1ec   : > { %6960 = vst [vmem:[#allocation43_spill] sm:$0xff] %v5106_v49  ;;  %3972 = vmatmul.msk.f32.gmra.mxu2 %vm1512_vm2, %v5104_v63  ;;  %4268 = vrsqrt.f32 %v5168_v35 }
 0x1ed   : > { %3988 = vmatmul.msk.f32.gmra.mxu3 %vm1512_vm2, %v5106_v49 }
 0x1ef   : > { %v5160_v6 = vpop.f32.mrf.mxu2 }
 0x1f0   : > { %6966 = vst [vmem:[#allocation49_spill] sm:$0xff] %v5160_v6 }
 0x1f1   : > { %v744_v62 = vpop.f32.mrf.mxu1  ;;  %4046 = vmatmul.msk.bf16.gmra.mxu0 %vm412_vm0, %v4573_v31  ;;  %v5148_v31 = vmul.f32 0.03125, %v4941_v2 }
 0x1f2   : > { %v5120_v5 = vmul.f32 0.03125, %v744_v62 }
 0x1f4   : > { %6961 = vst [vmem:[#allocation44_spill] sm:$0xff] %v5120_v5  ;;  %3973 = vmatmul.msk.f32.gmra.mxu2 %vm1512_vm2, %v5118_v61 }
 0x1f5   : > { %3989 = vmatmul.msk.f32.gmra.mxu3 %vm1512_vm2, %v5120_v5 }
 0x1f7   : > { %v5179_v42 = vpop.f32.mrf.mxu2 }
 0x1f9   : > { %v747_v49 = vpop.f32.mrf.mxu1 }
 0x1fa   : > { %v5134_v62 = vmul.f32 0.03125, %v747_v49 }
 0x1fc   : > { %6963 = vst [vmem:[#allocation46_spill] sm:$0xff] %v5134_v62  ;;  %3974 = vmatmul.msk.f32.gmra.mxu2 %vm1512_vm2, %v5132_v33 }
 0x1fd   : > { %3990 = vmatmul.msk.f32.gmra.mxu3 %vm1512_vm2, %v5134_v62  ;;  %v4265_v62 = vpop.eup %4264 }
 0x1fe   : > { %v1193_v2 = vmul.f32 %v4265_v62, %v1160_v0  ;;  %v4267_v51 = vpop.eup %4266  ;;  %vm1199_vm3 = vweird.f32 %v4265_v62 }
 0x1ff   : > { %v1203_v7 = vmul.f32 %v4267_v51, %v5152_v9  ;;  %v4269_v19 = vpop.eup %4268  ;;  %vm1200_vm5 = vmor %vm1198_vm4, %vm1199_vm3  ;;  %vm1209_vm6 = vweird.f32 %v4267_v51 }
 0x200   : > { %v1194_v5 = vmul.f32 %v4265_v62, %v1193_v2  ;;  %vm1210_vm8 = vmor %vm1208_vm7, %vm1209_vm6  ;;  %vm1219_vm9 = vweird.f32 %v4269_v19 }
 0x201   : > { %v750_v49 = vpop.f32.mrf.mxu1  ;;  %4047 = vmatmul.msk.bf16.gmra.mxu0 %vm412_vm0, %v4592_v38  ;;  %v1068_v38 = vmul.f32 %v5029_v16, %v5029_v16  ;;  %v1213_v16 = vmul.f32 %v4269_v19, %v5168_v35  ;;  %vm1220_vm11 = vmor %vm1218_vm10, %vm1219_vm9 }
 0x202   : > { %v5150_v24 = vmul.f32 0.03125, %v750_v49  ;;  %v1195_v6 = vmul.f32 0.5, %v1194_v5  ;;  %v1037_v5 = vmul.f32 0.03125, %v4873_v36 }
 0x204   : > { %6965 = vst [vmem:[#allocation48_spill] sm:$0xff] %v5150_v24  ;;  %3975 = vmatmul.msk.f32.gmra.mxu2 %vm1512_vm2, %v5148_v31  ;;  %v1196_v17 = vsub.f32 1.5, %v1195_v6  ;;  %v1069_v6 = vmul.f32 %v5041_v60, %v5041_v60  ;;  %v1038_v60 = vmul.f32 0.03125, %v4882_v26 }
 0x205   : > { %3991 = vmatmul.msk.f32.gmra.mxu3 %vm1512_vm2, %v5150_v24  ;;  %v1099_v24 = vsub.f32 %v1035_v13, %v1067_v22 }
 0x207   : > { %v1131_v57 = vmax.f32 %v1099_v24, 0.0  ;;  %v1204_v24 = vmul.f32 %v4267_v51, %v1203_v7  ;;  %v1101_v7 = vsub.f32 %v1037_v5, %v1069_v6 }
 0x209   : > { %v753_v49 = vpop.f32.mrf.mxu1  ;;  %v5183_v22 = vadd.f32 1e-05, %v1131_v57  ;;  %v1205_v57 = vmul.f32 0.5, %v1204_v24 }
 0x20a   : > { %v5164_v27 = vmul.f32 0.03125, %v753_v49 }
 0x20b   : > { %4270 = vrsqrt.f32 %v5183_v22  ;;  %vm1228_vm13 = vweird.f32 %v5183_v22 }
 0x20c   : > { %6967 = vst [vmem:[#allocation50_spill] sm:$0xff] %v5164_v27 }
 0x20d   : > { %3992 = vmatmul.msk.f32.gmra.mxu3 %vm1512_vm2, %v5164_v27  ;;  %v1100_v27 = vsub.f32 %v1036_v28, %v1068_v38  ;;  %v1206_v38 = vsub.f32 1.5, %v1205_v57 }
 0x20f   : > { %v1132_v1 = vmax.f32 %v1100_v27, 0.0  ;;  %v5198_v27 = vpop.f32.mrf.mxu2  ;;  %v1207_v24 = vmul.f32 %v4267_v51, %v1206_v38 }
 0x210   : > { %v5175_v49 = vpop.f32.mrf.mxu3 }
 0x211   : > { %6968 = vst [vmem:[#allocation51_spill] sm:$0xff] %v5175_v49  ;;  %v756_v13 = vpop.f32.mrf.mxu1  ;;  %4048 = vmatmul.msk.bf16.gmra.mxu0 %vm412_vm0, %v4611_v45  ;;  %v5196_v28 = vadd.f32 1e-05, %v1132_v1 }
 0x212   : > { %v5181_v2 = vmul.f32 0.03125, %v756_v13  ;;  %v1197_v13 = vmul.f32 %v4265_v62, %v1196_v17  ;;  %v1133_v17 = vmax.f32 %v1101_v7, 0.0 }
 0x213   : > { %4272 = vrsqrt.f32 %v5196_v28  ;;  %vm1238_vm1 = vweird.f32 %v5196_v28 }
 0x214   : > { %6969 = vst [vmem:[#allocation52_spill] sm:$0xff] %v5181_v2  ;;  %v1201_v36 = vsel %vm1200_vm5, %v4265_v62, %v1197_v13  ;;  %v1070_v62 = vmul.f32 %v5058_v4, %v5058_v4  ;;  %v5209_v5 = vadd.f32 1e-05, %v1133_v17  ;;  %v1211_v13 = vsel %vm1210_vm8, %v4267_v51, %v1207_v24 }
 0x215   : > { %3993 = vmatmul.msk.f32.gmra.mxu3 %vm1512_vm2, %v5181_v2  ;;  %v1214_v2 = vmul.f32 %v4269_v19, %v1213_v16  ;;  %v1071_v51 = vmul.f32 %v5071_v54, %v5071_v54  ;;  %v1040_v54 = vmul.f32 0.03125, %v4900_v14 }
 0x216   : > { %v1102_v16 = vsub.f32 %v1038_v60, %v1070_v62  ;;  %4274 = vrsqrt.f32 %v5209_v5  ;;  %vm1248_vm5 = vweird.f32 %v5209_v5 }
 0x217   : > { %v1215_v1 = vmul.f32 0.5, %v1214_v2  ;;  %v5211_v7 = vpop.f32.mrf.mxu2 }
 0x218   : > { %v5190_v49 = vpop.f32.mrf.mxu3  ;;  %v1134_v2 = vmax.f32 %v1102_v16, 0.0 }
 0x219   : > { %6970 = vst [vmem:[#allocation53_spill] sm:$0xff] %v5190_v49  ;;  %v4271_v49 = vpop.eup %4270  ;;  %v1216_v57 = vsub.f32 1.5, %v1215_v1 }
 0x21a   : > { %v1223_v0 = vmul.f32 %v4271_v49, %v5183_v22  ;;  %v4273_v26 = vpop.eup %4272  ;;  %v5224_v60 = vadd.f32 1e-05, %v1134_v2  ;;  %vm1229_vm12 = vweird.f32 %v4271_v49 }
 0x21b   : > { %v1233_v4 = vmul.f32 %v4273_v26, %v5196_v28  ;;  %v1217_v38 = vmul.f32 %v4269_v19, %v1216_v57  ;;  %vm1230_vm14 = vmor %vm1228_vm13, %vm1229_vm12  ;;  %vm1239_vm15 = vweird.f32 %v4273_v26  ;;  %v1042_v28 = vmul.f32 0.03125, %v4918_v23 }
 0x21c   : > { %v1224_v6 = vmul.f32 %v4271_v49, %v1223_v0  ;;  %v4275_v62 = vpop.eup %4274  ;;  %4276 = vrsqrt.f32 %v5224_v60  ;;  %vm1240_vm3 = vmor %vm1238_vm1, %vm1239_vm15  ;;  %vm1258_vm8 = vweird.f32 %v5224_v60 }
 0x21d   : > { %3995 = vmatmul.msk.f32.vlgmr.msrb.gmra.mxu3 %vm1512_vm2, %v1201_v36  ;;  %v1039_v36 = vmul.f32 0.03125, %v4891_v21  ;;  %v1221_v21 = vsel %vm1220_vm11, %v4269_v19, %v1217_v38  ;;  %v1234_v1 = vmul.f32 %v4273_v26, %v1233_v4  ;;  %v1243_v35 = vmul.f32 %v4275_v62, %v5209_v5 }
 0x21e   : > { %v1225_v17 = vmul.f32 0.5, %v1224_v6  ;;  %v1072_v19 = vmul.f32 %v5080_v10, %v5080_v10  ;;  %vm1249_vm4 = vweird.f32 %v4275_v62 }
 0x21f   : > { %v1103_v0 = vsub.f32 %v1039_v36, %v1071_v51  ;;  %v1235_v6 = vmul.f32 0.5, %v1234_v1  ;;  %v1244_v38 = vmul.f32 %v4275_v62, %v1243_v35  ;;  %vm1250_vm6 = vmor %vm1248_vm5, %vm1249_vm4 }
 0x220   : > { %v5204_v45 = vpop.f32.mrf.mxu3  ;;  %v1226_v24 = vsub.f32 1.5, %v1225_v17  ;;  %v1104_v36 = vsub.f32 %v1040_v54, %v1072_v19 }
 0x221   : > { %4049 = vmatmul.msk.bf16.gmra.mxu0 %vm412_vm0, %v4635_v52  ;;  %v1135_v16 = vmax.f32 %v1103_v0, 0.0  ;;  %v1236_v14 = vsub.f32 1.5, %v1235_v6  ;;  %v1041_v0 = vmul.f32 0.03125, %v4909_v20 }
 0x222   : > { %v1227_v57 = vmul.f32 %v4271_v49, %v1226_v24  ;;  %v5239_v17 = vpop.eup %4276  ;;  %v1136_v51 = vmax.f32 %v1104_v36, 0.0  ;;  %v1245_v24 = vmul.f32 0.5, %v1244_v38 }
 0x223   : > { %v5237_v2 = vadd.f32 1e-05, %v1135_v16  ;;  %v1253_v10 = vmul.f32 %v5239_v17, %v5224_v60  ;;  %vm1259_vm7 = vweird.f32 %v5239_v17 }
 0x224   : > { %v1231_v4 = vsel %vm1230_vm14, %v4271_v49, %v1227_v57  ;;  %v1073_v49 = vmul.f32 %v5093_v46, %v5093_v46  ;;  %v5255_v16 = vadd.f32 1e-05, %v1136_v51  ;;  %v1246_v35 = vsub.f32 1.5, %v1245_v24  ;;  %vm1260_vm9 = vmor %vm1258_vm8, %vm1259_vm7 }
 0x225   : > { %3996 = vmatmul.msk.f32.gmra.mxu3 %vm1512_vm2, %v1211_v13  ;;  %v5229_v13 = vpop.f32.mrf.mxu2  ;;  %4278 = vrsqrt.f32 %v5237_v2  ;;  %v1254_v57 = vmul.f32 %v5239_v17, %v1253_v10  ;;  %vm1268_vm11 = vweird.f32 %v5237_v2 }
 0x226   : > { %v1105_v20 = vsub.f32 %v1041_v0, %v1073_v49  ;;  %4280 = vrsqrt.f32 %v5255_v16  ;;  %v1247_v36 = vmul.f32 %v4275_v62, %v1246_v35  ;;  %vm1278_vm14 = vweird.f32 %v5255_v16 }
 0x228   : > { %v5217_v9 = vpop.f32.mrf.mxu3  ;;  %v1137_v46 = vmax.f32 %v1105_v20, 0.0  ;;  %v1251_v23 = vsel %vm1250_vm6, %v4275_v62, %v1247_v36 }
 0x22b   : > { %v5258_v6 = vpop.eup %4278 }
 0x22c   : > { %vm1269_vm10 = vweird.f32 %v5258_v6 }
 0x22d   : > { %3997 = vmatmul.msk.f32.gmra.mxu3 %vm1512_vm2, %v1221_v21  ;;  %v1237_v21 = vmul.f32 %v4273_v26, %v1236_v14  ;;  %v5250_v1 = vpop.f32.mrf.mxu2  ;;  %v5270_v14 = vadd.f32 1e-05, %v1137_v46  ;;  %vm1270_vm12 = vmor %vm1268_vm11, %vm1269_vm10 }
 0x22f   : > { %v1241_v54 = vsel %vm1240_vm3, %v4273_v26, %v1237_v21  ;;  %v1255_v26 = vmul.f32 0.5, %v1254_v57  ;;  %v5275_v21 = vpop.eup %4280  ;;  %4282 = vrsqrt.f32 %v5270_v14  ;;  %vm1288_vm3 = vweird.f32 %v5270_v14 }
 0x230   : > { %v5232_v52 = vpop.f32.mrf.mxu3  ;;  %v1273_v49 = vmul.f32 %v5275_v21, %v5255_v16  ;;  %vm1279_vm13 = vweird.f32 %v5275_v21 }
 0x231   : > { %4050 = vmatmul.msk.bf16.gmra.mxu0 %vm412_vm0, %v4650_v58  ;;  %v1263_v58 = vmul.f32 %v5258_v6, %v5237_v2  ;;  %v1256_v0 = vsub.f32 1.5, %v1255_v26  ;;  %v1045_v2 = vmul.f32 0.03125, %v4948_v29  ;;  %v1077_v29 = vmul.f32 %v5148_v31, %v5148_v31  ;;  %vm1280_vm15 = vmor %vm1278_vm14, %vm1279_vm13 }
 0x232   : > { %v1274_v36 = vmul.f32 %v5275_v21, %v1273_v49 }
 0x233   : > { %v1264_v10 = vmul.f32 %v5258_v6, %v1263_v58  ;;  %v1257_v20 = vmul.f32 %v5239_v17, %v1256_v0 }
 0x234   : > { %v1275_v0 = vmul.f32 0.5, %v1274_v36 }
 0x235   : > { %3998 = vmatmul.msk.f32.gmra.mxu3 %vm1512_vm2, %v1231_v4  ;;  %v1074_v4 = vmul.f32 %v5104_v63, %v5104_v63  ;;  %v5272_v51 = vpop.f32.mrf.mxu2  ;;  %v1043_v63 = vmul.f32 0.03125, %v4930_v44  ;;  %v1075_v44 = vmul.f32 %v5118_v61, %v5118_v61  ;;  %v5302_v26 = vpop.eup %4282  ;;  %v1044_v61 = vmul.f32 0.03125, %v4939_v41 }
 0x236   : > { %v1076_v41 = vmul.f32 %v5132_v33, %v5132_v33  ;;  %vm1289_vm1 = vweird.f32 %v5302_v26 }
 0x237   : > { %v1106_v38 = vsub.f32 %v1042_v28, %v1074_v4  ;;  %v1107_v46 = vsub.f32 %v1043_v63, %v1075_v44  ;;  %v1261_v28 = vsel %vm1260_vm9, %v5239_v17, %v1257_v20  ;;  %v1283_v17 = vmul.f32 %v5302_v26, %v5270_v14  ;;  %vm1290_vm4 = vmor %vm1288_vm3, %vm1289_vm1 }
 0x238   : > { %v5246_v22 = vpop.f32.mrf.mxu3  ;;  %v1108_v63 = vsub.f32 %v1044_v61, %v1076_v41  ;;  %v1276_v20 = vsub.f32 1.5, %v1275_v0 }
 0x239   : > { %v1138_v24 = vmax.f32 %v1106_v38, 0.0 }
 0x23a   : > { %v1140_v33 = vmax.f32 %v1108_v63, 0.0 }
 0x23b   : > { %v5298_v57 = vadd.f32 1e-05, %v1138_v24 }
 0x23c   : > { %v5354_v61 = vadd.f32 1e-05, %v1140_v33 }
 0x23d   : > { %3999 = vmatmul.msk.f32.gmra.mxu3 %vm1512_vm2, %v1241_v54  ;;  %v1265_v54 = vmul.f32 0.5, %v1264_v10  ;;  %v5304_v4 = vpop.f32.mrf.mxu2  ;;  %4284 = vrsqrt.f32 %v5298_v57  ;;  %vm1298_vm6 = vweird.f32 %v5298_v57 }
 0x23e   : > { %v5281_v5 = vpop.f32.mrf.mxu0 }
 0x23f   : > { %v2431_v35 = vmul.f32 %v5281_v5, %v5281_v5  ;;  %4059 = vmatmul.msk.f32.vlgmr.msra.gmra.mxu1 %vm412_vm0, %v5281_v5  ;;  %v1266_v58 = vsub.f32 1.5, %v1265_v54  ;;  %v1284_v54 = vmul.f32 %v5302_v26, %v1283_v17  ;;  %v1109_v17 = vsub.f32 %v1045_v2, %v1077_v29 }
 0x240   : > { %v5265_v19 = vpop.f32.mrf.mxu3 }
 0x241   : > { %4051 = vmatmul.msk.bf16.gmra.mxu0 %vm412_vm0, %v4516_v11  ;;  %4091 = vmatmul.msk.f32.vlgmr.msra.gmra.mxu2 %vm412_vm0, %v2431_v35  ;;  %v1139_v11 = vmax.f32 %v1107_v46, 0.0  ;;  %v1285_v36 = vmul.f32 0.5, %v1284_v54  ;;  %v1141_v31 = vmax.f32 %v1109_v17, 0.0 }
 0x243   : > { %v5325_v24 = vadd.f32 1e-05, %v1139_v11  ;;  %v5329_v35 = vpop.eup %4284  ;;  %v1286_v0 = vsub.f32 1.5, %v1285_v36  ;;  %v5378_v33 = vadd.f32 1e-05, %v1141_v31 }
 0x244   : > { %vm1299_vm5 = vweird.f32 %v5329_v35 }
 0x245   : > { %4000 = vmatmul.msk.f32.gmra.mxu3 %vm1512_vm2, %v1251_v23  ;;  %v1267_v23 = vmul.f32 %v5258_v6, %v1266_v58  ;;  %4286 = vrsqrt.f32 %v5325_v24  ;;  %v5334_v44 = vpop.f32.mrf.mxu2  ;;  %v1277_v58 = vmul.f32 %v5275_v21, %v1276_v20  ;;  %vm1300_vm7 = vmor %vm1298_vm6, %vm1299_vm5  ;;  %vm1308_vm9 = vweird.f32 %v5325_v24 }
 0x246   : > { %v5310_v60 = vpop.f32.mrf.mxu0  ;;  %4288 = vrsqrt.f32 %v5354_v61 }
 0x247   : > { %v2432_v10 = vmul.f32 %v5310_v60, %v5310_v60  ;;  %4060 = vmatmul.msk.f32.gmra.mxu1 %vm412_vm0, %v5310_v60  ;;  %v1271_v49 = vsel %vm1270_vm12, %v5258_v6, %v1267_v23  ;;  %v1293_v6 = vmul.f32 %v5329_v35, %v5298_v57  ;;  %v1281_v23 = vsel %vm1280_vm15, %v5275_v21, %v1277_v58 }
 0x248   : > { %v5285_v62 = vpop.f32.mrf.mxu3  ;;  %v1287_v21 = vmul.f32 %v5302_v26, %v1286_v0  ;;  %4290 = vrsqrt.f32 %v5378_v33  ;;  %vm1318_vm12 = vweird.f32 %v5354_v61  ;;  %vm1328_vm15 = vweird.f32 %v5378_v33 }
 0x249   : > { %4092 = vmatmul.msk.f32.gmra.mxu2 %vm412_vm0, %v2432_v10  ;;  %v1294_v10 = vmul.f32 %v5329_v35, %v1293_v6 }
 0x24a   : > { %v1291_v2 = vsel %vm1290_vm4, %v5302_v26, %v1287_v21 }
 0x24b   : > { %v5358_v41 = vpop.eup %4286 }
 0x24c   : > { %v1303_v16 = vmul.f32 %v5358_v41, %v5325_v24  ;;  %v5382_v36 = vpop.eup %4288  ;;  %vm1309_vm8 = vweird.f32 %v5358_v41  ;;  %v6975_v24 = vsub.f32 %v4987_v37, %v4985_v40 }
 0x24d   : > { %4001 = vmatmul.msk.f32.gmra.mxu3 %vm1512_vm2, %v1261_v28  ;;  %v5374_v54 = vpop.f32.mrf.mxu2  ;;  %v1313_v26 = vmul.f32 %v5382_v36, %v5354_v61  ;;  %vm1310_vm10 = vmor %vm1308_vm9, %vm1309_vm8  ;;  %vm1319_vm11 = vweird.f32 %v5382_v36  ;;  %v6977_v61 = vsub.f32 %v4999_v55, %v4997_v56 }
 0x24e   : > { %v5337_v46 = vpop.f32.mrf.mxu0  ;;  %v1304_v58 = vmul.f32 %v5358_v41, %v1303_v16  ;;  %vm1320_vm13 = vmor %vm1318_vm12, %vm1319_vm11 }
 0x24f   : > { %v2433_v11 = vmul.f32 %v5337_v46, %v5337_v46  ;;  %4061 = vmatmul.msk.f32.gmra.mxu1 %vm412_vm0, %v5337_v46  ;;  %v1314_v21 = vmul.f32 %v5382_v36, %v1313_v26 }
 0x250   : > { %v5314_v38 = vpop.f32.mrf.mxu3  ;;  %v1305_v0 = vmul.f32 0.5, %v1304_v58 }
 0x251   : > { %4052 = vmatmul.msk.bf16.gmra.mxu0 %vm412_vm0, %v4537_v18  ;;  %4093 = vmatmul.msk.f32.gmra.mxu2 %vm412_vm0, %v2433_v11  ;;  %v6971_v11 = vsub.f32 %v4963_v43, %v4961_v3  ;;  %v1315_v58 = vmul.f32 0.5, %v1314_v21 }
 0x252   : > { %v1306_v16 = vsub.f32 1.5, %v1305_v0 }
 0x253   : > { %v1142_v14 = vmax.f32 %v6971_v11, 0.0 }
 0x255   : > { %4002 = vmatmul.msk.f32.gmra.mxu3 %vm1512_vm2, %v1271_v49  ;;  %v1295_v49 = vmul.f32 0.5, %v1294_v10  ;;  %v5405_v43 = vadd.f32 1e-05, %v1142_v14  ;;  %v5407_v3 = vpop.f32.mrf.mxu2  ;;  %v1316_v14 = vsub.f32 1.5, %v1315_v58 }
 0x256   : > { %v5363_v18 = vpop.f32.mrf.mxu0 }
 0x257   : > { %v2434_v20 = vmul.f32 %v5363_v18, %v5363_v18  ;;  %4062 = vmatmul.msk.f32.gmra.mxu1 %vm412_vm0, %v5363_v18  ;;  %v1296_v6 = vsub.f32 1.5, %v1295_v49  ;;  %v4291_v49 = vpop.eup %4290  ;;  %4292 = vrsqrt.f32 %v5405_v43  ;;  %v1317_v21 = vmul.f32 %v5382_v36, %v1316_v14 }
 0x258   : > { %v5341_v28 = vpop.f32.mrf.mxu3  ;;  %vm1329_vm14 = vweird.f32 %v4291_v49  ;;  %vm1338_vm4 = vweird.f32 %v5405_v43 }
 0x259   : > { %4094 = vmatmul.msk.f32.gmra.mxu2 %vm412_vm0, %v2434_v20  ;;  %v1321_v37 = vsel %vm1320_vm13, %v5382_v36, %v1317_v21  ;;  %vm1330_vm1 = vmor %vm1328_vm15, %vm1329_vm14 }
 0x25d   : > { %4003 = vmatmul.msk.f32.gmra.mxu3 %vm1512_vm2, %v1281_v23  ;;  %v1297_v23 = vmul.f32 %v5329_v35, %v1296_v6  ;;  %v5434_v0 = vpop.f32.mrf.mxu2 }
 0x25e   : > { %v5390_v29 = vpop.f32.mrf.mxu0 }
 0x25f   : > { %6972 = vst [vmem:[#allocation54_spill] sm:$0xff] %v5390_v29  ;;  %v2435_v10 = vmul.f32 %v5390_v29, %v5390_v29  ;;  %4063 = vmatmul.msk.f32.gmra.mxu1 %vm412_vm0, %v5390_v29  ;;  %v1301_v31 = vsel %vm1300_vm7, %v5329_v35, %v1297_v23  ;;  %v1307_v35 = vmul.f32 %v5358_v41, %v1306_v16  ;;  %v5432_v23 = vpop.eup %4292 }
 0x260   : > { %v5367_v63 = vpop.f32.mrf.mxu3  ;;  %vm1339_vm3 = vweird.f32 %v5432_v23 }
 0x261   : > { %4053 = vmatmul.msk.bf16.gmra.mxu0 %vm412_vm0, %v4556_v25  ;;  %4095 = vmatmul.msk.f32.gmra.mxu2 %vm412_vm0, %v2435_v10  ;;  %v6973_v25 = vsub.f32 %v4975_v12, %v4973_v34  ;;  %v1311_v12 = vsel %vm1310_vm10, %v5358_v41, %v1307_v35  ;;  %v1144_v10 = vmax.f32 %v6975_v24, 0.0  ;;  %v1333_v41 = vmul.f32 %v5432_v23, %v5405_v43  ;;  %vm1340_vm5 = vmor %vm1338_vm4, %vm1339_vm3 }
 0x262   : > { %v6981_v43 = vsub.f32 %v5026_v59, %v5024_v53 }
 0x263   : > { %v1143_v57 = vmax.f32 %v6973_v25, 0.0  ;;  %v5457_v40 = vadd.f32 1e-05, %v1144_v10  ;;  %v1334_v35 = vmul.f32 %v5432_v23, %v1333_v41 }
 0x265   : > { %4004 = vmatmul.msk.f32.gmra.mxu3 %vm1512_vm2, %v1291_v2  ;;  %v1323_v2 = vmul.f32 %v4291_v49, %v5378_v33  ;;  %v5429_v34 = vadd.f32 1e-05, %v1143_v57  ;;  %v1335_v24 = vmul.f32 0.5, %v1334_v35  ;;  %vm1358_vm10 = vweird.f32 %v5457_v40 }
 0x266   : > { %v5417_v20 = vpop.f32.mrf.mxu0 }
 0x267   : > { %6974 = vst [vmem:[#allocation55_spill] sm:$0xff] %v5417_v20  ;;  %v2436_v11 = vmul.f32 %v5417_v20, %v5417_v20  ;;  %4064 = vmatmul.msk.f32.gmra.mxu1 %vm412_vm0, %v5417_v20  ;;  %v1324_v26 = vmul.f32 %v4291_v49, %v1323_v2  ;;  %4294 = vrsqrt.f32 %v5429_v34  ;;  %v1336_v41 = vsub.f32 1.5, %v1335_v24 }
 0x268   : > { %v5394_v17 = vpop.f32.mrf.mxu3  ;;  %4296 = vrsqrt.f32 %v5457_v40  ;;  %vm1348_vm7 = vweird.f32 %v5429_v34 }
 0x269   : > { %4096 = vmatmul.msk.f32.gmra.mxu2 %vm412_vm0, %v2436_v11  ;;  %v1325_v25 = vmul.f32 0.5, %v1324_v26  ;;  %v5468_v11 = vpop.f32.mrf.mxu2  ;;  %v1337_v35 = vmul.f32 %v5432_v23, %v1336_v41 }
 0x26b   : > { %v1326_v2 = vsub.f32 1.5, %v1325_v25 }
 0x26d   : > { %4005 = vmatmul.msk.f32.gmra.mxu3 %vm1512_vm2, %v1301_v31  ;;  %v5461_v58 = vpop.eup %4294  ;;  %v1327_v26 = vmul.f32 %v4291_v49, %v1326_v2 }
 0x26e   : > { %v5442_v31 = vpop.f32.mrf.mxu0  ;;  %v1343_v36 = vmul.f32 %v5461_v58, %v5429_v34  ;;  %v5485_v25 = vpop.eup %4296  ;;  %vm1349_vm6 = vweird.f32 %v5461_v58  ;;  %v6983_v34 = vld [vmem:[#allocation37_spill] sm:$0xff] }
 0x26f   : > { %6976 = vst [vmem:[#allocation56_spill] sm:$0xff] %v5442_v31  ;;  %v2437_v57 = vmul.f32 %v5442_v31, %v5442_v31  ;;  %4065 = vmatmul.msk.f32.gmra.mxu1 %vm412_vm0, %v5442_v31  ;;  %v1331_v55 = vsel %vm1330_vm1, %v4291_v49, %v1327_v26  ;;  %v1353_v49 = vmul.f32 %v5485_v25, %v5457_v40  ;;  %vm1350_vm8 = vmor %vm1348_vm7, %vm1349_vm6  ;;  %vm1359_vm9 = vweird.f32 %v5485_v25 }
 0x270   : > { %v5420_v6 = vpop.f32.mrf.mxu3  ;;  %v1344_v21 = vmul.f32 %v5461_v58, %v1343_v36  ;;  %v1341_v36 = vsel %vm1340_vm5, %v5432_v23, %v1337_v35  ;;  %vm1360_vm11 = vmor %vm1358_vm10, %vm1359_vm9  ;;  %v6987_v40 = vsub.f32 %v5053_v48, %v5051_v30 }
 0x271   : > { %4054 = vmatmul.msk.bf16.gmra.mxu0 %vm412_vm0, %v4575_v32  ;;  %4097 = vmatmul.msk.f32.gmra.mxu2 %vm412_vm0, %v2437_v57  ;;  %v1145_v32 = vmax.f32 %v6977_v61, 0.0  ;;  %v6979_v57 = vsub.f32 %v5014_v47, %v5012_v50  ;;  %v5504_v47 = vpop.f32.mrf.mxu2  ;;  %v1354_v24 = vmul.f32 %v5485_v25, %v1353_v49 }
 0x272   : > { %v1345_v61 = vmul.f32 0.5, %v1344_v21 }
 0x273   : > { %v5482_v56 = vadd.f32 1e-05, %v1145_v32 }
 0x274   : > { %v1346_v26 = vsub.f32 1.5, %v1345_v61 }
 0x275   : > { %4006 = vmatmul.msk.f32.gmra.mxu3 %vm1512_vm2, %v1311_v12  ;;  %4298 = vrsqrt.f32 %v5482_v56  ;;  %vm1368_vm13 = vweird.f32 %v5482_v56 }
 0x276   : > { %v5470_v12 = vpop.f32.mrf.mxu0  ;;  %v1347_v21 = vmul.f32 %v5461_v58, %v1346_v26 }
 0x277   : > { %6978 = vst [vmem:[#allocation57_spill] sm:$0xff] %v5470_v12  ;;  %v2438_v10 = vmul.f32 %v5470_v12, %v5470_v12  ;;  %4066 = vmatmul.msk.f32.gmra.mxu1 %vm412_vm0, %v5470_v12 }
 0x278   : > { %v5446_v16 = vpop.f32.mrf.mxu3  ;;  %v1351_v49 = vsel %vm1350_vm8, %v5461_v58, %v1347_v21 }
 0x279   : > { %4098 = vmatmul.msk.f32.gmra.mxu2 %vm412_vm0, %v2438_v10  ;;  %v5537_v59 = vpop.f32.mrf.mxu2 }
 0x27b   : > { %v5514_v10 = vpop.eup %4298 }
 0x27c   : > { %v1363_v23 = vmul.f32 %v5514_v10, %v5482_v56  ;;  %vm1369_vm12 = vweird.f32 %v5514_v10 }
 0x27d   : > { %4007 = vmatmul.msk.f32.gmra.mxu3 %vm1512_vm2, %v1321_v37  ;;  %v1146_v37 = vmax.f32 %v6979_v57, 0.0  ;;  %v1355_v57 = vmul.f32 0.5, %v1354_v24  ;;  %vm1370_vm14 = vmor %vm1368_vm13, %vm1369_vm12 }
 0x27e   : > { %v5493_v33 = vpop.f32.mrf.mxu0  ;;  %v1364_v61 = vmul.f32 %v5514_v10, %v1363_v23 }
 0x27f   : > { %6980 = vst [vmem:[#allocation58_spill] sm:$0xff] %v5493_v33  ;;  %v2439_v32 = vmul.f32 %v5493_v33, %v5493_v33  ;;  %4067 = vmatmul.msk.f32.gmra.mxu1 %vm412_vm0, %v5493_v33  ;;  %v5510_v50 = vadd.f32 1e-05, %v1146_v37  ;;  %v1356_v35 = vsub.f32 1.5, %v1355_v57 }
 0x280   : > { %v5474_v14 = vpop.f32.mrf.mxu3  ;;  %v1365_v23 = vmul.f32 0.5, %v1364_v61 }
 0x281   : > { %4055 = vmatmul.msk.bf16.gmra.mxu0 %vm412_vm0, %v4594_v39  ;;  %4099 = vmatmul.msk.f32.gmra.mxu2 %vm412_vm0, %v2439_v32  ;;  %4300 = vrsqrt.f32 %v5510_v50  ;;  %v1147_v39 = vmax.f32 %v6981_v43, 0.0  ;;  %vm1378_vm1 = vweird.f32 %v5510_v50 }
 0x283   : > { %v5535_v53 = vadd.f32 1e-05, %v1147_v39  ;;  %v1357_v39 = vmul.f32 %v5485_v25, %v1356_v35 }
 0x285   : > { %4008 = vmatmul.msk.f32.gmra.mxu3 %vm1512_vm2, %v1331_v55  ;;  %4302 = vrsqrt.f32 %v5535_v53  ;;  %vm1388_vm5 = vweird.f32 %v5535_v53 }
 0x286   : > { %v5522_v55 = vpop.f32.mrf.mxu0 }
 0x287   : > { %6982 = vst [vmem:[#allocation59_spill] sm:$0xff] %v5522_v55  ;;  %v2440_v37 = vmul.f32 %v5522_v55, %v5522_v55  ;;  %4068 = vmatmul.msk.f32.gmra.mxu1 %vm412_vm0, %v5522_v55  ;;  %v5541_v32 = vpop.eup %4300 }
 0x288   : > { %v5497_v2 = vpop.f32.mrf.mxu3  ;;  %v1373_v58 = vmul.f32 %v5541_v32, %v5510_v50  ;;  %vm1379_vm15 = vweird.f32 %v5541_v32 }
 0x289   : > { %4100 = vmatmul.msk.f32.gmra.mxu2 %vm412_vm0, %v2440_v37  ;;  %v1361_v37 = vsel %vm1360_vm11, %v5485_v25, %v1357_v39  ;;  %v6988_v25 = vld [vmem:[#allocation5_spill] sm:$0xff]  ;;  %vm1380_vm3 = vmor %vm1378_vm1, %vm1379_vm15 }
 0x28a   : > { %v1374_v35 = vmul.f32 %v5541_v32, %v1373_v58  ;;  %v1935_v39 = vsub.f32 %v6988_v25, %v5272_v51  ;;  %v5583_v58 = vld [vmem:[%s6855_s5] ss:$0 sm:$0xff] }
 0x28b   : > { %v5568_v61 = vpop.eup %4302  ;;  %v6990_v51 = vld [vmem:[#allocation38_spill] sm:$0xff] }
 0x28c   : > { %v1383_v48 = vmul.f32 %v5568_v61, %v5535_v53  ;;  %v5601_v25 = vld [vmem:[%s6856_s6] ss:$0 sm:$0xff]  ;;  %vm1389_vm4 = vweird.f32 %v5568_v61 }
 0x28d   : > { %4009 = vmatmul.msk.f32.gmra.mxu3 %vm1512_vm2, %v1341_v36  ;;  %v6984_v36 = vsub.f32 %v5038_v15, %v6983_v34  ;;  %v6986_v15 = vld [vmem:[#allocation2_spill] sm:$0xff]  ;;  %v5570_v34 = vpop.f32.mrf.mxu2  ;;  %vm1390_vm6 = vmor %vm1388_vm5, %vm1389_vm4 }
 0x28e   : > { %v5549_v24 = vpop.f32.mrf.mxu0 }
 0x28f   : > { %v1148_v26 = vmax.f32 %v6984_v36, 0.0  ;;  %6985 = vst [vmem:[#allocation37_spill] sm:$0xff] %v5549_v24  ;;  %v2441_v21 = vmul.f32 %v5549_v24, %v5549_v24  ;;  %4069 = vmatmul.msk.f32.gmra.mxu1 %vm412_vm0, %v5549_v24  ;;  %v1149_v36 = vmax.f32 %v6987_v40, 0.0 }
 0x290   : > { %v5526_v41 = vpop.f32.mrf.mxu3 }
 0x291   : > { %4056 = vmatmul.msk.bf16.gmra.mxu0 %vm412_vm0, %v6986_v15  ;;  %4101 = vmatmul.msk.f32.gmra.mxu2 %vm412_vm0, %v2441_v21  ;;  %v5564_v57 = vadd.f32 1e-05, %v1148_v26  ;;  %v1054_v26 = vmul.f32 0.03125, %v5090_v8  ;;  %v1375_v15 = vmul.f32 0.5, %v1374_v35  ;;  %v5603_v24 = vadd.f32 1e-05, %v1149_v36 }
 0x293   : > { %4304 = vrsqrt.f32 %v5564_v57  ;;  %v1376_v36 = vsub.f32 1.5, %v1375_v15  ;;  %vm1398_vm8 = vweird.f32 %v5564_v57  ;;  %vm1408_vm11 = vweird.f32 %v5603_v24 }
 0x294   : > { %4306 = vrsqrt.f32 %v5603_v24 }
 0x295   : > { %4010 = vmatmul.msk.f32.gmra.mxu3 %vm1512_vm2, %v1351_v49  ;;  %v1366_v49 = vsub.f32 1.5, %v1365_v23  ;;  %v5625_v55 = vpop.f32.mrf.mxu2  ;;  %v1377_v15 = vmul.f32 %v5541_v32, %v1376_v36 }
 0x296   : > { %v5586_v23 = vpop.f32.mrf.mxu0 }
 0x297   : > { %6989 = vst [vmem:[#allocation2_spill] sm:$0xff] %v5586_v23  ;;  %v1367_v21 = vmul.f32 %v5514_v10, %v1366_v49  ;;  %v2442_v8 = vmul.f32 %v5586_v23, %v5586_v23  ;;  %4070 = vmatmul.msk.f32.gmra.mxu1 %vm412_vm0, %v5586_v23 }
 0x298   : > { %v5553_v43 = vpop.f32.mrf.mxu3 }
 0x299   : > { %4102 = vmatmul.msk.f32.gmra.mxu2 %vm412_vm0, %v2442_v8  ;;  %v5617_v56 = vpop.eup %4304 }
 0x29a   : > { %vm1399_vm7 = vweird.f32 %v5617_v56 }
 0x29b   : > { %vm1400_vm9 = vmor %vm1398_vm8, %vm1399_vm7 }
 0x29d   : > { %4011 = vmatmul.msk.f32.gmra.mxu3 %vm1512_vm2, %v1361_v37  ;;  %v1086_v37 = vmul.f32 %v6990_v51, %v6990_v51  ;;  %v6991_v51 = vld [vmem:[#allocation42_spill] sm:$0xff] }
 0x29f   : > { %v1118_v49 = vsub.f32 %v1054_v26, %v1086_v37  ;;  %v1055_v37 = vmul.f32 0.03125, %v6991_v51  ;;  %v6995_v51 = vld [vmem:[#allocation3_spill] sm:$0xff] }
 0x2a0   : > { %v1839_v30 = vpop.f32.mrf.mxu3 }
 0x2a1   : > { %v1967_v40 = vmul.f32 %v1935_v39, %v1839_v30  ;;  %v1371_v39 = vsel %vm1370_vm14, %v5514_v10, %v1367_v21  ;;  %v1384_v30 = vmul.f32 %v5568_v61, %v1383_v48  ;;  %v1150_v8 = vmax.f32 %v1118_v49, 0.0  ;;  %v5630_v10 = vpop.f32.mrf.mxu0  ;;  %4057 = vmatmul.msk.bf16.gmra.mxu0 %vm412_vm0, %v6995_v51 }
 0x2a2   : > { %6993 = vst [vmem:[#allocation5_spill] sm:$0xff] %v5630_v10  ;;  %v1393_v48 = vmul.f32 %v5617_v56, %v5564_v57  ;;  %4071 = vmatmul.msk.f32.gmra.mxu1 %vm412_vm0, %v5630_v10 }
 0x2a3   : > { %v2002_v35 = vmul.f32 %v5583_v58, %v1967_v40  ;;  %v6992_v40 = vld [vmem:[#allocation7_spill] sm:$0xff]  ;;  %v1385_v49 = vmul.f32 0.5, %v1384_v30 }
 0x2a4   : > { %v1936_v23 = vsub.f32 %v6992_v40, %v5304_v4  ;;  %v6994_v4 = vld [vmem:[#allocation39_spill] sm:$0xff]  ;;  %v5645_v40 = vadd.f32 1e-05, %v1150_v8  ;;  %v1394_v50 = vmul.f32 %v5617_v56, %v1393_v48  ;;  %v6996_v8 = vld [vmem:[#allocation45_spill] sm:$0xff] }
 0x2a5   : > { %v2037_v26 = vadd.f32 %v5601_v25, %v2002_v35  ;;  %4012 = vmatmul.msk.f32.gmra.mxu3 %vm1512_vm2, %v1371_v39  ;;  %v2443_v35 = vmul.f32 %v5630_v10, %v5630_v10  ;;  %v1087_v39 = vmul.f32 %v6994_v4, %v6994_v4  ;;  %v5650_v10 = vpop.eup %4306 }
 0x2a6   : > { %4308 = vrsqrt.f32 %v5645_v40  ;;  %vm1409_vm10 = vweird.f32 %v5650_v10  ;;  %vm1418_vm14 = vweird.f32 %v5645_v40 }
 0x2a7   : > { %2069 = vst.msk [vmem:[%s5613_s11] sm:$0xff] %vm412_vm0, %v2037_v26  ;;  %4103 = vmatmul.msk.f32.gmra.mxu2 %vm412_vm0, %v2443_v35  ;;  %v1119_v36 = vsub.f32 %v1055_v37, %v1087_v39  ;;  %v1056_v35 = vmul.f32 0.03125, %v6996_v8  ;;  %v1403_v37 = vmul.f32 %v5650_v10, %v5603_v24  ;;  %vm1410_vm12 = vmor %vm1408_vm11, %vm1409_vm10 }
 0x2a8   : > { %v1842_v21 = vpop.f32.mrf.mxu3 }
 0x2a9   : > { %v1968_v26 = vmul.f32 %v1936_v23, %v1842_v21  ;;  %v1381_v23 = vsel %vm1380_vm3, %v5541_v32, %v1377_v15  ;;  %v1386_v21 = vsub.f32 1.5, %v1385_v49  ;;  %v1151_v39 = vmax.f32 %v1119_v36, 0.0  ;;  %v5665_v48 = vpop.f32.mrf.mxu0  ;;  %v6999_v15 = vld [vmem:[#allocation40_spill] sm:$0xff]  ;;  %v5674_v36 = vpop.f32.mrf.mxu2 }
 0x2aa   : > { %6998 = vst [vmem:[#allocation38_spill] sm:$0xff] %v5665_v48  ;;  %v1088_v49 = vmul.f32 %v6999_v15, %v6999_v15  ;;  %v2444_v8 = vmul.f32 %v5665_v48, %v5665_v48  ;;  %4072 = vmatmul.msk.f32.gmra.mxu1 %vm412_vm0, %v5665_v48  ;;  %v7000_v15 = vld [vmem:[#allocation47_spill] sm:$0xff] }
 0x2ab   : > { %v2003_v30 = vmul.f32 %v5583_v58, %v1968_v26  ;;  %v6997_v26 = vld [vmem:[#allocation9_spill] sm:$0xff]  ;;  %v1057_v48 = vmul.f32 0.03125, %v7000_v15 }
 0x2ac   : > { %v1937_v32 = vsub.f32 %v6997_v26, %v5334_v44  ;;  %v1120_v26 = vsub.f32 %v1056_v35, %v1088_v49  ;;  %v5686_v35 = vpop.eup %4308  ;;  %v7001_v49 = vld [vmem:[#allocation41_spill] sm:$0xff] }
 0x2ad   : > { %v2038_v4 = vadd.f32 %v5601_v25, %v2003_v30  ;;  %4013 = vmatmul.msk.f32.gmra.mxu3 %vm1512_vm2, %v1381_v23  ;;  %v1387_v30 = vmul.f32 %v5568_v61, %v1386_v21  ;;  %v1395_v23 = vmul.f32 0.5, %v1394_v50  ;;  %v1404_v50 = vmul.f32 %v5650_v10, %v1403_v37 }
 0x2ae   : > { %vm1419_vm13 = vweird.f32 %v5686_v35 }
 0x2af   : > { %2070 = vst.msk [vmem:[%s5613_s11 + $0x8] sm:$0xff] %vm412_vm0, %v2038_v4  ;;  %4104 = vmatmul.msk.f32.gmra.mxu2 %vm412_vm0, %v2444_v8  ;;  %v5678_v4 = vadd.f32 1e-05, %v1151_v39  ;;  %v1391_v33 = vsel %vm1390_vm6, %v5568_v61, %v1387_v30  ;;  %v1152_v39 = vmax.f32 %v1120_v26, 0.0  ;;  %v7002_v8 = vld [vmem:[#allocation11_spill] sm:$0xff]  ;;  %v1405_v61 = vmul.f32 0.5, %v1404_v50  ;;  %vm1420_vm15 = vmor %vm1418_vm14, %vm1419_vm13 }
 0x2b0   : > { %v1845_v51 = vpop.f32.mrf.mxu3  ;;  %v1938_v37 = vsub.f32 %v7002_v8, %v5374_v54  ;;  %v7006_v8 = vld [vmem:[#allocation43_spill] sm:$0xff] }
 0x2b1   : > { %v1969_v44 = vmul.f32 %v1937_v32, %v1845_v51  ;;  %v1396_v32 = vsub.f32 1.5, %v1395_v23  ;;  %v1089_v51 = vmul.f32 %v7001_v49, %v7001_v49  ;;  %4310 = vrsqrt.f32 %v5678_v4  ;;  %v5698_v30 = vpop.f32.mrf.mxu0  ;;  %v7005_v49 = vld [vmem:[#allocation4_spill] sm:$0xff] }
 0x2b2   : > { %7003 = vst [vmem:[#allocation42_spill] sm:$0xff] %v5698_v30  ;;  %v1413_v23 = vmul.f32 %v5686_v35, %v5645_v40  ;;  %4073 = vmatmul.msk.f32.gmra.mxu1 %vm412_vm0, %v5698_v30  ;;  %v5707_v15 = vadd.f32 1e-05, %v1152_v39  ;;  %4058 = vmatmul.msk.bf16.gmra.mxu0 %vm412_vm0, %v7005_v49  ;;  %v1059_v49 = vmul.f32 0.03125, %v5179_v42  ;;  %v1060_v40 = vmul.f32 0.03125, %v5198_v27 }
 0x2b3   : > { %v2004_v21 = vmul.f32 %v5583_v58, %v1969_v44  ;;  %v1397_v26 = vmul.f32 %v5617_v56, %v1396_v32  ;;  %vm1428_vm3 = vweird.f32 %v5678_v4 }
 0x2b4   : > { %4312 = vrsqrt.f32 %v5707_v15  ;;  %vm1438_vm6 = vweird.f32 %v5707_v15 }
 0x2b5   : > { %v2039_v53 = vadd.f32 %v5601_v25, %v2004_v21  ;;  %4014 = vmatmul.msk.f32.gmra.mxu3 %vm1512_vm2, %v1391_v33  ;;  %v1121_v33 = vsub.f32 %v1057_v48, %v1089_v51  ;;  %v2445_v21 = vmul.f32 %v5698_v30, %v5698_v30  ;;  %v5714_v48 = vpop.f32.mrf.mxu2  ;;  %v1406_v51 = vsub.f32 1.5, %v1405_v61  ;;  %v7007_v61 = vld [vmem:[#allocation13_spill] sm:$0xff] }
 0x2b6   : > { %v1401_v57 = vsel %vm1400_vm9, %v5617_v56, %v1397_v26 }
 0x2b7   : > { %2071 = vst.msk [vmem:[%s5613_s11 + $0x20] sm:$0xff] %vm412_vm0, %v2039_v53  ;;  %v7004_v53 = vld [vmem:[#allocation49_spill] sm:$0xff]  ;;  %4105 = vmatmul.msk.f32.gmra.mxu2 %vm412_vm0, %v2445_v21  ;;  %v1153_v39 = vmax.f32 %v1121_v33, 0.0  ;;  %v1939_v33 = vsub.f32 %v7007_v61, %v5407_v3  ;;  %v1407_v56 = vmul.f32 %v5650_v10, %v1406_v51  ;;  %v7009_v3 = vld [vmem:[#allocation44_spill] sm:$0xff] }
 0x2b8   : > { %v1848_v44 = vpop.f32.mrf.mxu3  ;;  %v1058_v50 = vmul.f32 0.03125, %v7004_v53  ;;  %v5723_v53 = vpop.eup %4310  ;;  %v1091_v51 = vmul.f32 %v7009_v3, %v7009_v3 }
 0x2b9   : > { %v1970_v54 = vmul.f32 %v1938_v37, %v1848_v44  ;;  %v1090_v37 = vmul.f32 %v7006_v8, %v7006_v8  ;;  %v1414_v44 = vmul.f32 %v5686_v35, %v1413_v23  ;;  %v5735_v23 = vpop.f32.mrf.mxu0  ;;  %v1423_v26 = vmul.f32 %v5723_v53, %v5678_v4 }
 0x2ba   : > { %7008 = vst [vmem:[#allocation7_spill] sm:$0xff] %v5735_v23  ;;  %v2446_v42 = vmul.f32 %v5735_v23, %v5735_v23  ;;  %4074 = vmatmul.msk.f32.gmra.mxu1 %vm412_vm0, %v5735_v23  ;;  %v1411_v61 = vsel %vm1410_vm12, %v5650_v10, %v1407_v56  ;;  %vm1429_vm1 = vweird.f32 %v5723_v53 }
 0x2bb   : > { %v2005_v32 = vmul.f32 %v5583_v58, %v1970_v54  ;;  %v1122_v54 = vsub.f32 %v1058_v50, %v1090_v37  ;;  %v1415_v50 = vmul.f32 0.5, %v1414_v44  ;;  %v5752_v44 = vpop.eup %4312  ;;  %vm1430_vm4 = vmor %vm1428_vm3, %vm1429_vm1 }
 0x2bc   : > { %vm1439_vm5 = vweird.f32 %v5752_v44 }
 0x2bd   : > { %v2040_v21 = vadd.f32 %v5601_v25, %v2005_v32  ;;  %4015 = vmatmul.msk.f32.gmra.mxu3 %vm1512_vm2, %v1401_v57  ;;  %v5739_v32 = vadd.f32 1e-05, %v1153_v39  ;;  %v1154_v57 = vmax.f32 %v1122_v54, 0.0  ;;  %v1123_v39 = vsub.f32 %v1059_v49, %v1091_v51  ;;  %v7010_v51 = vld [vmem:[#allocation15_spill] sm:$0xff]  ;;  %vm5854_vm7 = vmor %vm1438_vm6, %vm1439_vm5 }
 0x2be   : > { %v1416_v3 = vsub.f32 1.5, %v1415_v50  ;;  %v1424_v54 = vmul.f32 %v5723_v53, %v1423_v26 }
 0x2bf   : > { %2072 = vst.msk [vmem:[%s5613_s11 + $0x28] sm:$0xff] %vm412_vm0, %v2040_v21  ;;  %4106 = vmatmul.msk.f32.gmra.mxu2 %vm412_vm0, %v2446_v42  ;;  %4314 = vrsqrt.f32 %v5739_v32  ;;  %v5761_v49 = vadd.f32 1e-05, %v1154_v57  ;;  %v1155_v42 = vmax.f32 %v1123_v39, 0.0  ;;  %vm1448_vm8 = vweird.f32 %v5739_v32 }
 0x2c0   : > { %v1851_v8 = vpop.f32.mrf.mxu3  ;;  %v1417_v26 = vmul.f32 %v5686_v35, %v1416_v3  ;;  %v1425_v50 = vmul.f32 0.5, %v1424_v54  ;;  %v2335_v54 = vpop.f32.mrf.mxu1 }
 0x2c1   : > { %v1971_v37 = vmul.f32 %v1939_v33, %v1851_v8  ;;  %v5757_v33 = vpop.f32.mrf.mxu2  ;;  %v1433_v8 = vmul.f32 %v5752_v44, %v5707_v15  ;;  %v5769_v10 = vpop.f32.mrf.mxu0  ;;  %4316 = vrsqrt.f32 %v5761_v49 }
 0x2c2   : > { %7011 = vst [vmem:[#allocation39_spill] sm:$0xff] %v5769_v10  ;;  %v2447_v57 = vmul.f32 %v5769_v10, %v5769_v10  ;;  %4075 = vmatmul.msk.f32.gmra.mxu1 %vm412_vm0, %v5769_v10 }
 0x2c3   : > { %v2006_v21 = vmul.f32 %v5583_v58, %v1971_v37  ;;  %v1940_v37 = vsub.f32 %v7010_v51, %v5434_v0  ;;  %v5782_v0 = vadd.f32 1e-05, %v1155_v42  ;;  %v1434_v3 = vmul.f32 %v5752_v44, %v1433_v8 }
 0x2c4   : > { %v1426_v51 = vsub.f32 1.5, %v1425_v50  ;;  %v7013_v50 = vld [vmem:[#allocation17_spill] sm:$0xff] }
 0x2c5   : > { %v2041_v24 = vadd.f32 %v5601_v25, %v2006_v21  ;;  %4016 = vmatmul.msk.f32.gmra.mxu3 %vm1512_vm2, %v1411_v61  ;;  %v5777_v21 = vpop.eup %4314  ;;  %4318 = vrsqrt.f32 %v5782_v0  ;;  %v1435_v27 = vmul.f32 0.5, %v1434_v3 }
 0x2c6   : > { %v1427_v23 = vmul.f32 %v5723_v53, %v1426_v51  ;;  %vm1449_vm9 = vweird.f32 %v5777_v21 }
 0x2c7   : > { %2073 = vst.msk [vmem:[%s5613_s11 + $0x40] sm:$0xff] %vm412_vm0, %v2041_v24  ;;  %4107 = vmatmul.msk.f32.gmra.mxu2 %vm412_vm0, %v2447_v57  ;;  %v1421_v24 = vsel %vm1420_vm15, %v5686_v35, %v1417_v26  ;;  %v7012_v35 = vld [vmem:[#allocation46_spill] sm:$0xff]  ;;  %vm5903_vm12 = vmor %vm1448_vm8, %vm1449_vm9  ;;  %vm1458_vm15 = vweird.f32 %v5761_v49 }
 0x2c8   : > { %v1854_v56 = vpop.f32.mrf.mxu3  ;;  %v1092_v26 = vmul.f32 %v7012_v35, %v7012_v35  ;;  %v2338_v12 = vpop.f32.mrf.mxu1 }
 0x2c9   : > { %v1972_v39 = vmul.f32 %v1940_v37, %v1854_v56  ;;  %v5787_v37 = vmul.f32 0.03125, %v2335_v54  ;;  %v1443_v56 = vmul.f32 %v5777_v21, %v5739_v32  ;;  %v2576_v57 = vpop.f32.mrf.mxu2  ;;  %v1941_v54 = vsub.f32 %v7013_v50, %v5468_v11  ;;  %v5803_v10 = vpop.f32.mrf.mxu0 }
 0x2ca   : > { %v2704_v8 = vmul.f32 0.03125, %v2576_v57  ;;  %7014 = vst [vmem:[#allocation3_spill] sm:$0xff] %v5803_v10  ;;  %v2448_v30 = vmul.f32 %v5803_v10, %v5803_v10  ;;  %4076 = vmatmul.msk.f32.gmra.mxu1 %vm412_vm0, %v5803_v10  ;;  %v1124_v11 = vsub.f32 %v1060_v40, %v1092_v26  ;;  %v1436_v50 = vsub.f32 1.5, %v1435_v27 }
 0x2cb   : > { %v2007_v61 = vmul.f32 %v5583_v58, %v1972_v39  ;;  %v2736_v39 = vmul.f32 %v5787_v37, %v5787_v37  ;;  %v1444_v3 = vmul.f32 %v5777_v21, %v1443_v56  ;;  %v1431_v40 = vsel %vm1430_vm4, %v5723_v53, %v1427_v23 }
 0x2cc   : > { %v5823_v56 = vmul.f32 0.03125, %v2338_v12 }
 0x2cd   : > { %v2042_v42 = vadd.f32 %v5601_v25, %v2007_v61  ;;  %4017 = vmatmul.msk.f32.gmra.mxu3 %vm1512_vm2, %v1421_v24  ;;  %v5805_v61 = vpop.eup %4316  ;;  %v2768_v57 = vsub.f32 %v2704_v8, %v2736_v39  ;;  %v1061_v39 = vmul.f32 0.03125, %v5211_v7 }
 0x2ce   : > { %v1453_v51 = vmul.f32 %v5805_v61, %v5761_v49  ;;  %v5825_v4 = vpop.eup %4318  ;;  %v2737_v12 = vmul.f32 %v5823_v56, %v5823_v56  ;;  %vm1459_vm13 = vweird.f32 %v5805_v61 }
 0x2cf   : > { %2074 = vst.msk [vmem:[%s5613_s11 + $0x48] sm:$0xff] %vm412_vm0, %v2042_v42  ;;  %v2800_v42 = vmax.f32 %v2768_v57, 0.0  ;;  %4108 = vmatmul.msk.f32.gmra.mxu2 %vm412_vm0, %v2448_v30  ;;  %v1156_v30 = vmax.f32 %v1124_v11, 0.0  ;;  %v1445_v57 = vmul.f32 0.5, %v1444_v3  ;;  %v7016_v11 = vld [vmem:[#allocation19_spill] sm:$0xff]  ;;  %vm5964_vm1 = vmor %vm1458_vm15, %vm1459_vm13  ;;  %vm1469_vm3 = vweird.f32 %v5825_v4 }
 0x2d0   : > { %v1857_v24 = vpop.f32.mrf.mxu3 }
 0x2d1   : > { %v1973_v35 = vmul.f32 %v1941_v54, %v1857_v24  ;;  %v5821_v26 = vadd.f32 1e-05, %v2800_v42  ;;  %v7015_v54 = vld [vmem:[#allocation48_spill] sm:$0xff]  ;;  %v2579_v27 = vpop.f32.mrf.mxu2  ;;  %v1437_v42 = vmul.f32 %v5752_v44, %v1436_v50  ;;  %v5841_v3 = vpop.f32.mrf.mxu0  ;;  %v1446_v50 = vsub.f32 1.5, %v1445_v57 }
 0x2d2   : > { %v1093_v24 = vmul.f32 %v7015_v54, %v7015_v54  ;;  %v2705_v53 = vmul.f32 0.03125, %v2579_v27  ;;  %7017 = vst [vmem:[#allocation45_spill] sm:$0xff] %v5841_v3  ;;  %v2449_v27 = vmul.f32 %v5841_v3, %v5841_v3  ;;  %4077 = vmatmul.msk.f32.gmra.mxu1 %vm412_vm0, %v5841_v3 }
 0x2d3   : > { %v2008_v8 = vmul.f32 %v5583_v58, %v1973_v35  ;;  %4320 = vrsqrt.f32 %v5821_v26  ;;  %v1942_v35 = vsub.f32 %v7016_v11, %v5504_v47  ;;  %v5849_v47 = vadd.f32 1e-05, %v1156_v30 }
 0x2d4   : > { %v1125_v23 = vsub.f32 %v1061_v39, %v1093_v24  ;;  %v2769_v10 = vsub.f32 %v2705_v53, %v2737_v12  ;;  %v1441_v15 = vsel %vm5854_vm7, %v5752_v44, %v1437_v42  ;;  %v2341_v12 = vpop.f32.mrf.mxu1  ;;  %v1062_v11 = vmul.f32 0.03125, %v5229_v13  ;;  %v7020_v13 = vld [vmem:[#allocation50_spill] sm:$0xff] }
 0x2d5   : > { %v2043_v7 = vadd.f32 %v5601_v25, %v2008_v8  ;;  %4018 = vmatmul.msk.f32.gmra.mxu3 %vm1512_vm2, %v1431_v40  ;;  %v1454_v8 = vmul.f32 %v5805_v61, %v1453_v51  ;;  %v1463_v40 = vmul.f32 %v5825_v4, %v5782_v0  ;;  %4322 = vrsqrt.f32 %v5849_v47 }
 0x2d6   : > { %v2801_v24 = vmax.f32 %v2769_v10, 0.0  ;;  %v5871_v10 = vmul.f32 0.03125, %v2341_v12  ;;  %v1447_v44 = vmul.f32 %v5777_v21, %v1446_v50  ;;  %vm2870_vm10 = vweird.f32 %v5821_v26 }
 0x2d7   : > { %2075 = vst.msk [vmem:[%s5613_s11 + $0x60] sm:$0xff] %vm412_vm0, %v2043_v7  ;;  %4109 = vmatmul.msk.f32.gmra.mxu2 %vm412_vm0, %v2449_v27  ;;  %v1157_v7 = vmax.f32 %v1125_v23, 0.0  ;;  %v1455_v57 = vmul.f32 0.5, %v1454_v8  ;;  %v1094_v27 = vmul.f32 %v7020_v13, %v7020_v13  ;;  %vm1468_vm7 = vweird.f32 %v5782_v0 }
 0x2d8   : > { %v1860_v54 = vpop.f32.mrf.mxu3  ;;  %vm6014_vm8 = vmor %vm1468_vm7, %vm1469_vm3  ;;  %vm1478_vm13 = vweird.f32 %v5849_v47 }
 0x2d9   : > { %v1974_v39 = vmul.f32 %v1942_v35, %v1860_v54  ;;  %v5865_v53 = vpop.eup %4320  ;;  %v1464_v35 = vmul.f32 %v5825_v4, %v1463_v40  ;;  %v5869_v54 = vadd.f32 1e-05, %v2801_v24  ;;  %v2582_v8 = vpop.f32.mrf.mxu2  ;;  %v2738_v40 = vmul.f32 %v5871_v10, %v5871_v10  ;;  %v7021_v24 = vld [vmem:[#allocation21_spill] sm:$0xff] }
 0x2da   : > { %v2865_v42 = vmul.f32 %v5865_v53, %v5821_v26  ;;  %v5884_v51 = vadd.f32 1e-05, %v1157_v7  ;;  %v1456_v50 = vsub.f32 1.5, %v1455_v57  ;;  %v5891_v12 = vpop.f32.mrf.mxu0  ;;  %v1126_v3 = vsub.f32 %v1062_v11, %v1094_v27 }
 0x2db   : > { %v2009_v30 = vmul.f32 %v5583_v58, %v1974_v39  ;;  %4324 = vrsqrt.f32 %v5869_v54  ;;  %v2706_v39 = vmul.f32 0.03125, %v2582_v8  ;;  %v1465_v31 = vmul.f32 0.5, %v1464_v35  ;;  %4078 = vmatmul.msk.f32.gmra.mxu1 %vm412_vm0, %v5891_v12  ;;  %v5909_v11 = vpop.eup %4322 }
 0x2dc   : > { %v2450_v29 = vmul.f32 %v5891_v12, %v5891_v12  ;;  %vm2871_vm11 = vweird.f32 %v5865_v53  ;;  %4326 = vrsqrt.f32 %v5884_v51  ;;  %vm2880_vm4 = vweird.f32 %v5869_v54 }
 0x2dd   : > { %v2044_v23 = vadd.f32 %v5601_v25, %v2009_v30  ;;  %4019 = vmatmul.msk.f32.gmra.mxu3 %vm1512_vm2, %v1441_v15  ;;  %v1943_v30 = vsub.f32 %v7021_v24, %v5537_v59  ;;  %v2866_v15 = vmul.f32 %v5865_v53, %v2865_v42  ;;  %v2770_v20 = vsub.f32 %v2706_v39, %v2738_v40  ;;  %v2344_v42 = vpop.f32.mrf.mxu1  ;;  %vm5921_vm14 = vmor %vm2870_vm10, %vm2871_vm11 }
 0x2de   : > { %v1158_v40 = vmax.f32 %v1126_v3, 0.0  ;;  %v1457_v39 = vmul.f32 %v5805_v61, %v1456_v50  ;;  %v5927_v24 = vmul.f32 0.03125, %v2344_v42  ;;  %v1473_v50 = vmul.f32 %v5909_v11, %v5849_v47 }
 0x2df   : > { %2076 = vst.msk [vmem:[%s5613_s11 + $0x68] sm:$0xff] %vm412_vm0, %v2044_v23  ;;  %v2867_v8 = vmul.f32 0.5, %v2866_v15  ;;  %v2802_v57 = vmax.f32 %v2770_v20, 0.0  ;;  %4110 = vmatmul.msk.f32.gmra.mxu2 %vm412_vm0, %v2450_v29  ;;  %v1451_v23 = vsel %vm5903_vm12, %v5777_v21, %v1447_v44  ;;  %v1466_v44 = vsub.f32 1.5, %v1465_v31  ;;  %v7027_v29 = vld [vmem:[#allocation52_spill] sm:$0xff] }
 0x2e0   : > { %v1863_v13 = vpop.f32.mrf.mxu3  ;;  %v2739_v15 = vmul.f32 %v5927_v24, %v5927_v24  ;;  %vm1479_vm9 = vweird.f32 %v5909_v11 }
 0x2e1   : > { %v1975_v7 = vmul.f32 %v1943_v30, %v1863_v13  ;;  %v2868_v32 = vsub.f32 1.5, %v2867_v8  ;;  %v5916_v27 = vpop.eup %4324  ;;  %v5925_v20 = vadd.f32 1e-05, %v2802_v57  ;;  %v2585_v30 = vpop.f32.mrf.mxu2  ;;  %v7026_v8 = vld [vmem:[#allocation23_spill] sm:$0xff] }
 0x2e2   : > { %v2875_v3 = vmul.f32 %v5916_v27, %v5869_v54  ;;  %v2707_v13 = vmul.f32 0.03125, %v2585_v30  ;;  %v1944_v31 = vsub.f32 %v7026_v8, %v5570_v34  ;;  %v5944_v59 = vpop.f32.mrf.mxu0  ;;  %v5958_v34 = vpop.eup %4326  ;;  %v1467_v30 = vmul.f32 %v5825_v4, %v1466_v44 }
 0x2e3   : > { %v2010_v35 = vmul.f32 %v5583_v58, %v1975_v7  ;;  %v2869_v26 = vmul.f32 %v5865_v53, %v2868_v32  ;;  %4328 = vrsqrt.f32 %v5925_v20  ;;  %v1063_v7 = vmul.f32 0.03125, %v5250_v1  ;;  %4079 = vmatmul.msk.f32.gmra.mxu1 %vm412_vm0, %v5944_v59 }
 0x2e4   : > { %v2771_v42 = vsub.f32 %v2707_v13, %v2739_v15  ;;  %v2451_v1 = vmul.f32 %v5944_v59, %v5944_v59  ;;  %v1474_v8 = vmul.f32 %v5909_v11, %v1473_v50  ;;  %vm2881_vm5 = vweird.f32 %v5916_v27 }
 0x2e5   : > { %v2045_v21 = vadd.f32 %v5601_v25, %v2010_v35  ;;  %4020 = vmatmul.msk.f32.gmra.mxu3 %vm1512_vm2, %v1451_v23  ;;  %v2873_v57 = vsel %vm5921_vm14, %v5865_v53, %v2869_v26  ;;  %v2876_v35 = vmul.f32 %v5916_v27, %v2875_v3  ;;  %v5950_v23 = vadd.f32 1e-05, %v1158_v40  ;;  %vm2882_vm6 = vmor %vm2880_vm4, %vm2881_vm5 }
 0x2e6   : > { %4157 = vmatmul.msk.f32.vlgmr.msra.gmra.mxu0 %vm1512_vm2, %v2873_v57  ;;  %v1095_v53 = vmul.f32 %v7027_v29, %v7027_v29  ;;  %v1461_v3 = vsel %vm5964_vm1, %v5805_v61, %v1457_v39  ;;  %v2803_v26 = vmax.f32 %v2771_v42, 0.0  ;;  %vm2890_vm10 = vweird.f32 %v5925_v20  ;;  %vm1480_vm14 = vmor %vm1478_vm13, %vm1479_vm9 }
 0x2e7   : > { %2077 = vst.msk [vmem:[%s5613_s11 + $0x80] sm:$0xff] %vm412_vm0, %v2045_v21  ;;  %v2877_v49 = vmul.f32 0.5, %v2876_v35  ;;  %4111 = vmatmul.msk.f32.gmra.mxu2 %vm412_vm0, %v2451_v1  ;;  %v1483_v35 = vmul.f32 %v5958_v34, %v5884_v51  ;;  %4330 = vrsqrt.f32 %v5950_v23  ;;  %vm1489_vm15 = vweird.f32 %v5958_v34 }
 0x2e8   : > { %v1866_v32 = vpop.f32.mrf.mxu3  ;;  %v1127_v15 = vsub.f32 %v1063_v7, %v1095_v53  ;;  %v5981_v61 = vadd.f32 1e-05, %v2803_v26  ;;  %vm1488_vm5 = vweird.f32 %v5884_v51 }
 0x2e9   : > { %v1976_v21 = vmul.f32 %v1944_v31, %v1866_v32  ;;  %v2347_v31 = vpop.f32.mrf.mxu1  ;;  %v2878_v57 = vsub.f32 1.5, %v2877_v49  ;;  %v5976_v32 = vpop.eup %4328  ;;  %v1475_v49 = vmul.f32 0.5, %v1474_v8 }
 0x2ea   : > { %v5983_v39 = vmul.f32 0.03125, %v2347_v31  ;;  %v2885_v50 = vmul.f32 %v5976_v32, %v5925_v20  ;;  %v2588_v7 = vpop.f32.mrf.mxu2  ;;  %4332 = vrsqrt.f32 %v5981_v61  ;;  %v1159_v53 = vmax.f32 %v1127_v15, 0.0 }
 0x2eb   : > { %v2011_v13 = vmul.f32 %v5583_v58, %v1976_v21  ;;  %v2879_v42 = vmul.f32 %v5916_v27, %v2878_v57  ;;  %v2708_v29 = vmul.f32 0.03125, %v2588_v7  ;;  %v7030_v21 = vld [vmem:[#allocation25_spill] sm:$0xff]  ;;  %v1471_v7 = vsel %vm6014_vm8, %v5825_v4, %v1467_v30 }
 0x2ec   : > { %v2740_v1 = vmul.f32 %v5983_v39, %v5983_v39  ;;  %v1945_v40 = vsub.f32 %v7030_v21, %v5625_v55  ;;  %v2886_v54 = vmul.f32 %v5976_v32, %v2885_v50  ;;  %v6020_v50 = vadd.f32 1e-05, %v1159_v53 }
 0x2ed   : > { %v2046_v44 = vadd.f32 %v5601_v25, %v2011_v13  ;;  %4021 = vmatmul.msk.f32.gmra.mxu3 %vm1512_vm2, %v1461_v3  ;;  %v5999_v3 = vpop.f32.mrf.mxu0  ;;  %v1484_v13 = vmul.f32 %v5958_v34, %v1483_v35  ;;  %v2883_v15 = vsel %vm2882_vm6, %v5916_v27, %v2879_v42  ;;  %v1476_v21 = vsub.f32 1.5, %v1475_v49  ;;  %vm1490_vm6 = vmor %vm1488_vm5, %vm1489_vm15 }
 0x2ee   : > { %v2772_v31 = vsub.f32 %v2708_v29, %v2740_v1  ;;  %v2452_v57 = vmul.f32 %v5999_v3, %v5999_v3  ;;  %4080 = vmatmul.msk.f32.gmra.mxu1 %vm412_vm0, %v5999_v3  ;;  %4158 = vmatmul.msk.f32.gmra.mxu0 %vm1512_vm2, %v2883_v15  ;;  %v2887_v8 = vmul.f32 0.5, %v2886_v54  ;;  %vm2891_vm11 = vweird.f32 %v5976_v32  ;;  %v7033_v15 = vld [vmem:[#allocation27_spill] sm:$0xff] }
 0x2ef   : > { %2078 = vst.msk [vmem:[%s5613_s11 + $0x88] sm:$0xff] %vm412_vm0, %v2046_v44  ;;  %v6010_v44 = vpop.eup %4330  ;;  %vm2892_vm12 = vmor %vm2890_vm10, %vm2891_vm11  ;;  %vm2900_vm1 = vweird.f32 %v5981_v61  ;;  %vm1498_vm11 = vweird.f32 %v5950_v23 }
 0x2f0   : > { %v1869_v26 = vpop.f32.mrf.mxu3  ;;  %v2804_v27 = vmax.f32 %v2772_v31, 0.0  ;;  %4112 = vmatmul.msk.f32.gmra.mxu2 %vm412_vm0, %v2452_v57  ;;  %v2888_v1 = vsub.f32 1.5, %v2887_v8  ;;  %v6026_v29 = vpop.eup %4332  ;;  %vm1499_vm9 = vweird.f32 %v6010_v44 }
 0x2f1   : > { %v1977_v55 = vmul.f32 %v1945_v40, %v1869_v26  ;;  %v2350_v42 = vpop.f32.mrf.mxu1  ;;  %v1485_v40 = vmul.f32 0.5, %v1484_v13  ;;  %v2895_v31 = vmul.f32 %v6026_v29, %v5981_v61  ;;  %v1493_v13 = vmul.f32 %v6010_v44, %v5950_v23 }
 0x2f2   : > { %v6028_v54 = vadd.f32 1e-05, %v2804_v27  ;;  %v6030_v26 = vmul.f32 0.03125, %v2350_v42  ;;  %v2591_v57 = vpop.f32.mrf.mxu2  ;;  %v2889_v4 = vmul.f32 %v5976_v32, %v2888_v1  ;;  %v1477_v27 = vmul.f32 %v5909_v11, %v1476_v21 }
 0x2f3   : > { %v2012_v0 = vmul.f32 %v5583_v58, %v1977_v55  ;;  %v2709_v49 = vmul.f32 0.03125, %v2591_v57  ;;  %v1946_v55 = vsub.f32 %v7033_v15, %v5674_v36  ;;  %v2896_v20 = vmul.f32 %v6026_v29, %v2895_v31 }
 0x2f4   : > { %4334 = vrsqrt.f32 %v6028_v54  ;;  %v2741_v30 = vmul.f32 %v6030_v26, %v6030_v26  ;;  %v2893_v42 = vsel %vm2892_vm12, %v5976_v32, %v2889_v4  ;;  %v1486_v31 = vsub.f32 1.5, %v1485_v40  ;;  %vm1500_vm12 = vmor %vm1498_vm11, %vm1499_vm9 }
 0x2f5   : > { %v2047_v53 = vadd.f32 %v5601_v25, %v2012_v0  ;;  %4022 = vmatmul.msk.f32.gmra.mxu3 %vm1512_vm2, %v1471_v7  ;;  %4336 = vrsqrt.f32 %v6020_v50  ;;  %v6049_v8 = vpop.f32.mrf.mxu0  ;;  %v2897_v1 = vmul.f32 0.5, %v2896_v20  ;;  %v1494_v32 = vmul.f32 %v6010_v44, %v1493_v13 }
 0x2f6   : > { %v2773_v0 = vsub.f32 %v2709_v49, %v2741_v30  ;;  %v2453_v7 = vmul.f32 %v6049_v8, %v6049_v8  ;;  %4081 = vmatmul.msk.f32.gmra.mxu1 %vm412_vm0, %v6049_v8  ;;  %4159 = vmatmul.msk.f32.gmra.mxu0 %vm1512_vm2, %v2893_v42  ;;  %v1481_v49 = vsel %vm1480_vm14, %v5909_v11, %v1477_v27  ;;  %vm2901_vm3 = vweird.f32 %v6026_v29 }
 0x2f7   : > { %2079 = vst.msk [vmem:[%s5613_s11 + $0xa0] sm:$0xff] %vm412_vm0, %v2047_v53  ;;  %v2898_v4 = vsub.f32 1.5, %v2897_v1  ;;  %v1487_v42 = vmul.f32 %v5958_v34, %v1486_v31  ;;  %vm2902_vm4 = vmor %vm2900_vm1, %vm2901_vm3  ;;  %vm2910_vm7 = vweird.f32 %v6028_v54  ;;  %vm1508_vm3 = vweird.f32 %v6020_v50 }
 0x2f8   : > { %v1872_v35 = vpop.f32.mrf.mxu3  ;;  %v2805_v53 = vmax.f32 %v2773_v0, 0.0  ;;  %4113 = vmatmul.msk.f32.gmra.mxu2 %vm412_vm0, %v2453_v7  ;;  %v7034_v0 = vld [vmem:[#allocation29_spill] sm:$0xff] }
 0x2f9   : > { %v1978_v36 = vmul.f32 %v1946_v55, %v1872_v35  ;;  %v2353_v57 = vpop.f32.mrf.mxu1  ;;  %v2899_v35 = vmul.f32 %v6026_v29, %v2898_v4  ;;  %v1947_v7 = vsub.f32 %v7034_v0, %v5714_v48 }
 0x2fa   : > { %v6065_v30 = vpop.eup %4334  ;;  %v6069_v47 = vadd.f32 1e-05, %v2805_v53  ;;  %v6071_v15 = vmul.f32 0.03125, %v2353_v57  ;;  %v2594_v13 = vpop.f32.mrf.mxu2 }
 0x2fb   : > { %v2013_v21 = vmul.f32 %v5583_v58, %v1978_v36  ;;  %v6073_v55 = vpop.eup %4336  ;;  %v2905_v40 = vmul.f32 %v6065_v30, %v6028_v54  ;;  %v2710_v27 = vmul.f32 0.03125, %v2594_v13  ;;  %v1495_v36 = vmul.f32 0.5, %v1494_v32 }
 0x2fc   : > { %4338 = vrsqrt.f32 %v6069_v47  ;;  %v2742_v11 = vmul.f32 %v6071_v15, %v6071_v15  ;;  %v1503_v53 = vmul.f32 %v6073_v55, %v6020_v50  ;;  %v2903_v48 = vsel %vm2902_vm4, %v6026_v29, %v2899_v35 }
 0x2fd   : > { %v2048_v20 = vadd.f32 %v5601_v25, %v2013_v21  ;;  %4023 = vmatmul.msk.f32.gmra.mxu3 %vm1512_vm2, %v1481_v49  ;;  %v6090_v1 = vpop.f32.mrf.mxu0  ;;  %v2906_v61 = vmul.f32 %v6065_v30, %v2905_v40  ;;  %v1496_v40 = vsub.f32 1.5, %v1495_v36  ;;  %vm2911_vm8 = vweird.f32 %v6065_v30 }
 0x2fe   : > { %v2774_v57 = vsub.f32 %v2710_v27, %v2742_v11  ;;  %v2454_v4 = vmul.f32 %v6090_v1, %v6090_v1  ;;  %4082 = vmatmul.msk.f32.gmra.mxu1 %vm412_vm0, %v6090_v1  ;;  %4160 = vmatmul.msk.f32.gmra.mxu0 %vm1512_vm2, %v2903_v48  ;;  %v1491_v11 = vsel %vm1490_vm6, %v5958_v34, %v1487_v42  ;;  %vm2912_vm10 = vmor %vm2910_vm7, %vm2911_vm8  ;;  %vm2920_vm13 = vweird.f32 %v6069_v47 }
 0x2ff   : > { %2080 = vst.msk [vmem:[%s5613_s11 + $0xa8] sm:$0xff] %vm412_vm0, %v2048_v20  ;;  %v2907_v32 = vmul.f32 0.5, %v2906_v61  ;;  %v1504_v27 = vmul.f32 %v6073_v55, %v1503_v53  ;;  %v7035_v53 = vld [vmem:[#allocation31_spill] sm:$0xff]  ;;  %vm1509_vm15 = vweird.f32 %v6073_v55 }
 0x300   : > { %v1875_v21 = vpop.f32.mrf.mxu3  ;;  %v2806_v49 = vmax.f32 %v2774_v57, 0.0  ;;  %4114 = vmatmul.msk.f32.gmra.mxu2 %vm412_vm0, %v2454_v4  ;;  %v1948_v57 = vsub.f32 %v7035_v53, %v5757_v33  ;;  %v1497_v4 = vmul.f32 %v6010_v44, %v1496_v40  ;;  %vm1510_vm4 = vmor %vm1508_vm3, %vm1509_vm15 }
 0x301   : > { %v1979_v31 = vmul.f32 %v1947_v7, %v1875_v21  ;;  %v2356_v13 = vpop.f32.mrf.mxu1  ;;  %v2908_v29 = vsub.f32 1.5, %v2907_v32  ;;  %v1505_v32 = vmul.f32 0.5, %v1504_v27 }
 0x302   : > { %v6106_v35 = vpop.eup %4338  ;;  %v6110_v0 = vadd.f32 1e-05, %v2806_v49  ;;  %v6112_v51 = vmul.f32 0.03125, %v2356_v13  ;;  %v2597_v61 = vpop.f32.mrf.mxu2 }
 0x303   : > { %v2014_v20 = vmul.f32 %v5583_v58, %v1979_v31  ;;  %v2915_v36 = vmul.f32 %v6106_v35, %v6069_v47  ;;  %v2909_v21 = vmul.f32 %v6065_v30, %v2908_v29  ;;  %v2711_v42 = vmul.f32 0.03125, %v2597_v61 }
 0x304   : > { %4340 = vrsqrt.f32 %v6110_v0  ;;  %v2743_v34 = vmul.f32 %v6112_v51, %v6112_v51  ;;  %v1506_v61 = vsub.f32 1.5, %v1505_v32  ;;  %vm2921_vm14 = vweird.f32 %v6106_v35 }
 0x305   : > { %v2049_v7 = vadd.f32 %v5601_v25, %v2014_v20  ;;  %4024 = vmatmul.msk.f32.gmra.mxu3 %vm1512_vm2, %v1491_v11  ;;  %v6130_v48 = vpop.f32.mrf.mxu0  ;;  %v2916_v54 = vmul.f32 %v6106_v35, %v2915_v36  ;;  %v2913_v13 = vsel %vm2912_vm10, %v6065_v30, %v2909_v21  ;;  %v1501_v36 = vsel %vm1500_vm12, %v6010_v44, %v1497_v4  ;;  %v7036_v4 = vld [vmem:[#allocation51_spill] sm:$0xff]  ;;  %vm2922_vm1 = vmor %vm2920_vm13, %vm2921_vm14 }
 0x306   : > { %v2775_v49 = vsub.f32 %v2711_v42, %v2743_v34  ;;  %v2455_v20 = vmul.f32 %v6130_v48, %v6130_v48  ;;  %4083 = vmatmul.msk.f32.gmra.mxu1 %vm412_vm0, %v6130_v48  ;;  %4161 = vmatmul.msk.f32.gmra.mxu0 %vm1512_vm2, %v2913_v13  ;;  %vm2930_vm5 = vweird.f32 %v6110_v0 }
 0x307   : > { %2081 = vst.msk [vmem:[%s5613_s11 + $0xc0] sm:$0xff] %vm412_vm0, %v2049_v7  ;;  %v2917_v40 = vmul.f32 0.5, %v2916_v54 }
 0x308   : > { %v1878_v31 = vpop.f32.mrf.mxu3  ;;  %v2807_v29 = vmax.f32 %v2775_v49, 0.0  ;;  %4115 = vmatmul.msk.f32.gmra.mxu2 %vm412_vm0, %v2455_v20  ;;  %v1507_v49 = vmul.f32 %v6073_v55, %v1506_v61 }
 0x309   : > { %v1980_v33 = vmul.f32 %v1948_v57, %v1878_v31  ;;  %v2359_v27 = vpop.f32.mrf.mxu1  ;;  %v2918_v7 = vsub.f32 1.5, %v2917_v40 }
 0x30a   : > { %v6144_v30 = vpop.eup %4340  ;;  %v6147_v21 = vadd.f32 1e-05, %v2807_v29  ;;  %v6149_v34 = vmul.f32 0.03125, %v2359_v27  ;;  %v2600_v42 = vpop.f32.mrf.mxu2  ;;  %v6181_v27 = vld [vmem:[%s6855_s5] ss:$0 sm:$0xff] }
 0x30b   : > { %v2015_v11 = vmul.f32 %v5583_v58, %v1980_v33  ;;  %v2925_v58 = vmul.f32 %v6144_v30, %v6110_v0  ;;  %v2919_v53 = vmul.f32 %v6106_v35, %v2918_v7  ;;  %v2712_v57 = vmul.f32 0.03125, %v2600_v42  ;;  %v6194_v42 = vld [vmem:[%s6856_s6] ss:$0 sm:$0xff] }
 0x30c   : > { %4342 = vrsqrt.f32 %v6147_v21  ;;  %v2744_v44 = vmul.f32 %v6149_v34, %v6149_v34  ;;  %vm2931_vm6 = vweird.f32 %v6144_v30  ;;  %vm2940_vm8 = vweird.f32 %v6147_v21 }
 0x30d   : > { %v2050_v23 = vadd.f32 %v5601_v25, %v2015_v11  ;;  %4025 = vmatmul.msk.f32.gmra.mxu3 %vm1512_vm2, %v1501_v36  ;;  %v7037_v25 = vld [vmem:[#allocation33_spill] sm:$0xff]  ;;  %v6166_v31 = vpop.f32.mrf.mxu0  ;;  %v2926_v47 = vmul.f32 %v6144_v30, %v2925_v58  ;;  %v2923_v33 = vsel %vm2922_vm1, %v6106_v35, %v2919_v53  ;;  %vm2932_vm7 = vmor %vm2930_vm5, %vm2931_vm6 }
 0x30e   : > { %v1949_v54 = vsub.f32 %v7037_v25, %v7036_v4  ;;  %v2776_v20 = vsub.f32 %v2712_v57, %v2744_v44  ;;  %v2456_v13 = vmul.f32 %v6166_v31, %v6166_v31  ;;  %4084 = vmatmul.msk.f32.gmra.mxu1 %vm412_vm0, %v6166_v31  ;;  %4162 = vmatmul.msk.f32.gmra.mxu0 %vm1512_vm2, %v2923_v33 }
 0x30f   : > { %2082 = vst.msk [vmem:[%s5613_s11 + $0xc8] sm:$0xff] %vm412_vm0, %v2050_v23  ;;  %v2927_v29 = vmul.f32 0.5, %v2926_v47  ;;  %v1511_v23 = vsel %vm1510_vm4, %v6073_v55, %v1507_v49  ;;  %v7039_v47 = vld [vmem:[#allocation35_spill] sm:$0xff] }
 0x310   : > { %v1881_v32 = vpop.f32.mrf.mxu3  ;;  %v2808_v11 = vmax.f32 %v2776_v20, 0.0  ;;  %4116 = vmatmul.msk.f32.gmra.mxu2 %vm412_vm0, %v2456_v13 }
 0x311   : > { %v1981_v40 = vmul.f32 %v1949_v54, %v1881_v32  ;;  %v2362_v35 = vpop.f32.mrf.mxu1  ;;  %v2928_v36 = vsub.f32 1.5, %v2927_v29  ;;  %v7038_v54 = vld [vmem:[#allocation53_spill] sm:$0xff] }
 0x312   : > { %v4343_v61 = vpop.eup %4342  ;;  %v6187_v50 = vadd.f32 1e-05, %v2808_v11  ;;  %v6189_v58 = vmul.f32 0.03125, %v2362_v35  ;;  %v2603_v57 = vpop.f32.mrf.mxu2  ;;  %v1950_v32 = vsub.f32 %v7039_v47, %v7038_v54 }
 0x313   : > { %v2016_v7 = vmul.f32 %v6181_v27, %v1981_v40  ;;  %v2935_v44 = vmul.f32 %v4343_v61, %v6147_v21  ;;  %v2929_v4 = vmul.f32 %v6144_v30, %v2928_v36  ;;  %v2713_v25 = vmul.f32 0.03125, %v2603_v57 }
 0x314   : > { %4344 = vrsqrt.f32 %v6187_v50  ;;  %v2745_v55 = vmul.f32 %v6189_v58, %v6189_v58  ;;  %vm2941_vm9 = vweird.f32 %v4343_v61  ;;  %vm2950_vm11 = vweird.f32 %v6187_v50 }
 0x315   : > { %v2051_v53 = vadd.f32 %v6194_v42, %v2016_v7  ;;  %4026 = vmatmul.msk.f32.gmra.mxu3 %vm1512_vm2, %v1511_v23  ;;  %v6209_v49 = vpop.f32.mrf.mxu0  ;;  %v2936_v20 = vmul.f32 %v4343_v61, %v2935_v44  ;;  %v2933_v40 = vsel %vm2932_vm7, %v6144_v30, %v2929_v4  ;;  %vm2942_vm10 = vmor %vm2940_vm8, %vm2941_vm9 }
 0x316   : > { %v2777_v33 = vsub.f32 %v2713_v25, %v2745_v55  ;;  %v2457_v0 = vmul.f32 %v6209_v49, %v6209_v49  ;;  %4085 = vmatmul.msk.f32.gmra.mxu1 %vm412_vm0, %v6209_v49  ;;  %4163 = vmatmul.msk.f32.gmra.mxu0 %vm1512_vm2, %v2933_v40 }
 0x317   : > { %2083 = vst.msk [vmem:[%s5613_s11 + $0xe0] sm:$0xff] %vm412_vm0, %v2051_v53  ;;  %v2937_v11 = vmul.f32 0.5, %v2936_v20 }
 0x318   : > { %v1884_v13 = vpop.f32.mrf.mxu3  ;;  %v2809_v7 = vmax.f32 %v2777_v33, 0.0  ;;  %4117 = vmatmul.msk.f32.gmra.mxu2 %vm412_vm0, %v2457_v0 }
 0x319   : > { %v1982_v29 = vmul.f32 %v1950_v32, %v1884_v13  ;;  %v2365_v36 = vpop.f32.mrf.mxu1  ;;  %v2938_v23 = vsub.f32 1.5, %v2937_v11  ;;  %v7040_v32 = vld [vmem:[#allocation6_spill] sm:$0xff] }
 0x31a   : > { %v4345_v53 = vpop.eup %4344  ;;  %v6219_v44 = vadd.f32 1e-05, %v2809_v7  ;;  %v6221_v57 = vmul.f32 0.03125, %v2365_v36  ;;  %v2606_v55 = vpop.f32.mrf.mxu2  ;;  %v1951_v20 = vsub.f32 %v7040_v32, %v5204_v45 }
 0x31b   : > { %v2017_v35 = vmul.f32 %v6181_v27, %v1982_v29  ;;  %v2945_v4 = vmul.f32 %v4345_v53, %v6187_v50  ;;  %v2939_v25 = vmul.f32 %v4343_v61, %v2938_v23  ;;  %v2714_v47 = vmul.f32 0.03125, %v2606_v55 }
 0x31c   : > { %4346 = vrsqrt.f32 %v6219_v44  ;;  %v2746_v54 = vmul.f32 %v6221_v57, %v6221_v57  ;;  %vm2951_vm12 = vweird.f32 %v4345_v53  ;;  %vm2960_vm14 = vweird.f32 %v6219_v44 }
 0x31d   : > { %v2052_v30 = vadd.f32 %v6194_v42, %v2017_v35  ;;  %4124 = vmatmul.msk.f32.vlgmr.msra.gmra.mxu3 %vm1512_vm2, %v5787_v37  ;;  %v2946_v13 = vmul.f32 %v4345_v53, %v2945_v4  ;;  %v6235_v37 = vpop.f32.mrf.mxu0  ;;  %v2943_v40 = vsel %vm2942_vm10, %v4343_v61, %v2939_v25  ;;  %vm2952_vm13 = vmor %vm2950_vm11, %vm2951_vm12 }
 0x31e   : > { %v2778_v0 = vsub.f32 %v2714_v47, %v2746_v54  ;;  %v2458_v21 = vmul.f32 %v6235_v37, %v6235_v37  ;;  %4086 = vmatmul.msk.f32.gmra.mxu1 %vm412_vm0, %v6235_v37  ;;  %4164 = vmatmul.msk.f32.gmra.mxu0 %vm1512_vm2, %v2943_v40 }
 0x31f   : > { %2084 = vst.msk [vmem:[%s5613_s11 + $0xe8] sm:$0xff] %vm412_vm0, %v2052_v30  ;;  %v2947_v11 = vmul.f32 0.5, %v2946_v13 }
 0x320   : > { %v1887_v33 = vpop.f32.mrf.mxu3  ;;  %v2810_v45 = vmax.f32 %v2778_v0, 0.0  ;;  %4118 = vmatmul.msk.f32.gmra.mxu2 %vm412_vm0, %v2458_v21 }
 0x321   : > { %v1983_v29 = vmul.f32 %v1951_v20, %v1887_v33  ;;  %v2368_v35 = vpop.f32.mrf.mxu1  ;;  %v2948_v36 = vsub.f32 1.5, %v2947_v11  ;;  %v7041_v20 = vld [vmem:[#allocation8_spill] sm:$0xff] }
 0x322   : > { %v4347_v23 = vpop.eup %4346  ;;  %v6244_v30 = vadd.f32 1e-05, %v2810_v45  ;;  %v6246_v4 = vmul.f32 0.03125, %v2368_v35  ;;  %v2609_v25 = vpop.f32.mrf.mxu2  ;;  %v1952_v13 = vsub.f32 %v7041_v20, %v5217_v9 }
 0x323   : > { %v2018_v7 = vmul.f32 %v6181_v27, %v1983_v29  ;;  %v2955_v55 = vmul.f32 %v4347_v23, %v6219_v44  ;;  %v2949_v54 = vmul.f32 %v4345_v53, %v2948_v36  ;;  %v2715_v32 = vmul.f32 0.03125, %v2609_v25 }
 0x324   : > { %4348 = vrsqrt.f32 %v6244_v30  ;;  %v2747_v47 = vmul.f32 %v6246_v4, %v6246_v4  ;;  %vm2961_vm15 = vweird.f32 %v4347_v23  ;;  %vm2970_vm3 = vweird.f32 %v6244_v30 }
 0x325   : > { %v2053_v61 = vadd.f32 %v6194_v42, %v2018_v7  ;;  %4125 = vmatmul.msk.f32.gmra.mxu3 %vm1512_vm2, %v5823_v56  ;;  %v2956_v33 = vmul.f32 %v4347_v23, %v2955_v55  ;;  %v6260_v56 = vpop.f32.mrf.mxu0  ;;  %v2953_v40 = vsel %vm2952_vm13, %v4345_v53, %v2949_v54  ;;  %vm2962_vm1 = vmor %vm2960_vm14, %vm2961_vm15 }
 0x326   : > { %v2779_v21 = vsub.f32 %v2715_v32, %v2747_v47  ;;  %v2459_v50 = vmul.f32 %v6260_v56, %v6260_v56  ;;  %4087 = vmatmul.msk.f32.gmra.mxu1 %vm412_vm0, %v6260_v56  ;;  %4165 = vmatmul.msk.f32.gmra.mxu0 %vm1512_vm2, %v2953_v40 }
 0x327   : > { %2085 = vst.msk [vmem:[%s5613_s11 + $0x100] sm:$0xff] %vm412_vm0, %v2053_v61  ;;  %v2957_v11 = vmul.f32 0.5, %v2956_v33 }
 0x328   : > { %v1890_v0 = vpop.f32.mrf.mxu3  ;;  %v2811_v9 = vmax.f32 %v2779_v21, 0.0  ;;  %4119 = vmatmul.msk.f32.gmra.mxu2 %vm412_vm0, %v2459_v50 }
 0x329   : > { %v1984_v29 = vmul.f32 %v1952_v13, %v1890_v0  ;;  %v2371_v7 = vpop.f32.mrf.mxu1  ;;  %v2958_v35 = vsub.f32 1.5, %v2957_v11  ;;  %v7042_v13 = vld [vmem:[#allocation10_spill] sm:$0xff] }
 0x32a   : > { %v4349_v36 = vpop.eup %4348  ;;  %v6269_v61 = vadd.f32 1e-05, %v2811_v9  ;;  %v6271_v55 = vmul.f32 0.03125, %v2371_v7  ;;  %v2612_v54 = vpop.f32.mrf.mxu2  ;;  %v1953_v33 = vsub.f32 %v7042_v13, %v5232_v52 }
 0x32b   : > { %v2019_v45 = vmul.f32 %v6181_v27, %v1984_v29  ;;  %v2965_v25 = vmul.f32 %v4349_v36, %v6244_v30  ;;  %v2959_v47 = vmul.f32 %v4347_v23, %v2958_v35  ;;  %v2716_v20 = vmul.f32 0.03125, %v2612_v54 }
 0x32c   : > { %4350 = vrsqrt.f32 %v6269_v61  ;;  %v2748_v32 = vmul.f32 %v6271_v55, %v6271_v55  ;;  %vm2971_vm4 = vweird.f32 %v4349_v36  ;;  %vm2980_vm6 = vweird.f32 %v6269_v61 }
 0x32d   : > { %v2054_v53 = vadd.f32 %v6194_v42, %v2019_v45  ;;  %4126 = vmatmul.msk.f32.gmra.mxu3 %vm1512_vm2, %v5871_v10  ;;  %v2966_v0 = vmul.f32 %v4349_v36, %v2965_v25  ;;  %v6285_v10 = vpop.f32.mrf.mxu0  ;;  %v2963_v40 = vsel %vm2962_vm1, %v4347_v23, %v2959_v47  ;;  %vm2972_vm5 = vmor %vm2970_vm3, %vm2971_vm4 }
 0x32e   : > { %v2780_v50 = vsub.f32 %v2716_v20, %v2748_v32  ;;  %v2460_v44 = vmul.f32 %v6285_v10, %v6285_v10  ;;  %4088 = vmatmul.msk.f32.gmra.mxu1 %vm412_vm0, %v6285_v10  ;;  %4166 = vmatmul.msk.f32.gmra.mxu0 %vm1512_vm2, %v2963_v40 }
 0x32f   : > { %2086 = vst.msk [vmem:[%s5613_s11 + $0x108] sm:$0xff] %vm412_vm0, %v2054_v53  ;;  %v2967_v11 = vmul.f32 0.5, %v2966_v0 }
 0x330   : > { %v1893_v21 = vpop.f32.mrf.mxu3  ;;  %v2812_v52 = vmax.f32 %v2780_v50, 0.0  ;;  %4120 = vmatmul.msk.f32.gmra.mxu2 %vm412_vm0, %v2460_v44 }
 0x331   : > { %v1985_v29 = vmul.f32 %v1953_v33, %v1893_v21  ;;  %v2374_v45 = vpop.f32.mrf.mxu1  ;;  %v2968_v7 = vsub.f32 1.5, %v2967_v11  ;;  %v7043_v33 = vld [vmem:[#allocation12_spill] sm:$0xff] }
 0x332   : > { %v4351_v35 = vpop.eup %4350  ;;  %v6294_v53 = vadd.f32 1e-05, %v2812_v52  ;;  %v6296_v25 = vmul.f32 0.03125, %v2374_v45  ;;  %v2615_v47 = vpop.f32.mrf.mxu2  ;;  %v1954_v0 = vsub.f32 %v7043_v33, %v5246_v22 }
 0x333   : > { %v2020_v9 = vmul.f32 %v6181_v27, %v1985_v29  ;;  %v2975_v54 = vmul.f32 %v4351_v35, %v6269_v61  ;;  %v2969_v32 = vmul.f32 %v4349_v36, %v2968_v7  ;;  %v2717_v13 = vmul.f32 0.03125, %v2615_v47 }
 0x334   : > { %4352 = vrsqrt.f32 %v6294_v53  ;;  %v2749_v20 = vmul.f32 %v6296_v25, %v6296_v25  ;;  %vm2981_vm7 = vweird.f32 %v4351_v35  ;;  %vm2990_vm9 = vweird.f32 %v6294_v53 }
 0x335   : > { %v2055_v23 = vadd.f32 %v6194_v42, %v2020_v9  ;;  %4127 = vmatmul.msk.f32.gmra.mxu3 %vm1512_vm2, %v5927_v24  ;;  %v2976_v21 = vmul.f32 %v4351_v35, %v2975_v54  ;;  %v6310_v24 = vpop.f32.mrf.mxu0  ;;  %v2973_v40 = vsel %vm2972_vm5, %v4349_v36, %v2969_v32  ;;  %vm2982_vm8 = vmor %vm2980_vm6, %vm2981_vm7 }
 0x336   : > { %v2781_v44 = vsub.f32 %v2717_v13, %v2749_v20  ;;  %v2461_v30 = vmul.f32 %v6310_v24, %v6310_v24  ;;  %4089 = vmatmul.msk.f32.gmra.mxu1 %vm412_vm0, %v6310_v24  ;;  %4167 = vmatmul.msk.f32.gmra.mxu0 %vm1512_vm2, %v2973_v40 }
 0x337   : > { %2087 = vst.msk [vmem:[%s5613_s11 + $0x120] sm:$0xff] %vm412_vm0, %v2055_v23  ;;  %v2977_v11 = vmul.f32 0.5, %v2976_v21 }
 0x338   : > { %v1896_v50 = vpop.f32.mrf.mxu3  ;;  %v2813_v22 = vmax.f32 %v2781_v44, 0.0  ;;  %4121 = vmatmul.msk.f32.gmra.mxu2 %vm412_vm0, %v2461_v30 }
 0x339   : > { %v1986_v29 = vmul.f32 %v1954_v0, %v1896_v50  ;;  %v2377_v9 = vpop.f32.mrf.mxu1  ;;  %v2978_v45 = vsub.f32 1.5, %v2977_v11  ;;  %v7044_v0 = vld [vmem:[#allocation14_spill] sm:$0xff] }
 0x33a   : > { %v4353_v7 = vpop.eup %4352  ;;  %v6319_v23 = vadd.f32 1e-05, %v2813_v22  ;;  %v6321_v54 = vmul.f32 0.03125, %v2377_v9  ;;  %v2618_v32 = vpop.f32.mrf.mxu2  ;;  %v1955_v21 = vsub.f32 %v7044_v0, %v5265_v19 }
 0x33b   : > { %v2021_v52 = vmul.f32 %v6181_v27, %v1986_v29  ;;  %v2985_v47 = vmul.f32 %v4353_v7, %v6294_v53  ;;  %v2979_v20 = vmul.f32 %v4351_v35, %v2978_v45  ;;  %v2718_v33 = vmul.f32 0.03125, %v2618_v32 }
 0x33c   : > { %4354 = vrsqrt.f32 %v6319_v23  ;;  %v2750_v13 = vmul.f32 %v6321_v54, %v6321_v54  ;;  %vm2991_vm10 = vweird.f32 %v4353_v7  ;;  %vm3000_vm12 = vweird.f32 %v6319_v23 }
 0x33d   : > { %v2056_v36 = vadd.f32 %v6194_v42, %v2021_v52  ;;  %4128 = vmatmul.msk.f32.gmra.mxu3 %vm1512_vm2, %v5983_v39  ;;  %v2986_v50 = vmul.f32 %v4353_v7, %v2985_v47  ;;  %v6335_v39 = vpop.f32.mrf.mxu0  ;;  %v2983_v40 = vsel %vm2982_vm8, %v4351_v35, %v2979_v20  ;;  %vm2992_vm11 = vmor %vm2990_vm9, %vm2991_vm10 }
 0x33e   : > { %v2782_v30 = vsub.f32 %v2718_v33, %v2750_v13  ;;  %v2462_v61 = vmul.f32 %v6335_v39, %v6335_v39  ;;  %4090 = vmatmul.msk.f32.gmra.mxu1 %vm412_vm0, %v6335_v39  ;;  %4168 = vmatmul.msk.f32.gmra.mxu0 %vm1512_vm2, %v2983_v40 }
 0x33f   : > { %2088 = vst.msk [vmem:[%s5613_s11 + $0x128] sm:$0xff] %vm412_vm0, %v2056_v36  ;;  %v2987_v11 = vmul.f32 0.5, %v2986_v50 }
 0x340   : > { %v1899_v44 = vpop.f32.mrf.mxu3  ;;  %v2814_v19 = vmax.f32 %v2782_v30, 0.0  ;;  %4122 = vmatmul.msk.f32.gmra.mxu2 %vm412_vm0, %v2462_v61 }
 0x341   : > { %v1987_v29 = vmul.f32 %v1955_v21, %v1899_v44  ;;  %v2380_v52 = vpop.f32.mrf.mxu1  ;;  %v2988_v9 = vsub.f32 1.5, %v2987_v11  ;;  %v7045_v21 = vld [vmem:[#allocation16_spill] sm:$0xff] }
 0x342   : > { %v4355_v45 = vpop.eup %4354  ;;  %v6344_v36 = vadd.f32 1e-05, %v2814_v19  ;;  %v6346_v47 = vmul.f32 0.03125, %v2380_v52  ;;  %v2621_v20 = vpop.f32.mrf.mxu2  ;;  %v1956_v50 = vsub.f32 %v7045_v21, %v5285_v62 }
 0x343   : > { %v2022_v22 = vmul.f32 %v6181_v27, %v1987_v29  ;;  %v2995_v32 = vmul.f32 %v4355_v45, %v6319_v23  ;;  %v2989_v13 = vmul.f32 %v4353_v7, %v2988_v9  ;;  %v2719_v0 = vmul.f32 0.03125, %v2621_v20 }
 0x344   : > { %4356 = vrsqrt.f32 %v6344_v36  ;;  %v2751_v33 = vmul.f32 %v6346_v47, %v6346_v47  ;;  %vm3001_vm13 = vweird.f32 %v4355_v45  ;;  %vm3010_vm15 = vweird.f32 %v6344_v36 }
 0x345   : > { %v2057_v35 = vadd.f32 %v6194_v42, %v2022_v22  ;;  %4129 = vmatmul.msk.f32.gmra.mxu3 %vm1512_vm2, %v6030_v26  ;;  %v2996_v44 = vmul.f32 %v4355_v45, %v2995_v32  ;;  %v2993_v61 = vsel %vm2992_vm11, %v4353_v7, %v2989_v13  ;;  %vm3002_vm14 = vmor %vm3000_vm12, %vm3001_vm13 }
 0x346   : > { %v2783_v30 = vsub.f32 %v2719_v0, %v2751_v33  ;;  %4169 = vmatmul.msk.f32.gmra.mxu0 %vm1512_vm2, %v2993_v61  ;;  %v7046_v0 = vld [vmem:[#allocation18_spill] sm:$0xff] }
 0x347   : > { %2089 = vst.msk [vmem:[%s5613_s11 + $0x140] sm:$0xff] %vm412_vm0, %v2057_v35  ;;  %v2997_v53 = vmul.f32 0.5, %v2996_v44  ;;  %v1957_v21 = vsub.f32 %v7046_v0, %v5314_v38 }
 0x348   : > { %v1902_v26 = vpop.f32.mrf.mxu3  ;;  %v2815_v29 = vmax.f32 %v2783_v30, 0.0 }
 0x349   : > { %v1988_v40 = vmul.f32 %v1956_v50, %v1902_v26  ;;  %v2383_v19 = vpop.f32.mrf.mxu1  ;;  %v2998_v22 = vsub.f32 1.5, %v2997_v53 }
 0x34a   : > { %v4357_v52 = vpop.eup %4356  ;;  %v6362_v9 = vadd.f32 1e-05, %v2815_v29  ;;  %v6364_v62 = vmul.f32 0.03125, %v2383_v19  ;;  %v2624_v32 = vpop.f32.mrf.mxu2 }
 0x34b   : > { %v2023_v11 = vmul.f32 %v6181_v27, %v1988_v40  ;;  %v3005_v7 = vmul.f32 %v4357_v52, %v6344_v36  ;;  %v2999_v20 = vmul.f32 %v4355_v45, %v2998_v22  ;;  %v2720_v33 = vmul.f32 0.03125, %v2624_v32 }
 0x34c   : > { %4358 = vrsqrt.f32 %v6362_v9  ;;  %v2752_v13 = vmul.f32 %v6364_v62, %v6364_v62  ;;  %vm3011_vm1 = vweird.f32 %v4357_v52  ;;  %vm3020_vm4 = vweird.f32 %v6362_v9 }
 0x34d   : > { %v2058_v35 = vadd.f32 %v6194_v42, %v2023_v11  ;;  %4130 = vmatmul.msk.f32.gmra.mxu3 %vm1512_vm2, %v6071_v15  ;;  %v3006_v50 = vmul.f32 %v4357_v52, %v3005_v7  ;;  %v3003_v26 = vsel %vm3002_vm14, %v4355_v45, %v2999_v20  ;;  %vm3012_vm3 = vmor %vm3010_vm15, %vm3011_vm1 }
 0x34e   : > { %v2784_v44 = vsub.f32 %v2720_v33, %v2752_v13  ;;  %4170 = vmatmul.msk.f32.gmra.mxu0 %vm1512_vm2, %v3003_v26  ;;  %v7047_v13 = vld [vmem:[#allocation20_spill] sm:$0xff] }
 0x34f   : > { %2090 = vst.msk [vmem:[%s5613_s11 + $0x148] sm:$0xff] %vm412_vm0, %v2058_v35  ;;  %v3007_v23 = vmul.f32 0.5, %v3006_v50  ;;  %v1958_v33 = vsub.f32 %v7047_v13, %v5341_v28 }
 0x350   : > { %v1905_v15 = vpop.f32.mrf.mxu3  ;;  %v2816_v61 = vmax.f32 %v2784_v44, 0.0 }
 0x351   : > { %v1989_v30 = vmul.f32 %v1957_v21, %v1905_v15  ;;  %v2386_v53 = vpop.f32.mrf.mxu1  ;;  %v3008_v29 = vsub.f32 1.5, %v3007_v23 }
 0x352   : > { %v4359_v11 = vpop.eup %4358  ;;  %v6380_v19 = vadd.f32 1e-05, %v2816_v61  ;;  %v6382_v38 = vmul.f32 0.03125, %v2386_v53  ;;  %v2627_v35 = vpop.f32.mrf.mxu2 }
 0x353   : > { %v2024_v40 = vmul.f32 %v6181_v27, %v1989_v30  ;;  %v3015_v45 = vmul.f32 %v4359_v11, %v6362_v9  ;;  %v3009_v7 = vmul.f32 %v4357_v52, %v3008_v29  ;;  %v2721_v20 = vmul.f32 0.03125, %v2627_v35 }
 0x354   : > { %4360 = vrsqrt.f32 %v6380_v19  ;;  %v2753_v32 = vmul.f32 %v6382_v38, %v6382_v38  ;;  %vm3021_vm5 = vweird.f32 %v4359_v11  ;;  %vm3030_vm7 = vweird.f32 %v6380_v19 }
 0x355   : > { %v2059_v22 = vadd.f32 %v6194_v42, %v2024_v40  ;;  %4131 = vmatmul.msk.f32.gmra.mxu3 %vm1512_vm2, %v6112_v51  ;;  %v3016_v0 = vmul.f32 %v4359_v11, %v3015_v45  ;;  %v3013_v50 = vsel %vm3012_vm3, %v4357_v52, %v3009_v7  ;;  %v7048_v7 = vld [vmem:[#allocation22_spill] sm:$0xff]  ;;  %vm3022_vm6 = vmor %vm3020_vm4, %vm3021_vm5 }
 0x356   : > { %v2785_v21 = vsub.f32 %v2721_v20, %v2753_v32  ;;  %4171 = vmatmul.msk.f32.gmra.mxu0 %vm1512_vm2, %v3013_v50  ;;  %v1959_v32 = vsub.f32 %v7048_v7, %v5367_v63 }
 0x357   : > { %2091 = vst.msk [vmem:[%s5613_s11 + $0x160] sm:$0xff] %vm412_vm0, %v2059_v22  ;;  %v3017_v36 = vmul.f32 0.5, %v3016_v0 }
 0x358   : > { %v1908_v51 = vpop.f32.mrf.mxu3  ;;  %v2817_v44 = vmax.f32 %v2785_v21, 0.0 }
 0x359   : > { %v1990_v15 = vmul.f32 %v1958_v33, %v1908_v51  ;;  %v2389_v30 = vpop.f32.mrf.mxu1  ;;  %v3018_v23 = vsub.f32 1.5, %v3017_v36 }
 0x35a   : > { %v4361_v61 = vpop.eup %4360  ;;  %v6398_v40 = vadd.f32 1e-05, %v2817_v44  ;;  %v6400_v28 = vmul.f32 0.03125, %v2389_v30  ;;  %v2630_v29 = vpop.f32.mrf.mxu2 }
 0x35b   : > { %v2025_v26 = vmul.f32 %v6181_v27, %v1990_v15  ;;  %v3025_v52 = vmul.f32 %v4361_v61, %v6380_v19  ;;  %v3019_v22 = vmul.f32 %v4359_v11, %v3018_v23  ;;  %v2722_v35 = vmul.f32 0.03125, %v2630_v29 }
 0x35c   : > { %4362 = vrsqrt.f32 %v6398_v40  ;;  %v2754_v45 = vmul.f32 %v6400_v28, %v6400_v28  ;;  %vm3031_vm8 = vweird.f32 %v4361_v61  ;;  %vm3040_vm10 = vweird.f32 %v6398_v40 }
 0x35d   : > { %v2060_v53 = vadd.f32 %v6194_v42, %v2025_v26  ;;  %4132 = vmatmul.msk.f32.gmra.mxu3 %vm1512_vm2, %v6149_v34  ;;  %v3026_v20 = vmul.f32 %v4361_v61, %v3025_v52  ;;  %v3023_v33 = vsel %vm3022_vm6, %v4359_v11, %v3019_v22  ;;  %v7049_v22 = vld [vmem:[#allocation24_spill] sm:$0xff]  ;;  %vm3032_vm9 = vmor %vm3030_vm7, %vm3031_vm8 }
 0x35e   : > { %v2786_v13 = vsub.f32 %v2722_v35, %v2754_v45  ;;  %4172 = vmatmul.msk.f32.gmra.mxu0 %vm1512_vm2, %v3023_v33  ;;  %v1960_v45 = vsub.f32 %v7049_v22, %v5394_v17 }
 0x35f   : > { %2092 = vst.msk [vmem:[%s5613_s11 + $0x168] sm:$0xff] %vm412_vm0, %v2060_v53  ;;  %v3027_v9 = vmul.f32 0.5, %v3026_v20 }
 0x360   : > { %v1911_v34 = vpop.f32.mrf.mxu3  ;;  %v2818_v51 = vmax.f32 %v2786_v13, 0.0 }
 0x361   : > { %v1991_v0 = vmul.f32 %v1959_v32, %v1911_v34  ;;  %v2392_v50 = vpop.f32.mrf.mxu1  ;;  %v3028_v15 = vsub.f32 1.5, %v3027_v9 }
 0x362   : > { %v4363_v36 = vpop.eup %4362  ;;  %v6416_v44 = vadd.f32 1e-05, %v2818_v51  ;;  %v6418_v63 = vmul.f32 0.03125, %v2392_v50  ;;  %v2633_v30 = vpop.f32.mrf.mxu2 }
 0x363   : > { %v2026_v21 = vmul.f32 %v6181_v27, %v1991_v0  ;;  %v3035_v11 = vmul.f32 %v4363_v36, %v6398_v40  ;;  %v6424_v23 = vpop.f32.mrf.mxu0  ;;  %v3029_v53 = vmul.f32 %v4361_v61, %v3028_v15  ;;  %v2723_v29 = vmul.f32 0.03125, %v2633_v30 }
 0x364   : > { %4364 = vrsqrt.f32 %v6416_v44  ;;  %v2755_v52 = vmul.f32 %v6418_v63, %v6418_v63  ;;  %vm3041_vm11 = vweird.f32 %v4363_v36  ;;  %vm3050_vm13 = vweird.f32 %v6416_v44 }
 0x365   : > { %v2061_v26 = vadd.f32 %v6194_v42, %v2026_v21  ;;  %4133 = vmatmul.msk.f32.gmra.mxu3 %vm1512_vm2, %v6189_v58  ;;  %v3036_v58 = vmul.f32 %v4363_v36, %v3035_v11  ;;  %v3033_v32 = vsel %vm3032_vm9, %v4361_v61, %v3029_v53  ;;  %v7050_v53 = vld [vmem:[#allocation26_spill] sm:$0xff]  ;;  %vm3042_vm12 = vmor %vm3040_vm10, %vm3041_vm11 }
 0x366   : > { %v2787_v7 = vsub.f32 %v2723_v29, %v2755_v52  ;;  %4173 = vmatmul.msk.f32.gmra.mxu0 %vm1512_vm2, %v3033_v32  ;;  %v1961_v52 = vsub.f32 %v7050_v53, %v5420_v6 }
 0x367   : > { %2093 = vst.msk [vmem:[%s5613_s11 + $0x180] sm:$0xff] %vm412_vm0, %v2061_v26  ;;  %v3037_v19 = vmul.f32 0.5, %v3036_v58 }
 0x368   : > { %v1914_v35 = vpop.f32.mrf.mxu3  ;;  %v2819_v34 = vmax.f32 %v2787_v7, 0.0 }
 0x369   : > { %v1992_v20 = vmul.f32 %v1960_v45, %v1914_v35  ;;  %v2395_v33 = vpop.f32.mrf.mxu1  ;;  %v3038_v0 = vsub.f32 1.5, %v3037_v19 }
 0x36a   : > { %v4365_v9 = vpop.eup %4364  ;;  %v6436_v51 = vadd.f32 1e-05, %v2819_v34  ;;  %v6438_v17 = vmul.f32 0.03125, %v2395_v33  ;;  %v2636_v50 = vpop.f32.mrf.mxu2 }
 0x36b   : > { %v2027_v13 = vmul.f32 %v6181_v27, %v1992_v20  ;;  %v3045_v61 = vmul.f32 %v4365_v9, %v6416_v44  ;;  %v3039_v15 = vmul.f32 %v4363_v36, %v3038_v0  ;;  %v2724_v11 = vmul.f32 0.03125, %v2636_v50  ;;  %v6448_v30 = vpop.f32.mrf.mxu0  ;;  %v7051_v50 = vld [vmem:[#allocation28_spill] sm:$0xff] }
 0x36c   : > { %4366 = vrsqrt.f32 %v6436_v51  ;;  %v2756_v26 = vmul.f32 %v6438_v17, %v6438_v17  ;;  %vm3051_vm14 = vweird.f32 %v4365_v9  ;;  %vm3060_vm1 = vweird.f32 %v6436_v51 }
 0x36d   : > { %v2062_v21 = vadd.f32 %v6194_v42, %v2027_v13  ;;  %4134 = vmatmul.msk.f32.gmra.mxu3 %vm1512_vm2, %v6221_v57  ;;  %v3046_v57 = vmul.f32 %v4365_v9, %v3045_v61  ;;  %v3043_v45 = vsel %vm3042_vm12, %v4363_v36, %v3039_v15  ;;  %v1962_v15 = vsub.f32 %v7051_v50, %v5446_v16  ;;  %vm3052_vm15 = vmor %vm3050_vm13, %vm3051_vm14 }
 0x36e   : > { %v2788_v22 = vsub.f32 %v2724_v11, %v2756_v26  ;;  %4174 = vmatmul.msk.f32.gmra.mxu0 %vm1512_vm2, %v3043_v45 }
 0x36f   : > { %2094 = vst.msk [vmem:[%s5613_s11 + $0x188] sm:$0xff] %vm412_vm0, %v2062_v21  ;;  %v3047_v58 = vmul.f32 0.5, %v3046_v57 }
 0x370   : > { %v1917_v29 = vpop.f32.mrf.mxu3  ;;  %v2820_v35 = vmax.f32 %v2788_v22, 0.0 }
 0x371   : > { %v1993_v40 = vmul.f32 %v1961_v52, %v1917_v29  ;;  %v2398_v32 = vpop.f32.mrf.mxu1  ;;  %v3048_v20 = vsub.f32 1.5, %v3047_v58 }
 0x372   : > { %v4367_v19 = vpop.eup %4366  ;;  %v6456_v34 = vadd.f32 1e-05, %v2820_v35  ;;  %v6458_v6 = vmul.f32 0.03125, %v2398_v32 }
 0x373   : > { %v2028_v7 = vmul.f32 %v6181_v27, %v1993_v40  ;;  %v3055_v36 = vmul.f32 %v4367_v19, %v6436_v51  ;;  %v2639_v33 = vpop.f32.mrf.mxu2  ;;  %v3049_v0 = vmul.f32 %v4365_v9, %v3048_v20  ;;  %v6472_v53 = vpop.f32.mrf.mxu0  ;;  %vm3061_vm3 = vweird.f32 %v4367_v19 }
 0x374   : > { %4368 = vrsqrt.f32 %v6456_v34  ;;  %v2757_v21 = vmul.f32 %v6458_v6, %v6458_v6  ;;  %v2725_v61 = vmul.f32 0.03125, %v2639_v33  ;;  %v7052_v33 = vld [vmem:[#allocation30_spill] sm:$0xff]  ;;  %vm3062_vm4 = vmor %vm3060_vm1, %vm3061_vm3  ;;  %vm3070_vm5 = vweird.f32 %v6456_v34 }
 0x375   : > { %v2063_v13 = vadd.f32 %v6194_v42, %v2028_v7  ;;  %4135 = vmatmul.msk.f32.gmra.mxu3 %vm1512_vm2, %v6246_v4  ;;  %v3056_v26 = vmul.f32 %v4367_v19, %v3055_v36  ;;  %v3053_v52 = vsel %vm3052_vm15, %v4365_v9, %v3049_v0  ;;  %v1963_v0 = vsub.f32 %v7052_v33, %v5474_v14 }
 0x376   : > { %v2789_v11 = vsub.f32 %v2725_v61, %v2757_v21  ;;  %4175 = vmatmul.msk.f32.gmra.mxu0 %vm1512_vm2, %v3053_v52 }
 0x377   : > { %2095 = vst.msk [vmem:[%s5613_s11 + $0x1a0] sm:$0xff] %vm412_vm0, %v2063_v13  ;;  %v3057_v57 = vmul.f32 0.5, %v3056_v26 }
 0x378   : > { %v1920_v4 = vpop.f32.mrf.mxu3  ;;  %v2821_v29 = vmax.f32 %v2789_v11, 0.0 }
 0x379   : > { %v1994_v44 = vmul.f32 %v1962_v15, %v1920_v4  ;;  %v2401_v45 = vpop.f32.mrf.mxu1  ;;  %v3058_v40 = vsub.f32 1.5, %v3057_v57 }
 0x37a   : > { %v4369_v16 = vpop.eup %4368  ;;  %v6476_v58 = vadd.f32 1e-05, %v2821_v29  ;;  %v6478_v35 = vmul.f32 0.03125, %v2401_v45 }
 0x37b   : > { %v2029_v22 = vmul.f32 %v6181_v27, %v1994_v44  ;;  %v3065_v9 = vmul.f32 %v4369_v16, %v6456_v34  ;;  %v2642_v32 = vpop.f32.mrf.mxu2  ;;  %v3059_v20 = vmul.f32 %v4367_v19, %v3058_v40  ;;  %v6493_v4 = vpop.f32.mrf.mxu0  ;;  %vm3071_vm6 = vweird.f32 %v4369_v16 }
 0x37c   : > { %4370 = vrsqrt.f32 %v6476_v58  ;;  %v2758_v13 = vmul.f32 %v6478_v35, %v6478_v35  ;;  %v2726_v36 = vmul.f32 0.03125, %v2642_v32  ;;  %v7053_v32 = vld [vmem:[#allocation32_spill] sm:$0xff]  ;;  %vm3072_vm7 = vmor %vm3070_vm5, %vm3071_vm6  ;;  %vm3080_vm8 = vweird.f32 %v6476_v58 }
 0x37d   : > { %v2064_v7 = vadd.f32 %v6194_v42, %v2029_v22  ;;  %4136 = vmatmul.msk.f32.gmra.mxu3 %vm1512_vm2, %v6271_v55  ;;  %v3066_v21 = vmul.f32 %v4369_v16, %v3065_v9  ;;  %v3063_v50 = vsel %vm3062_vm4, %v4367_v19, %v3059_v20  ;;  %v1964_v20 = vsub.f32 %v7053_v32, %v5497_v2 }
 0x37e   : > { %v2790_v61 = vsub.f32 %v2726_v36, %v2758_v13  ;;  %4176 = vmatmul.msk.f32.gmra.mxu0 %vm1512_vm2, %v3063_v50 }
 0x37f   : > { %2096 = vst.msk [vmem:[%s5613_s11 + $0x1a8] sm:$0xff] %vm412_vm0, %v2064_v7  ;;  %v3067_v51 = vmul.f32 0.5, %v3066_v21 }
 0x380   : > { %v1923_v55 = vpop.f32.mrf.mxu3  ;;  %v2822_v26 = vmax.f32 %v2790_v61, 0.0 }
 0x381   : > { %v1995_v15 = vmul.f32 %v1963_v0, %v1923_v55  ;;  %v2404_v52 = vpop.f32.mrf.mxu1  ;;  %v3068_v44 = vsub.f32 1.5, %v3067_v51 }
 0x382   : > { %v4371_v14 = vpop.eup %4370  ;;  %v6496_v57 = vadd.f32 1e-05, %v2822_v26  ;;  %v6498_v29 = vmul.f32 0.03125, %v2404_v52 }
 0x383   : > { %v2030_v11 = vmul.f32 %v6181_v27, %v1995_v15  ;;  %v3075_v19 = vmul.f32 %v4371_v14, %v6476_v58  ;;  %v2645_v45 = vpop.f32.mrf.mxu2  ;;  %v3069_v40 = vmul.f32 %v4369_v16, %v3068_v44  ;;  %v6516_v2 = vpop.f32.mrf.mxu0  ;;  %vm3081_vm9 = vweird.f32 %v4371_v14 }
 0x384   : > { %4372 = vrsqrt.f32 %v6496_v57  ;;  %v2759_v7 = vmul.f32 %v6498_v29, %v6498_v29  ;;  %v2727_v9 = vmul.f32 0.03125, %v2645_v45  ;;  %v7054_v45 = vld [vmem:[#allocation34_spill] sm:$0xff]  ;;  %vm3082_vm10 = vmor %vm3080_vm8, %vm3081_vm9  ;;  %vm3090_vm11 = vweird.f32 %v6496_v57 }
 0x385   : > { %v2065_v22 = vadd.f32 %v6194_v42, %v2030_v11  ;;  %4137 = vmatmul.msk.f32.gmra.mxu3 %vm1512_vm2, %v6296_v25  ;;  %v3076_v13 = vmul.f32 %v4371_v14, %v3075_v19  ;;  %v3073_v33 = vsel %vm3072_vm7, %v4369_v16, %v3069_v40  ;;  %v1965_v40 = vsub.f32 %v7054_v45, %v5526_v41 }
 0x386   : > { %v2791_v36 = vsub.f32 %v2727_v9, %v2759_v7  ;;  %4177 = vmatmul.msk.f32.gmra.mxu0 %vm1512_vm2, %v3073_v33 }
 0x387   : > { %2097 = vst.msk [vmem:[%s5613_s11 + $0x1c0] sm:$0xff] %vm412_vm0, %v2065_v22  ;;  %v3077_v34 = vmul.f32 0.5, %v3076_v13 }
 0x388   : > { %v1926_v25 = vpop.f32.mrf.mxu3  ;;  %v2823_v21 = vmax.f32 %v2791_v36, 0.0 }
 0x389   : > { %v1996_v0 = vmul.f32 %v1964_v20, %v1926_v25  ;;  %v2407_v61 = vpop.f32.mrf.mxu1  ;;  %v3078_v50 = vsub.f32 1.5, %v3077_v34 }
 0x38a   : > { %v4373_v15 = vpop.eup %4372  ;;  %v6514_v51 = vadd.f32 1e-05, %v2823_v21  ;;  %v6518_v26 = vmul.f32 0.03125, %v2407_v61 }
 0x38b   : > { %v2031_v55 = vmul.f32 %v6181_v27, %v1996_v0  ;;  %v3085_v16 = vmul.f32 %v4373_v15, %v6496_v57  ;;  %v2648_v52 = vpop.f32.mrf.mxu2  ;;  %v3079_v44 = vmul.f32 %v4371_v14, %v3078_v50  ;;  %v6544_v50 = vpop.f32.mrf.mxu0  ;;  %vm3091_vm12 = vweird.f32 %v4373_v15 }
 0x38c   : > { %4374 = vrsqrt.f32 %v6514_v51  ;;  %v2760_v22 = vmul.f32 %v6518_v26, %v6518_v26  ;;  %v2728_v19 = vmul.f32 0.03125, %v2648_v52  ;;  %v7055_v52 = vld [vmem:[#allocation36_spill] sm:$0xff]  ;;  %vm3092_vm13 = vmor %vm3090_vm11, %vm3091_vm12  ;;  %vm3100_vm14 = vweird.f32 %v6514_v51 }
 0x38d   : > { %v2066_v11 = vadd.f32 %v6194_v42, %v2031_v55  ;;  %4138 = vmatmul.msk.f32.gmra.mxu3 %vm1512_vm2, %v6321_v54  ;;  %v3086_v7 = vmul.f32 %v4373_v15, %v3085_v16  ;;  %v3083_v32 = vsel %vm3082_vm10, %v4371_v14, %v3079_v44  ;;  %v1966_v44 = vsub.f32 %v7055_v52, %v5553_v43 }
 0x38e   : > { %v2792_v9 = vsub.f32 %v2728_v19, %v2760_v22  ;;  %4178 = vmatmul.msk.f32.gmra.mxu0 %vm1512_vm2, %v3083_v32 }
 0x38f   : > { %2098 = vst.msk [vmem:[%s5613_s11 + $0x1c8] sm:$0xff] %vm412_vm0, %v2066_v11  ;;  %v3087_v58 = vmul.f32 0.5, %v3086_v7 }
 0x390   : > { %v1929_v54 = vpop.f32.mrf.mxu3  ;;  %v2824_v13 = vmax.f32 %v2792_v9, 0.0 }
 0x391   : > { %v1997_v20 = vmul.f32 %v1965_v40, %v1929_v54  ;;  %v2410_v36 = vpop.f32.mrf.mxu1  ;;  %v3088_v33 = vsub.f32 1.5, %v3087_v58 }
 0x392   : > { %v4375_v0 = vpop.eup %4374  ;;  %v6534_v34 = vadd.f32 1e-05, %v2824_v13  ;;  %v6536_v41 = vmul.f32 0.03125, %v2410_v36 }
 0x393   : > { %v2032_v25 = vmul.f32 %v6181_v27, %v1997_v20  ;;  %v3095_v14 = vmul.f32 %v4375_v0, %v6514_v51  ;;  %v2651_v55 = vpop.f32.mrf.mxu2  ;;  %v3089_v61 = vmul.f32 %v4373_v15, %v3088_v33  ;;  %vm3101_vm15 = vweird.f32 %v4375_v0 }
 0x394   : > { %4376 = vrsqrt.f32 %v6534_v34  ;;  %v2761_v11 = vmul.f32 %v6536_v41, %v6536_v41  ;;  %v2729_v16 = vmul.f32 0.03125, %v2651_v55  ;;  %vm3102_vm1 = vmor %vm3100_vm14, %vm3101_vm15  ;;  %vm3110_vm3 = vweird.f32 %v6534_v34 }
 0x395   : > { %v2067_v21 = vadd.f32 %v6194_v42, %v2032_v25  ;;  %4139 = vmatmul.msk.f32.gmra.mxu3 %vm1512_vm2, %v6346_v47  ;;  %v3096_v47 = vmul.f32 %v4375_v0, %v3095_v14  ;;  %v3093_v45 = vsel %vm3092_vm13, %v4373_v15, %v3089_v61  ;;  %v6568_v14 = vpop.f32.mrf.mxu0 }
 0x396   : > { %v2793_v19 = vsub.f32 %v2729_v16, %v2761_v11  ;;  %4179 = vmatmul.msk.f32.gmra.mxu0 %vm1512_vm2, %v3093_v45  ;;  %v6580_v45 = vld [vmem:[%s6855_s5] ss:$0 sm:$0xff] }
 0x397   : > { %2099 = vst.msk [vmem:[%s5613_s11 + $0x1e0] sm:$0xff] %vm412_vm0, %v2067_v21  ;;  %v3097_v40 = vmul.f32 0.5, %v3096_v47 }
 0x398   : > { %v1932_v22 = vpop.f32.mrf.mxu3  ;;  %v2825_v7 = vmax.f32 %v2793_v19, 0.0 }
 0x399   : > { %v1998_v57 = vmul.f32 %v1966_v44, %v1932_v22  ;;  %v2413_v9 = vpop.f32.mrf.mxu1  ;;  %v3098_v32 = vsub.f32 1.5, %v3097_v40 }
 0x39a   : > { %v4377_v20 = vpop.eup %4376  ;;  %v6554_v58 = vadd.f32 1e-05, %v2825_v7  ;;  %v6556_v43 = vmul.f32 0.03125, %v2413_v9 }
 0x39b   : > { %v2033_v54 = vmul.f32 %v6181_v27, %v1998_v57  ;;  %v3105_v15 = vmul.f32 %v4377_v20, %v6534_v34  ;;  %v2654_v25 = vpop.f32.mrf.mxu2  ;;  %v3099_v36 = vmul.f32 %v4375_v0, %v3098_v32  ;;  %vm3111_vm4 = vweird.f32 %v4377_v20 }
 0x39c   : > { %4378 = vrsqrt.f32 %v6554_v58  ;;  %v2762_v27 = vmul.f32 %v6556_v43, %v6556_v43  ;;  %v2730_v33 = vmul.f32 0.03125, %v2654_v25  ;;  %vm3112_vm5 = vmor %vm3110_vm3, %vm3111_vm4  ;;  %vm3120_vm6 = vweird.f32 %v6554_v58 }
 0x39d   : > { %v2068_v13 = vadd.f32 %v6194_v42, %v2033_v54  ;;  %4140 = vmatmul.msk.f32.gmra.mxu3 %vm1512_vm2, %v6364_v62  ;;  %v3106_v21 = vmul.f32 %v4377_v20, %v3105_v15  ;;  %v3103_v55 = vsel %vm3102_vm1, %v4375_v0, %v3099_v36  ;;  %v6593_v54 = vld [vmem:[%s6856_s6] ss:$0 sm:$0xff]  ;;  %v6600_v36 = vpop.f32.mrf.mxu0 }
 0x39e   : > { %v2794_v62 = vsub.f32 %v2730_v33, %v2762_v27  ;;  %4180 = vmatmul.msk.f32.gmra.mxu0 %vm1512_vm2, %v3103_v55 }
 0x39f   : > { %2100 = vst.msk [vmem:[%s5613_s11 + $0x1e8] sm:$0xff] %vm412_vm0, %v2068_v13  ;;  %v3107_v51 = vmul.f32 0.5, %v3106_v21 }
 0x3a0   : > { %v3297_v42 = vpop.f32.mrf.mxu3  ;;  %v2826_v11 = vmax.f32 %v2794_v62, 0.0 }
 0x3a1   : > { %v3602_v61 = vsub.f32 %v5281_v5, %v3297_v42  ;;  %v2416_v52 = vpop.f32.mrf.mxu1  ;;  %v3108_v44 = vsub.f32 1.5, %v3107_v51 }
 0x3a2   : > { %v4379_v47 = vpop.eup %4378  ;;  %v6573_v22 = vadd.f32 1e-05, %v2826_v11  ;;  %v6575_v19 = vmul.f32 0.03125, %v2416_v52 }
 0x3a3   : > { %v3634_v16 = vmul.f32 %v3602_v61, %v6424_v23  ;;  %v3115_v23 = vmul.f32 %v4379_v47, %v6554_v58  ;;  %v2657_v0 = vpop.f32.mrf.mxu2  ;;  %v3109_v57 = vmul.f32 %v4377_v20, %v3108_v44  ;;  %vm3121_vm7 = vweird.f32 %v4379_v47 }
 0x3a4   : > { %4380 = vrsqrt.f32 %v6573_v22  ;;  %v2763_v40 = vmul.f32 %v6575_v19, %v6575_v19  ;;  %v2731_v7 = vmul.f32 0.03125, %v2657_v0  ;;  %vm3122_vm8 = vmor %vm3120_vm6, %vm3121_vm7  ;;  %vm3130_vm9 = vweird.f32 %v6573_v22 }
 0x3a5   : > { %v3666_v5 = vmul.f32 %v6580_v45, %v3634_v16  ;;  %4141 = vmatmul.msk.f32.gmra.mxu3 %vm1512_vm2, %v6382_v38  ;;  %v3116_v9 = vmul.f32 %v4379_v47, %v3115_v23  ;;  %v3113_v15 = vsel %vm3112_vm5, %v4377_v20, %v3109_v57 }
 0x3a6   : > { %v2795_v13 = vsub.f32 %v2731_v7, %v2763_v40  ;;  %4181 = vmatmul.msk.f32.gmra.mxu0 %vm1512_vm2, %v3113_v15 }
 0x3a7   : > { %v3698_v38 = vadd.f32 %v6593_v54, %v3666_v5  ;;  %v3117_v25 = vmul.f32 0.5, %v3116_v9 }
 0x3a8   : > { %v3300_v32 = vpop.f32.mrf.mxu3  ;;  %v2827_v27 = vmax.f32 %v2795_v13, 0.0 }
 0x3a9   : > { %4189 = vst.msk [vmem:[%s5613_s11 + $0x10] sm:$0xff] %vm412_vm0, %v3698_v38  ;;  %v3603_v34 = vsub.f32 %v5310_v60, %v3300_v32  ;;  %v2419_v21 = vpop.f32.mrf.mxu1  ;;  %v3118_v42 = vsub.f32 1.5, %v3117_v25  ;;  %v6621_v32 = vpop.f32.mrf.mxu0 }
 0x3aa   : > { %v4381_v62 = vpop.eup %4380  ;;  %v6603_v55 = vadd.f32 1e-05, %v2827_v27  ;;  %v6605_v61 = vmul.f32 0.03125, %v2419_v21 }
 0x3ab   : > { %v3635_v33 = vmul.f32 %v3603_v34, %v6448_v30  ;;  %v3125_v60 = vmul.f32 %v4381_v62, %v6573_v22  ;;  %v2660_v51 = vpop.f32.mrf.mxu2  ;;  %v3119_v11 = vmul.f32 %v4379_v47, %v3118_v42  ;;  %vm3131_vm10 = vweird.f32 %v4381_v62 }
 0x3ac   : > { %4382 = vrsqrt.f32 %v6603_v55  ;;  %v2764_v30 = vmul.f32 %v6605_v61, %v6605_v61  ;;  %v2732_v16 = vmul.f32 0.03125, %v2660_v51  ;;  %vm3132_vm11 = vmor %vm3130_vm9, %vm3131_vm10  ;;  %vm3140_vm12 = vweird.f32 %v6603_v55 }
 0x3ad   : > { %v3667_v20 = vmul.f32 %v6580_v45, %v3635_v33  ;;  %4142 = vmatmul.msk.f32.gmra.mxu3 %vm1512_vm2, %v6400_v28  ;;  %v3126_v44 = vmul.f32 %v4381_v62, %v3125_v60  ;;  %v3123_v28 = vsel %vm3122_vm8, %v4379_v47, %v3119_v11 }
 0x3ae   : > { %v2796_v23 = vsub.f32 %v2732_v16, %v2764_v30  ;;  %4182 = vmatmul.msk.f32.gmra.mxu0 %vm1512_vm2, %v3123_v28 }
 0x3af   : > { %v3699_v52 = vadd.f32 %v6593_v54, %v3667_v20  ;;  %v3127_v58 = vmul.f32 0.5, %v3126_v44 }
 0x3b0   : > { %v3303_v5 = vpop.f32.mrf.mxu3  ;;  %v2828_v57 = vmax.f32 %v2796_v23, 0.0 }
 0x3b1   : > { %4190 = vst.msk [vmem:[%s5613_s11 + $0x18] sm:$0xff] %vm412_vm0, %v3699_v52  ;;  %v3604_v0 = vsub.f32 %v5337_v46, %v3303_v5  ;;  %v2422_v7 = vpop.f32.mrf.mxu1  ;;  %v3128_v38 = vsub.f32 1.5, %v3127_v58 }
 0x3b2   : > { %v4383_v9 = vpop.eup %4382  ;;  %v6623_v13 = vadd.f32 1e-05, %v2828_v57  ;;  %v6625_v15 = vmul.f32 0.03125, %v2422_v7 }
 0x3b3   : > { %v3636_v40 = vmul.f32 %v3604_v0, %v6472_v53  ;;  %v3135_v46 = vmul.f32 %v4383_v9, %v6603_v55  ;;  %v2663_v34 = vpop.f32.mrf.mxu2  ;;  %v3129_v25 = vmul.f32 %v4381_v62, %v3128_v38  ;;  %vm3141_vm13 = vweird.f32 %v4383_v9 }
 0x3b4   : > { %4384 = vrsqrt.f32 %v6623_v13  ;;  %v2765_v53 = vmul.f32 %v6625_v15, %v6625_v15  ;;  %v2733_v27 = vmul.f32 0.03125, %v2663_v34  ;;  %vm3142_vm14 = vmor %vm3140_vm12, %vm3141_vm13  ;;  %vm3150_vm15 = vweird.f32 %v6623_v13 }
 0x3b5   : > { %v3668_v47 = vmul.f32 %v6580_v45, %v3636_v40  ;;  %4143 = vmatmul.msk.f32.gmra.mxu3 %vm1512_vm2, %v6418_v63  ;;  %v3136_v21 = vmul.f32 %v4383_v9, %v3135_v46  ;;  %v3133_v63 = vsel %vm3132_vm11, %v4381_v62, %v3129_v25 }
 0x3b6   : > { %v2797_v20 = vsub.f32 %v2733_v27, %v2765_v53  ;;  %4183 = vmatmul.msk.f32.gmra.mxu0 %vm1512_vm2, %v3133_v63 }
 0x3b7   : > { %v3700_v33 = vadd.f32 %v6593_v54, %v3668_v47  ;;  %v3137_v22 = vmul.f32 0.5, %v3136_v21  ;;  %v7056_v47 = vld [vmem:[#allocation54_spill] sm:$0xff] }
 0x3b8   : > { %v3306_v42 = vpop.f32.mrf.mxu3  ;;  %v2829_v51 = vmax.f32 %v2797_v20, 0.0 }
 0x3b9   : > { %4191 = vst.msk [vmem:[%s5613_s11 + $0x30] sm:$0xff] %vm412_vm0, %v3700_v33  ;;  %v3605_v60 = vsub.f32 %v5363_v18, %v3306_v42  ;;  %v2425_v30 = vpop.f32.mrf.mxu1  ;;  %v3138_v16 = vsub.f32 1.5, %v3137_v22 }
 0x3ba   : > { %v4385_v52 = vpop.eup %4384  ;;  %v6641_v44 = vadd.f32 1e-05, %v2829_v51  ;;  %v6643_v5 = vmul.f32 0.03125, %v2425_v30 }
 0x3bb   : > { %v3637_v11 = vmul.f32 %v3605_v60, %v6493_v4  ;;  %v3145_v18 = vmul.f32 %v4385_v52, %v6623_v13  ;;  %v2666_v62 = vpop.f32.mrf.mxu2  ;;  %v3139_v28 = vmul.f32 %v4383_v9, %v3138_v16  ;;  %v6650_v4 = vpop.f32.mrf.mxu0  ;;  %vm3151_vm1 = vweird.f32 %v4385_v52 }
 0x3bc   : > { %4386 = vrsqrt.f32 %v6641_v44  ;;  %v2766_v0 = vmul.f32 %v6643_v5, %v6643_v5  ;;  %v2734_v58 = vmul.f32 0.03125, %v2666_v62  ;;  %vm3152_vm3 = vmor %vm3150_vm15, %vm3151_vm1  ;;  %vm3160_vm4 = vweird.f32 %v6641_v44 }
 0x3bd   : > { %v3669_v23 = vmul.f32 %v6580_v45, %v3637_v11  ;;  %4144 = vmatmul.msk.f32.gmra.mxu3 %vm1512_vm2, %v6438_v17  ;;  %v3146_v40 = vmul.f32 %v4385_v52, %v3145_v18  ;;  %v3143_v38 = vsel %vm3142_vm14, %v4383_v9, %v3139_v28  ;;  %v7057_v18 = vld [vmem:[#allocation55_spill] sm:$0xff] }
 0x3be   : > { %v2798_v7 = vsub.f32 %v2734_v58, %v2766_v0  ;;  %4184 = vmatmul.msk.f32.gmra.mxu0 %vm1512_vm2, %v3143_v38 }
 0x3bf   : > { %v3701_v57 = vadd.f32 %v6593_v54, %v3669_v23  ;;  %v3147_v46 = vmul.f32 0.5, %v3146_v40 }
 0x3c0   : > { %v3309_v17 = vpop.f32.mrf.mxu3  ;;  %v2830_v34 = vmax.f32 %v2798_v7, 0.0 }
 0x3c1   : > { %4192 = vst.msk [vmem:[%s5613_s11 + $0x38] sm:$0xff] %vm412_vm0, %v3701_v57  ;;  %v3606_v55 = vsub.f32 %v7056_v47, %v3309_v17  ;;  %v2428_v53 = vpop.f32.mrf.mxu1  ;;  %v3148_v27 = vsub.f32 1.5, %v3147_v46  ;;  %v7058_v46 = vld [vmem:[#allocation56_spill] sm:$0xff] }
 0x3c2   : > { %v4387_v33 = vpop.eup %4386  ;;  %v2862_v21 = vadd.f32 1e-05, %v2830_v34  ;;  %v6661_v42 = vmul.f32 0.03125, %v2428_v53 }
 0x3c3   : > { %v3638_v25 = vmul.f32 %v3606_v55, %v6516_v2  ;;  %v3155_v9 = vmul.f32 %v4387_v33, %v6641_v44  ;;  %v2669_v63 = vpop.f32.mrf.mxu2  ;;  %v3149_v60 = vmul.f32 %v4385_v52, %v3148_v27  ;;  %v6671_v16 = vpop.f32.mrf.mxu0  ;;  %vm3161_vm5 = vweird.f32 %v4387_v33 }
 0x3c4   : > { %4388 = vrsqrt.f32 %v2862_v21  ;;  %v2767_v2 = vmul.f32 %v6661_v42, %v6661_v42  ;;  %v2735_v22 = vmul.f32 0.03125, %v2669_v63  ;;  %vm3162_vm6 = vmor %vm3160_vm4, %vm3161_vm5  ;;  %vm3170_vm7 = vweird.f32 %v2862_v21 }
 0x3c5   : > { %v3670_v20 = vmul.f32 %v6580_v45, %v3638_v25  ;;  %4145 = vmatmul.msk.f32.gmra.mxu3 %vm1512_vm2, %v6458_v6  ;;  %v3156_v11 = vmul.f32 %v4387_v33, %v3155_v9  ;;  %v3153_v23 = vsel %vm3152_vm3, %v4385_v52, %v3149_v60 }
 0x3c6   : > { %v2799_v6 = vsub.f32 %v2735_v22, %v2767_v2  ;;  %4185 = vmatmul.msk.f32.gmra.mxu0 %vm1512_vm2, %v3153_v23 }
 0x3c7   : > { %v3702_v51 = vadd.f32 %v6593_v54, %v3670_v20  ;;  %v3157_v13 = vmul.f32 0.5, %v3156_v11 }
 0x3c8   : > { %v3312_v30 = vpop.f32.mrf.mxu3  ;;  %v2831_v28 = vmax.f32 %v2799_v6, 0.0 }
 0x3c9   : > { %4193 = vst.msk [vmem:[%s5613_s11 + $0x50] sm:$0xff] %vm412_vm0, %v3702_v51  ;;  %v3607_v62 = vsub.f32 %v7057_v18, %v3312_v30  ;;  %v3158_v58 = vsub.f32 1.5, %v3157_v13 }
 0x3ca   : > { %v4389_v57 = vpop.eup %4388  ;;  %v2863_v40 = vadd.f32 1e-05, %v2831_v28  ;;  %v7060_v28 = vld [vmem:[#allocation58_spill] sm:$0xff] }
 0x3cb   : > { %v3639_v0 = vmul.f32 %v3607_v62, %v6544_v50  ;;  %v3165_v52 = vmul.f32 %v4389_v57, %v2862_v21  ;;  %v3159_v7 = vmul.f32 %v4387_v33, %v3158_v58  ;;  %vm3171_vm8 = vweird.f32 %v4389_v57 }
 0x3cc   : > { %4390 = vrsqrt.f32 %v2863_v40  ;;  %vm3172_vm9 = vmor %vm3170_vm7, %vm3171_vm8  ;;  %vm3180_vm10 = vweird.f32 %v2863_v40 }
 0x3cd   : > { %v3671_v17 = vmul.f32 %v6580_v45, %v3639_v0  ;;  %4146 = vmatmul.msk.f32.gmra.mxu3 %vm1512_vm2, %v6478_v35  ;;  %v3166_v47 = vmul.f32 %v4389_v57, %v3165_v52  ;;  %v3163_v55 = vsel %vm3162_vm6, %v4387_v33, %v3159_v7  ;;  %v3539_v35 = vpop.f32.mrf.mxu0 }
 0x3ce   : > { %4186 = vmatmul.msk.f32.gmra.mxu0 %vm1512_vm2, %v3163_v55 }
 0x3cf   : > { %v3703_v38 = vadd.f32 %v6593_v54, %v3671_v17  ;;  %v3167_v25 = vmul.f32 0.5, %v3166_v47  ;;  %v7061_v17 = vld [vmem:[#allocation59_spill] sm:$0xff] }
 0x3d0   : > { %v3315_v50 = vpop.f32.mrf.mxu3 }
 0x3d1   : > { %4194 = vst.msk [vmem:[%s5613_s11 + $0x58] sm:$0xff] %vm412_vm0, %v3703_v38  ;;  %v3608_v34 = vsub.f32 %v7058_v46, %v3315_v50  ;;  %v3168_v44 = vsub.f32 1.5, %v3167_v25  ;;  %v7062_v50 = vld [vmem:[#allocation37_spill] sm:$0xff] }
 0x3d2   : > { %v4391_v27 = vpop.eup %4390 }
 0x3d3   : > { %v3640_v53 = vmul.f32 %v3608_v34, %v6568_v14  ;;  %v3175_v9 = vmul.f32 %v4391_v27, %v2863_v40  ;;  %v3169_v33 = vmul.f32 %v4389_v57, %v3168_v44  ;;  %v7059_v14 = vld [vmem:[#allocation57_spill] sm:$0xff]  ;;  %vm3181_vm11 = vweird.f32 %v4391_v27 }
 0x3d4   : > { %vm3182_vm12 = vmor %vm3180_vm10, %vm3181_vm11 }
 0x3d5   : > { %v3672_v20 = vmul.f32 %v6580_v45, %v3640_v53  ;;  %4147 = vmatmul.msk.f32.gmra.mxu3 %vm1512_vm2, %v6498_v29  ;;  %v3176_v60 = vmul.f32 %v4391_v27, %v3175_v9  ;;  %v3173_v22 = vsel %vm3172_vm9, %v4389_v57, %v3169_v33  ;;  %v3542_v6 = vpop.f32.mrf.mxu0 }
 0x3d6   : > { %4187 = vmatmul.msk.f32.gmra.mxu0 %vm1512_vm2, %v3173_v22 }
 0x3d7   : > { %v3704_v63 = vadd.f32 %v6593_v54, %v3672_v20  ;;  %v3177_v11 = vmul.f32 0.5, %v3176_v60 }
 0x3d8   : > { %v3318_v2 = vpop.f32.mrf.mxu3 }
 0x3d9   : > { %4195 = vst.msk [vmem:[%s5613_s11 + $0x70] sm:$0xff] %vm412_vm0, %v3704_v63  ;;  %v3609_v51 = vsub.f32 %v7059_v14, %v3318_v2  ;;  %v3178_v30 = vsub.f32 1.5, %v3177_v11 }
 0x3db   : > { %v3641_v29 = vmul.f32 %v3609_v51, %v6600_v36  ;;  %v3179_v23 = vmul.f32 %v4391_v27, %v3178_v30 }
 0x3dd   : > { %v3673_v21 = vmul.f32 %v6580_v45, %v3641_v29  ;;  %4148 = vmatmul.msk.f32.gmra.mxu3 %vm1512_vm2, %v6518_v26  ;;  %v3183_v62 = vsel %vm3182_vm12, %v4391_v27, %v3179_v23  ;;  %v3545_v58 = vpop.f32.mrf.mxu0 }
 0x3de   : > { %4188 = vmatmul.msk.f32.gmra.mxu0 %vm1512_vm2, %v3183_v62 }
 0x3df   : > { %v3705_v18 = vadd.f32 %v6593_v54, %v3673_v21 }
 0x3e0   : > { %v3321_v13 = vpop.f32.mrf.mxu3 }
 0x3e1   : > { %4196 = vst.msk [vmem:[%s5613_s11 + $0x78] sm:$0xff] %vm412_vm0, %v3705_v18  ;;  %v3610_v36 = vsub.f32 %v7060_v28, %v3321_v13  ;;  %v7067_v28 = vld [vmem:[#allocation7_spill] sm:$0xff] }
 0x3e3   : > { %v3642_v0 = vmul.f32 %v3610_v36, %v6621_v32 }
 0x3e5   : > { %v3674_v26 = vmul.f32 %v6580_v45, %v3642_v0  ;;  %4149 = vmatmul.msk.f32.gmra.mxu3 %vm1512_vm2, %v6536_v41  ;;  %v3548_v41 = vpop.f32.mrf.mxu0 }
 0x3e7   : > { %v3706_v57 = vadd.f32 %v6593_v54, %v3674_v26 }
 0x3e8   : > { %v3324_v40 = vpop.f32.mrf.mxu3 }
 0x3e9   : > { %4197 = vst.msk [vmem:[%s5613_s11 + $0x90] sm:$0xff] %vm412_vm0, %v3706_v57  ;;  %v3611_v52 = vsub.f32 %v7061_v17, %v3324_v40  ;;  %v7068_v40 = vld [vmem:[#allocation39_spill] sm:$0xff] }
 0x3eb   : > { %v3643_v7 = vmul.f32 %v3611_v52, %v6650_v4 }
 0x3ed   : > { %v3675_v38 = vmul.f32 %v6580_v45, %v3643_v7  ;;  %4150 = vmatmul.msk.f32.gmra.mxu3 %vm1512_vm2, %v6556_v43  ;;  %v7063_v43 = vld [vmem:[#allocation2_spill] sm:$0xff]  ;;  %v3551_v44 = vpop.f32.mrf.mxu0 }
 0x3ef   : > { %v3707_v32 = vadd.f32 %v6593_v54, %v3675_v38 }
 0x3f0   : > { %v3327_v47 = vpop.f32.mrf.mxu3 }
 0x3f1   : > { %4198 = vst.msk [vmem:[%s5613_s11 + $0x98] sm:$0xff] %vm412_vm0, %v3707_v32  ;;  %v3612_v55 = vsub.f32 %v7062_v50, %v3327_v47  ;;  %v7069_v47 = vld [vmem:[#allocation3_spill] sm:$0xff] }
 0x3f3   : > { %v3644_v46 = vmul.f32 %v3612_v55, %v6671_v16 }
 0x3f5   : > { %v3676_v34 = vmul.f32 %v6580_v45, %v3644_v46  ;;  %4151 = vmatmul.msk.f32.gmra.mxu3 %vm1512_vm2, %v6575_v19  ;;  %v7064_v19 = vld [vmem:[#allocation5_spill] sm:$0xff]  ;;  %v3554_v60 = vpop.f32.mrf.mxu0 }
 0x3f7   : > { %v3708_v4 = vadd.f32 %v6593_v54, %v3676_v34 }
 0x3f8   : > { %v3330_v25 = vpop.f32.mrf.mxu3 }
 0x3f9   : > { %4199 = vst.msk [vmem:[%s5613_s11 + $0xb0] sm:$0xff] %vm412_vm0, %v3708_v4  ;;  %v3613_v53 = vsub.f32 %v7063_v43, %v3330_v25  ;;  %v7070_v25 = vld [vmem:[#allocation45_spill] sm:$0xff] }
 0x3fb   : > { %v3645_v27 = vmul.f32 %v3613_v53, %v3539_v35 }
 0x3fd   : > { %v3677_v20 = vmul.f32 %v6580_v45, %v3645_v27  ;;  %4152 = vmatmul.msk.f32.gmra.mxu3 %vm1512_vm2, %v6605_v61  ;;  %v7065_v61 = vld [vmem:[#allocation38_spill] sm:$0xff]  ;;  %v3557_v29 = vpop.f32.mrf.mxu0 }
 0x3ff   : > { %v3709_v16 = vadd.f32 %v6593_v54, %v3677_v20 }
 0x400   : > { %v3333_v9 = vpop.f32.mrf.mxu3 }
 0x401   : > { %4200 = vst.msk [vmem:[%s5613_s11 + $0xb8] sm:$0xff] %vm412_vm0, %v3709_v16  ;;  %v3614_v33 = vsub.f32 %v7064_v19, %v3333_v9 }
 0x403   : > { %v3646_v63 = vmul.f32 %v3614_v33, %v3542_v6 }
 0x405   : > { %v3678_v2 = vmul.f32 %v6580_v45, %v3646_v63  ;;  %4153 = vmatmul.msk.f32.gmra.mxu3 %vm1512_vm2, %v6625_v15  ;;  %v7066_v15 = vld [vmem:[#allocation42_spill] sm:$0xff]  ;;  %v3560_v13 = vpop.f32.mrf.mxu0 }
 0x407   : > { %v3710_v35 = vadd.f32 %v6593_v54, %v3678_v2 }
 0x408   : > { %v3336_v22 = vpop.f32.mrf.mxu3 }
 0x409   : > { %4201 = vst.msk [vmem:[%s5613_s11 + $0xd0] sm:$0xff] %vm412_vm0, %v3710_v35  ;;  %v3615_v14 = vsub.f32 %v7065_v61, %v3336_v22 }
 0x40b   : > { %v3647_v51 = vmul.f32 %v3615_v14, %v3545_v58 }
 0x40d   : > { %v3679_v11 = vmul.f32 %v6580_v45, %v3647_v51  ;;  %4154 = vmatmul.msk.f32.gmra.mxu3 %vm1512_vm2, %v6643_v5  ;;  %v3563_v17 = vpop.f32.mrf.mxu0 }
 0x40f   : > { %v3711_v30 = vadd.f32 %v6593_v54, %v3679_v11 }
 0x410   : > { %v3339_v6 = vpop.f32.mrf.mxu3 }
 0x411   : > { %4202 = vst.msk [vmem:[%s5613_s11 + $0xd8] sm:$0xff] %vm412_vm0, %v3711_v30  ;;  %v3616_v21 = vsub.f32 %v7066_v15, %v3339_v6 }
 0x413   : > { %v3648_v23 = vmul.f32 %v3616_v21, %v3548_v41 }
 0x415   : > { %v3680_v18 = vmul.f32 %v6580_v45, %v3648_v23  ;;  %4155 = vmatmul.msk.f32.gmra.mxu3 %vm1512_vm2, %v6661_v42  ;;  %v3566_v55 = vpop.f32.mrf.mxu0 }
 0x417   : > { %v3712_v62 = vadd.f32 %v6593_v54, %v3680_v18 }
 0x418   : > { %v3342_v5 = vpop.f32.mrf.mxu3 }
 0x419   : > { %4203 = vst.msk [vmem:[%s5613_s11 + $0xf0] sm:$0xff] %vm412_vm0, %v3712_v62  ;;  %v3617_v36 = vsub.f32 %v7067_v28, %v3342_v5 }
 0x41b   : > { %v3649_v0 = vmul.f32 %v3617_v36, %v3551_v44 }
 0x41d   : > { %v3681_v26 = vmul.f32 %v6580_v45, %v3649_v0  ;;  %v3569_v27 = vpop.f32.mrf.mxu0 }
 0x41f   : > { %v3713_v58 = vadd.f32 %v6593_v54, %v3681_v26 }
 0x420   : > { %v3345_v57 = vpop.f32.mrf.mxu3 }
 0x421   : > { %4204 = vst.msk [vmem:[%s5613_s11 + $0xf8] sm:$0xff] %vm412_vm0, %v3713_v58  ;;  %v3618_v42 = vsub.f32 %v7068_v40, %v3345_v57 }
 0x423   : > { %v3650_v52 = vmul.f32 %v3618_v42, %v3554_v60 }
 0x425   : > { %v3682_v7 = vmul.f32 %v6580_v45, %v3650_v52  ;;  %v3572_v60 = vpop.f32.mrf.mxu0 }
 0x427   : > { %v3714_v38 = vadd.f32 %v6593_v54, %v3682_v7 }
 0x428   : > { %v3348_v32 = vpop.f32.mrf.mxu3 }
 0x429   : > { %4205 = vst.msk [vmem:[%s5613_s11 + $0x110] sm:$0xff] %vm412_vm0, %v3714_v38  ;;  %v3619_v41 = vsub.f32 %v7069_v47, %v3348_v32 }
 0x42b   : > { %v3651_v50 = vmul.f32 %v3619_v41, %v3557_v29 }
 0x42d   : > { %v3683_v46 = vmul.f32 %v6580_v45, %v3651_v50  ;;  %v3575_v11 = vpop.f32.mrf.mxu0 }
 0x42f   : > { %v3715_v34 = vadd.f32 %v6593_v54, %v3683_v46 }
 0x430   : > { %v3351_v4 = vpop.f32.mrf.mxu3 }
 0x431   : > { %4206 = vst.msk [vmem:[%s5613_s11 + $0x118] sm:$0xff] %vm412_vm0, %v3715_v34  ;;  %v3620_v43 = vsub.f32 %v7070_v25, %v3351_v4 }
 0x433   : > { %v3652_v53 = vmul.f32 %v3620_v43, %v3560_v13 }
 0x435   : > { %v3684_v44 = vmul.f32 %v6580_v45, %v3652_v53  ;;  %v3578_v23 = vpop.f32.mrf.mxu0 }
 0x437   : > { %v3716_v20 = vadd.f32 %v6593_v54, %v3684_v44 }
 0x438   : > { %v3354_v16 = vpop.f32.mrf.mxu3 }
 0x439   : > { %4207 = vst.msk [vmem:[%s5613_s11 + $0x130] sm:$0xff] %vm412_vm0, %v3716_v20  ;;  %v3621_v9 = vsub.f32 %v5891_v12, %v3354_v16 }
 0x43b   : > { %v3653_v19 = vmul.f32 %v3621_v9, %v3563_v17 }
 0x43d   : > { %v3685_v33 = vmul.f32 %v6580_v45, %v3653_v19  ;;  %v3581_v36 = vpop.f32.mrf.mxu0 }
 0x43f   : > { %v3717_v63 = vadd.f32 %v6593_v54, %v3685_v33 }
 0x440   : > { %v3357_v2 = vpop.f32.mrf.mxu3 }
 0x441   : > { %4208 = vst.msk [vmem:[%s5613_s11 + $0x138] sm:$0xff] %vm412_vm0, %v3717_v63  ;;  %v3622_v35 = vsub.f32 %v5944_v59, %v3357_v2 }
 0x443   : > { %v3654_v22 = vmul.f32 %v3622_v35, %v3566_v55 }
 0x445   : > { %v3686_v61 = vmul.f32 %v6580_v45, %v3654_v22  ;;  %v3584_v42 = vpop.f32.mrf.mxu0 }
 0x447   : > { %v3718_v14 = vadd.f32 %v6593_v54, %v3686_v61 }
 0x448   : > { %v3360_v51 = vpop.f32.mrf.mxu3 }
 0x449   : > { %4209 = vst.msk [vmem:[%s5613_s11 + $0x150] sm:$0xff] %vm412_vm0, %v3718_v14  ;;  %v3623_v12 = vsub.f32 %v5999_v3, %v3360_v51 }
 0x44b   : > { %v3655_v29 = vmul.f32 %v3623_v12, %v3569_v27 }
 0x44d   : > { %v3687_v30 = vmul.f32 %v6580_v45, %v3655_v29  ;;  %v3587_v47 = vpop.f32.mrf.mxu0 }
 0x44f   : > { %v3719_v6 = vadd.f32 %v6593_v54, %v3687_v30 }
 0x450   : > { %v3363_v15 = vpop.f32.mrf.mxu3 }
 0x451   : > { %4210 = vst.msk [vmem:[%s5613_s11 + $0x158] sm:$0xff] %vm412_vm0, %v3719_v6  ;;  %v3624_v59 = vsub.f32 %v6049_v8, %v3363_v15 }
 0x453   : > { %v3656_v21 = vmul.f32 %v3624_v59, %v3572_v60 }
 0x455   : > { %v3688_v18 = vmul.f32 %v6580_v45, %v3656_v21  ;;  %v3590_v4 = vpop.f32.mrf.mxu0 }
 0x457   : > { %v3720_v62 = vadd.f32 %v6593_v54, %v3688_v18 }
 0x458   : > { %v3366_v3 = vpop.f32.mrf.mxu3 }
 0x459   : > { %4211 = vst.msk [vmem:[%s5613_s11 + $0x170] sm:$0xff] %vm412_vm0, %v3720_v62  ;;  %v3625_v13 = vsub.f32 %v6090_v1, %v3366_v3 }
 0x45b   : > { %v3657_v5 = vmul.f32 %v3625_v13, %v3575_v11 }
 0x45d   : > { %v3689_v28 = vmul.f32 %v6580_v45, %v3657_v5  ;;  %v3593_v20 = vpop.f32.mrf.mxu0 }
 0x45f   : > { %v3721_v0 = vadd.f32 %v6593_v54, %v3689_v28 }
 0x460   : > { %v3369_v8 = vpop.f32.mrf.mxu3 }
 0x461   : > { %4212 = vst.msk [vmem:[%s5613_s11 + $0x178] sm:$0xff] %vm412_vm0, %v3721_v0  ;;  %v3626_v26 = vsub.f32 %v6130_v48, %v3369_v8 }
 0x463   : > { %v3658_v58 = vmul.f32 %v3626_v26, %v3578_v23 }
 0x465   : > { %v3690_v57 = vmul.f32 %v6580_v45, %v3658_v58  ;;  %v3596_v60 = vpop.f32.mrf.mxu0 }
 0x467   : > { %v3722_v40 = vadd.f32 %v6593_v54, %v3690_v57 }
 0x468   : > { %v3372_v1 = vpop.f32.mrf.mxu3 }
 0x469   : > { %4213 = vst.msk [vmem:[%s5613_s11 + $0x190] sm:$0xff] %vm412_vm0, %v3722_v40  ;;  %v3627_v17 = vsub.f32 %v6166_v31, %v3372_v1 }
 0x46b   : > { %v3659_v52 = vmul.f32 %v3627_v17, %v3581_v36 }
 0x46d   : > { %v3691_v7 = vmul.f32 %v6580_v45, %v3659_v52  ;;  %v3599_v51 = vpop.f32.mrf.mxu0 }
 0x46f   : > { %v3723_v38 = vadd.f32 %v6593_v54, %v3691_v7 }
 0x470   : > { %v3375_v32 = vpop.f32.mrf.mxu3 }
 0x471   : > { %4214 = vst.msk [vmem:[%s5613_s11 + $0x198] sm:$0xff] %vm412_vm0, %v3723_v38  ;;  %v3628_v48 = vsub.f32 %v6209_v49, %v3375_v32 }
 0x473   : > { %v3660_v41 = vmul.f32 %v3628_v48, %v3584_v42 }
 0x475   : > { %v3692_v50 = vmul.f32 %v6580_v45, %v3660_v41 }
 0x477   : > { %v3724_v55 = vadd.f32 %v6593_v54, %v3692_v50 }
 0x478   : > { %v3378_v46 = vpop.f32.mrf.mxu3 }
 0x479   : > { %4215 = vst.msk [vmem:[%s5613_s11 + $0x1b0] sm:$0xff] %vm412_vm0, %v3724_v55  ;;  %v3629_v31 = vsub.f32 %v6235_v37, %v3378_v46 }
 0x47b   : > { %v3661_v34 = vmul.f32 %v3629_v31, %v3587_v47 }
 0x47d   : > { %v3693_v25 = vmul.f32 %v6580_v45, %v3661_v34 }
 0x47f   : > { %v3725_v43 = vadd.f32 %v6593_v54, %v3693_v25 }
 0x480   : > { %v3381_v49 = vpop.f32.mrf.mxu3 }
 0x481   : > { %4216 = vst.msk [vmem:[%s5613_s11 + $0x1b8] sm:$0xff] %vm412_vm0, %v3725_v43  ;;  %v3630_v53 = vsub.f32 %v6260_v56, %v3381_v49 }
 0x483   : > { %v3662_v44 = vmul.f32 %v3630_v53, %v3590_v4 }
 0x485   : > { %v3694_v27 = vmul.f32 %v6580_v45, %v3662_v44 }
 0x487   : > { %v3726_v16 = vadd.f32 %v6593_v54, %v3694_v27 }
 0x488   : > { %v3384_v37 = vpop.f32.mrf.mxu3 }
 0x489   : > { %4217 = vst.msk [vmem:[%s5613_s11 + $0x1d0] sm:$0xff] %vm412_vm0, %v3726_v16  ;;  %v3631_v9 = vsub.f32 %v6285_v10, %v3384_v37 }
 0x48b   : > { %v3663_v19 = vmul.f32 %v3631_v9, %v3593_v20 }
 0x48d   : > { %v3695_v33 = vmul.f32 %v6580_v45, %v3663_v19 }
 0x48f   : > { %v3727_v63 = vadd.f32 %v6593_v54, %v3695_v33 }
 0x490   : > { %v3387_v56 = vpop.f32.mrf.mxu3 }
 0x491   : > { %4218 = vst.msk [vmem:[%s5613_s11 + $0x1d8] sm:$0xff] %vm412_vm0, %v3727_v63  ;;  %v3632_v2 = vsub.f32 %v6310_v24, %v3387_v56 }
 0x493   : > { %v3664_v35 = vmul.f32 %v3632_v2, %v3596_v60 }
 0x495   : > { %v3696_v22 = vmul.f32 %v6580_v45, %v3664_v35 }
 0x497   : > { %v3728_v61 = vadd.f32 %v6593_v54, %v3696_v22 }
 0x498   : > { %v3390_v14 = vpop.f32.mrf.mxu3 }
 0x499   : > { %4219 = vst.msk [vmem:[%s5613_s11 + $0x1f0] sm:$0xff] %vm412_vm0, %v3728_v61  ;;  %v3633_v10 = vsub.f32 %v6335_v39, %v3390_v14 }
 0x49b   : > { %v3665_v12 = vmul.f32 %v3633_v10, %v3599_v51 }
 0x49d   : > { %v3697_v11 = vmul.f32 %v6580_v45, %v3665_v12 }
 0x49f   : > { %v3729_v29 = vadd.f32 %v6593_v54, %v3697_v11 }
 0x4a1   : > { %4220 = vst.msk [vmem:[%s5613_s11 + $0x1f8] sm:$0xff] %vm412_vm0, %v3729_v29 }
 0x4a2 PF: > { %s17_s26 = sadd.s32 1, %s4418_s26   ;;  %s7071_s24 = smov %s4414_s25 }
 0x4a3   : > { %p14_p5 = scmp.ge.s32.totalorder %s17_s26, 4   ;;  %s7072_s25 = smov %s7074_s27 }
 0x4a5   :  { %16 = sbr.rel (!%p14_p5) target bundleno = 2 (0x2), region = 79 }

</bundles_post_ra>
